<compile_context>
chip_gen: v7x
topology: tpu7x:2x2x1
jax: 0.10.0
libtpu: 0.0.40
codegen_flags: <defaults>
</compile_context>

<pallas_src>
import functools

import jax
import jax.numpy as jnp
from jax import lax
from jax.experimental import pallas as pl
from jax.experimental.pallas import tpu as pltpu

VMEM = pltpu.MemorySpace.VMEM


def _forward_kernel(Q, QP, A, L, M, H,
                    xemb_ref,                              # [QP+A*L, E]  (q rows 0:Q, pad, a rows QP:)
                    pw_ref, pb_ref,                        # proj     [2M,E], [1,2M]
                    apw_ref, apb_ref,                      # aa_proj  [2M,E], [1,2M]
                    gwih_ref, gwhh_ref, gbih_ref, gbhh_ref,    # gru     [2,3H,M],[2,3H,H],[2,1,3H],[2,1,3H]
                    awih_ref, awhh_ref, abih_ref, abhh_ref,    # aa_gru  (same shapes)
                    sw_ref, sb_ref,                        # soft     [1,2H], [1,1]
                    rw_ref, rb_ref,                        # rl_soft  [1,4H], [1,1]
                    o_ref):                                # out      [A,1]
    f32 = jnp.float32
    AL = A * L

    def matT(x, w):                         # x @ w.T (nn.Linear weight layout [out,in])
        return lax.dot_general(x, w, (((1,), (1,)), ((), ())),
                               preferred_element_type=f32)

    def proj(x, w_ref, b_ref):              # sigmoid(x@W1^T+b1) * tanh(x@W2^T+b2), fused
        pr = matT(x, w_ref[...]) + b_ref[...]        # [n, 2M]
        return jax.nn.sigmoid(pr[:, :M]) * jnp.tanh(pr[:, M:])

    def bigru_pool(x_flat, wih_ref, whh_ref, bih_ref, bhh_ref):
        # x_flat: [A*L, M]  (seq = A answers, batch = L tokens).  Returns [A, 2H].
        def run(d, order):
            # input-side projection hoisted out of the recurrence (biases folded in)
            xp = matT(x_flat, wih_ref[d]) + bih_ref[d]          # [A*L, 3H]
            xp3 = xp.reshape(A, L, 3 * H)
            whh_d = whh_ref[d]                                  # [3H, H]
            bhh_d = bhh_ref[d]                                  # [1, 3H]
            h = jnp.zeros((L, H), f32)
            pooled = [None] * A
            for t in order:                                     # fully unrolled (A = 4)
                xg = xp3[t]                                     # [L, 3H]
                hp = matT(h, whh_d) + bhh_d                     # [L, 3H]
                r = jax.nn.sigmoid(xg[:, :H] + hp[:, :H])
                z = jax.nn.sigmoid(xg[:, H:2 * H] + hp[:, H:2 * H])
                n = jnp.tanh(xg[:, 2 * H:] + r * hp[:, 2 * H:])  # b_hn inside r-product
                h = (1.0 - z) * n + z * h
                pooled[t] = jnp.max(h, axis=0, keepdims=True)   # max-pool over L  -> [1, H]
            return jnp.concatenate(pooled, axis=0)              # [A, H]
        fwd = run(0, range(A))
        bwd = run(1, range(A - 1, -1, -1))
        return jnp.tanh(jnp.concatenate([fwd, bwd], axis=1))    # [A, 2H]

    x_all = xemb_ref[...]                   # [QP+AL, E]
    a_emb = x_all[QP:, :]                   # [AL, E]

    # ---------------- main path: proj (q and a in one matmul) ----------------
    p_all = proj(x_all, pw_ref, pb_ref)     # [QP+AL, M]
    q_proj = p_all[:Q, :]                   # [Q, M]
    a_proj = p_all[QP:, :]                  # [AL, M]

    # ---------------- attention (2-D question) fused with sim (mul) ----------
    m_rt = matT(a_proj, q_proj)             # == M_r^T : [AL, Q]
    m_rt = m_rt - jnp.max(m_rt, axis=1, keepdims=True)
    e = jnp.exp(m_rt)
    alpha = e * pl.reciprocal(jnp.sum(e, axis=1, keepdims=True), approx=True)
    yl = jnp.dot(alpha, q_proj, preferred_element_type=f32)     # [AL, M]
    sim = a_proj * yl                                           # [AL, M]

    # ---------------- bi-GRU + pool + tanh, then soft argmax -----------------
    gru_out = bigru_pool(sim, gwih_ref, gwhh_ref, gbih_ref, gbhh_ref)   # [A, 2H]

    v = jnp.sum(gru_out * sw_ref[...], axis=1, keepdims=True) + sb_ref[...]   # [A,1] logits
    ids = lax.broadcasted_iota(jnp.int32, (A, 1), 0)
    pos = jnp.min(jnp.where(v >= jnp.max(v), ids, A))            # first argmax (scalar)

    # ---------------- aa / reference path ------------------------------------
    aa_proj_flat = proj(a_emb, apw_ref, apb_ref)                 # [AL, M]
    aa3 = aa_proj_flat.reshape(A, L, M)
    # reference projection == aa projection of the argmax answer (replicated rows)
    sel = (lax.broadcasted_iota(jnp.int32, (A, 1), 0) == pos).astype(f32).reshape(A, 1, 1)
    qref = jnp.sum(aa3 * sel, axis=0)                            # [L, M]

    p_flat = matT(aa_proj_flat, qref)                            # [AL, L]
    p3 = p_flat.reshape(A, L, L)
    p3 = p3 - jnp.max(p3, axis=0, keepdims=True)                 # legacy softmax dim=0
    e3 = jnp.exp(p3)
    alpha3 = e3 * pl.reciprocal(jnp.sum(e3, axis=0, keepdims=True), approx=True)
    yl_aa = jnp.dot(alpha3.reshape(AL, L), qref, preferred_element_type=f32)  # [AL, M]
    sim_aa = aa_proj_flat * yl_aa                                # [AL, M]

    ref_out = bigru_pool(sim_aa, awih_ref, awhh_ref, abih_ref, abhh_ref)      # [A, 2H]

    # ---------------- rl_soft: Linear(4H,1) -> log_softmax over answers ------
    rl = jnp.concatenate([gru_out, ref_out], axis=1)             # [A, 4H]
    s = jnp.sum(rl * rw_ref[...], axis=1, keepdims=True) + rb_ref[...]        # [A, 1]
    m = jnp.max(s, axis=0, keepdims=True)
    lse = m + jnp.log(jnp.sum(jnp.exp(s - m), axis=0, keepdims=True))
    o_ref[...] = s - lse


def _pack_params(params):
    pw1, pb1, pw2, pb2 = params['proj']
    aw1, ab1, aw2, ab2 = params['aa_proj']
    pw = jnp.concatenate([pw1, pw2], axis=0)                 # [2M, E]
    pb = jnp.concatenate([pb1, pb2], axis=0)[None, :]        # [1, 2M]
    apw = jnp.concatenate([aw1, aw2], axis=0)
    apb = jnp.concatenate([ab1, ab2], axis=0)[None, :]
    gwih, gwhh, gbih, gbhh = params['gru']                   # [2,3H,M],[2,3H,H],[2,3H],[2,3H]
    awih, awhh, abih, abhh = params['aa_gru']
    sw, sb = params['soft']                                  # [1,2H], [1]
    rw, rb = params['rl_soft']                               # [1,4H], [1]
    return (pw, pb, apw, apb,
            gwih, gwhh, gbih[:, None, :], gbhh[:, None, :],
            awih, awhh, abih[:, None, :], abhh[:, None, :],
            sw, sb.reshape(1, 1), rw, rb.reshape(1, 1))


def comp_agg_wikiqa_forward(q_ids, a_ids, params):
    """compAggWikiqa.forward(data_q, data_as, data_as_len) -> new_score [A]."""
    emb = params['emb']
    Q = q_ids.shape[0]
    A, L = a_ids.shape
    E = emb.shape[1]
    M = params['proj'][0].shape[0]
    H = params['gru'][1].shape[-1]
    QP = ((Q + 7) // 8) * 8                                  # pad q rows to a sublane multiple

    q_emb = jnp.take(emb, q_ids, axis=0)                     # [Q, E]
    a_emb = jnp.take(emb, a_ids.reshape(-1), axis=0)         # [A*L, E]
    x_emb = jnp.concatenate(
        [q_emb, jnp.zeros((QP - Q, E), q_emb.dtype), a_emb], axis=0)   # [QP+A*L, E]

    packed = _pack_params(params)
    kernel = functools.partial(_forward_kernel, Q, QP, A, L, M, H)
    out = pl.pallas_call(
        kernel,
        out_shape=jax.ShapeDtypeStruct((A, 1), jnp.float32),
        in_specs=[pl.BlockSpec(memory_space=VMEM)] * (1 + len(packed)),
        out_specs=pl.BlockSpec(memory_space=VMEM),
    )(x_emb, *packed)
    return out[:, 0]


if __name__ == "__main__":
    key = jax.random.PRNGKey(0)
    numWords = 100
    E = 32     # emb_dim (args.wvecDim)
    M = 32     # mem_dim (proj output)
    H = 32     # gru_dim
    A = 4      # number of candidate answers (GRU "seq" axis)
    L = 12     # answer length
    Q = 10     # question length

    ks = list(jax.random.split(key, 24))

    def nrm(k, shape, scale=0.05):
        return (scale * jax.random.normal(k, shape)).astype(jnp.float32)

    def gru_params(k):
        k1, k2, k3, k4 = jax.random.split(k, 4)
        # PyTorch nn.GRU layout per direction: weights already gate-concatenated (r,z,n)
        return (nrm(k1, (2, 3 * H, M)),    # W_ih  (dir, 3H, input)
                nrm(k2, (2, 3 * H, H)),    # W_hh
                nrm(k3, (2, 3 * H)),       # b_ih
                nrm(k4, (2, 3 * H)))       # b_hh

    params = {
        'emb': nrm(ks[0], (numWords, E), 1.0),
        'proj': (nrm(ks[1], (M, E)), nrm(ks[2], (M,)),
                 nrm(ks[3], (M, E)), nrm(ks[4], (M,))),
        'aa_proj': (nrm(ks[5], (M, E)), nrm(ks[6], (M,)),
                    nrm(ks[7], (M, E)), nrm(ks[8], (M,))),
        'gru': gru_params(ks[9]),
        'aa_gru': gru_params(ks[10]),
        'soft': (nrm(ks[11], (1, 2 * H)), nrm(ks[12], (1,))),
        'rl_soft': (nrm(ks[15], (1, 4 * H)), nrm(ks[16], (1,))),
    }

    q_ids = jax.random.randint(ks[17], (Q,), 0, numWords, dtype=jnp.int32)
    a_ids = jax.random.randint(ks[18], (A, L), 0, numWords, dtype=jnp.int32)

    forward = jax.jit(comp_agg_wikiqa_forward)
    new_score = forward(q_ids, a_ids, params)
    jax.block_until_ready(new_score)
    assert new_score.shape == (A,)
    print("KERNEL_OK")
</pallas_src>

<mosaic_0001>
module attributes {stable_mosaic.version = 11 : i64} {
  func.func @_forward_kernel(%arg0: memref<64x32xf32, #tpu.memory_space<vmem>>, %arg1: memref<64x32xf32, #tpu.memory_space<vmem>>, %arg2: memref<1x64xf32, #tpu.memory_space<vmem>>, %arg3: memref<64x32xf32, #tpu.memory_space<vmem>>, %arg4: memref<1x64xf32, #tpu.memory_space<vmem>>, %arg5: memref<2x96x32xf32, #tpu.memory_space<vmem>>, %arg6: memref<2x96x32xf32, #tpu.memory_space<vmem>>, %arg7: memref<2x1x96xf32, #tpu.memory_space<vmem>>, %arg8: memref<2x1x96xf32, #tpu.memory_space<vmem>>, %arg9: memref<2x96x32xf32, #tpu.memory_space<vmem>>, %arg10: memref<2x96x32xf32, #tpu.memory_space<vmem>>, %arg11: memref<2x1x96xf32, #tpu.memory_space<vmem>>, %arg12: memref<2x1x96xf32, #tpu.memory_space<vmem>>, %arg13: memref<1x64xf32, #tpu.memory_space<vmem>>, %arg14: memref<1x1xf32, #tpu.memory_space<vmem>>, %arg15: memref<1x128xf32, #tpu.memory_space<vmem>>, %arg16: memref<1x1xf32, #tpu.memory_space<vmem>>, %arg17: memref<4x1xf32, #tpu.memory_space<vmem>>) attributes {dimension_semantics = [], scalar_prefetch = 0 : i64, scratch_operands = 0 : i64, tpu.core_type = #tpu.core_type<tc>} {
    %c0 = arith.constant 0 : index
    %c0_0 = arith.constant 0 : index
    %0 = vector.load %arg0[%c0, %c0_0] : memref<64x32xf32, #tpu.memory_space<vmem>>, vector<64x32xf32>
    %1 = vector.extract_strided_slice %0 {offsets = [16, 0], sizes = [48, 32], strides = [1, 1]} : vector<64x32xf32> to vector<48x32xf32>
    %c0_1 = arith.constant 0 : index
    %c0_2 = arith.constant 0 : index
    %2 = vector.load %arg1[%c0_1, %c0_2] : memref<64x32xf32, #tpu.memory_space<vmem>>, vector<64x32xf32>
    %cst = arith.constant dense<0.000000e+00> : vector<64x64xf32>
    %3 = tpu.matmul %0, %2, %cst {dimension_numbers = #tpu.dot_dimension_numbers<[1], [1], [0], [0], [0, 0, 1, 0], [], []>} : vector<64x32xf32>, vector<64x32xf32>, vector<64x64xf32> -> vector<64x64xf32>
    %c0_3 = arith.constant 0 : index
    %c0_4 = arith.constant 0 : index
    %4 = vector.load %arg2[%c0_3, %c0_4] : memref<1x64xf32, #tpu.memory_space<vmem>>, vector<1x64xf32>
    %5 = vector.broadcast %4 : vector<1x64xf32> to vector<64x64xf32>
    %6 = arith.addf %3, %5 : vector<64x64xf32>
    %7 = vector.extract_strided_slice %6 {offsets = [0, 0], sizes = [64, 32], strides = [1, 1]} : vector<64x64xf32> to vector<64x32xf32>
    %8 = arith.negf %7 : vector<64x32xf32>
    %9 = math.exp %8 : vector<64x32xf32>
    %cst_5 = arith.constant 1.000000e+00 : f32
    %10 = vector.broadcast %cst_5 : f32 to vector<64x32xf32>
    %11 = arith.addf %10, %9 : vector<64x32xf32>
    %12 = arith.divf %10, %11 : vector<64x32xf32>
    %13 = vector.extract_strided_slice %6 {offsets = [0, 32], sizes = [64, 32], strides = [1, 1]} : vector<64x64xf32> to vector<64x32xf32>
    %14 = math.tanh %13 : vector<64x32xf32>
    %15 = arith.mulf %12, %14 : vector<64x32xf32>
    %16 = vector.extract_strided_slice %15 {offsets = [0, 0], sizes = [10, 32], strides = [1, 1]} : vector<64x32xf32> to vector<10x32xf32>
    %17 = vector.extract_strided_slice %15 {offsets = [16, 0], sizes = [48, 32], strides = [1, 1]} : vector<64x32xf32> to vector<48x32xf32>
    %cst_6 = arith.constant dense<0.000000e+00> : vector<48x10xf32>
    %18 = tpu.matmul %17, %16, %cst_6 {dimension_numbers = #tpu.dot_dimension_numbers<[1], [1], [0], [0], [0, 0, 1, 0], [], []>} : vector<48x32xf32>, vector<10x32xf32>, vector<48x10xf32> -> vector<48x10xf32>
    %cst_7 = arith.constant dense<0xFF800000> : vector<48xf32>
    %19 = vector.multi_reduction <maximumf>, %18, %cst_7 [1] : vector<48x10xf32> to vector<48xf32>
    %20 = vector.shape_cast %19 : vector<48xf32> to vector<48x1xf32>
    %21 = vector.broadcast %20 : vector<48x1xf32> to vector<48x10xf32>
    %22 = arith.subf %18, %21 : vector<48x10xf32>
    %23 = math.exp %22 : vector<48x10xf32>
    %cst_8 = arith.constant dense<0.000000e+00> : vector<48xf32>
    %24 = vector.multi_reduction <add>, %23, %cst_8 [1] : vector<48x10xf32> to vector<48xf32>
    %25 = vector.shape_cast %24 : vector<48xf32> to vector<48x1xf32>
    %26 = tpu.reciprocal %25 {approx = true} : vector<48x1xf32> -> vector<48x1xf32>
    %27 = vector.broadcast %26 : vector<48x1xf32> to vector<48x10xf32>
    %28 = arith.mulf %23, %27 : vector<48x10xf32>
    %cst_9 = arith.constant dense<0.000000e+00> : vector<48x32xf32>
    %29 = tpu.matmul %28, %16, %cst_9 {dimension_numbers = #tpu.dot_dimension_numbers<[1], [0], [0], [1], [0, 0, 1, 1], [], []>} : vector<48x10xf32>, vector<10x32xf32>, vector<48x32xf32> -> vector<48x32xf32>
    %30 = arith.mulf %17, %29 : vector<48x32xf32>
    %c0_10 = arith.constant 0 : index
    %c0_11 = arith.constant 0 : index
    %c0_12 = arith.constant 0 : index
    %31 = vector.load %arg5[%c0_10, %c0_11, %c0_12] : memref<2x96x32xf32, #tpu.memory_space<vmem>>, vector<1x96x32xf32>
    %32 = vector.shape_cast %31 : vector<1x96x32xf32> to vector<96x32xf32>
    %cst_13 = arith.constant dense<0.000000e+00> : vector<48x96xf32>
    %33 = tpu.matmul %30, %32, %cst_13 {dimension_numbers = #tpu.dot_dimension_numbers<[1], [1], [0], [0], [0, 0, 1, 0], [], []>} : vector<48x32xf32>, vector<96x32xf32>, vector<48x96xf32> -> vector<48x96xf32>
    %c0_14 = arith.constant 0 : index
    %c0_15 = arith.constant 0 : index
    %c0_16 = arith.constant 0 : index
    %34 = vector.load %arg7[%c0_14, %c0_15, %c0_16] : memref<2x1x96xf32, #tpu.memory_space<vmem>>, vector<1x1x96xf32>
    %35 = vector.shape_cast %34 : vector<1x1x96xf32> to vector<1x96xf32>
    %36 = vector.broadcast %35 : vector<1x96xf32> to vector<48x96xf32>
    %37 = arith.addf %33, %36 : vector<48x96xf32>
    %38 = vector.shape_cast %37 : vector<48x96xf32> to vector<4x12x96xf32>
    %c0_17 = arith.constant 0 : index
    %c0_18 = arith.constant 0 : index
    %c0_19 = arith.constant 0 : index
    %39 = vector.load %arg6[%c0_17, %c0_18, %c0_19] : memref<2x96x32xf32, #tpu.memory_space<vmem>>, vector<1x96x32xf32>
    %40 = vector.shape_cast %39 : vector<1x96x32xf32> to vector<96x32xf32>
    %c0_20 = arith.constant 0 : index
    %c0_21 = arith.constant 0 : index
    %c0_22 = arith.constant 0 : index
    %41 = vector.load %arg8[%c0_20, %c0_21, %c0_22] : memref<2x1x96xf32, #tpu.memory_space<vmem>>, vector<1x1x96xf32>
    %42 = vector.shape_cast %41 : vector<1x1x96xf32> to vector<1x96xf32>
    %cst_23 = arith.constant 0.000000e+00 : f32
    %43 = vector.broadcast %cst_23 : f32 to vector<12x32xf32>
    %44 = vector.extract_strided_slice %38 {offsets = [0, 0, 0], sizes = [1, 12, 96], strides = [1, 1, 1]} : vector<4x12x96xf32> to vector<1x12x96xf32>
    %45 = vector.shape_cast %44 : vector<1x12x96xf32> to vector<12x96xf32>
    %cst_24 = arith.constant dense<0.000000e+00> : vector<12x96xf32>
    %46 = tpu.matmul %43, %40, %cst_24 {dimension_numbers = #tpu.dot_dimension_numbers<[1], [1], [0], [0], [0, 0, 1, 0], [], []>} : vector<12x32xf32>, vector<96x32xf32>, vector<12x96xf32> -> vector<12x96xf32>
    %47 = vector.broadcast %42 : vector<1x96xf32> to vector<12x96xf32>
    %48 = arith.addf %46, %47 : vector<12x96xf32>
    %49 = vector.extract_strided_slice %45 {offsets = [0, 0], sizes = [12, 32], strides = [1, 1]} : vector<12x96xf32> to vector<12x32xf32>
    %50 = vector.extract_strided_slice %48 {offsets = [0, 0], sizes = [12, 32], strides = [1, 1]} : vector<12x96xf32> to vector<12x32xf32>
    %51 = arith.addf %49, %50 : vector<12x32xf32>
    %52 = arith.negf %51 : vector<12x32xf32>
    %53 = math.exp %52 : vector<12x32xf32>
    %cst_25 = arith.constant 1.000000e+00 : f32
    %54 = vector.broadcast %cst_25 : f32 to vector<12x32xf32>
    %55 = arith.addf %54, %53 : vector<12x32xf32>
    %56 = arith.divf %54, %55 : vector<12x32xf32>
    %57 = vector.extract_strided_slice %45 {offsets = [0, 32], sizes = [12, 32], strides = [1, 1]} : vector<12x96xf32> to vector<12x32xf32>
    %58 = vector.extract_strided_slice %48 {offsets = [0, 32], sizes = [12, 32], strides = [1, 1]} : vector<12x96xf32> to vector<12x32xf32>
    %59 = arith.addf %57, %58 : vector<12x32xf32>
    %60 = arith.negf %59 : vector<12x32xf32>
    %61 = math.exp %60 : vector<12x32xf32>
    %cst_26 = arith.constant 1.000000e+00 : f32
    %62 = vector.broadcast %cst_26 : f32 to vector<12x32xf32>
    %63 = arith.addf %62, %61 : vector<12x32xf32>
    %64 = arith.divf %62, %63 : vector<12x32xf32>
    %65 = vector.extract_strided_slice %45 {offsets = [0, 64], sizes = [12, 32], strides = [1, 1]} : vector<12x96xf32> to vector<12x32xf32>
    %66 = vector.extract_strided_slice %48 {offsets = [0, 64], sizes = [12, 32], strides = [1, 1]} : vector<12x96xf32> to vector<12x32xf32>
    %67 = arith.mulf %56, %66 : vector<12x32xf32>
    %68 = arith.addf %65, %67 : vector<12x32xf32>
    %69 = math.tanh %68 : vector<12x32xf32>
    %cst_27 = arith.constant 1.000000e+00 : f32
    %70 = vector.broadcast %cst_27 : f32 to vector<12x32xf32>
    %71 = arith.subf %70, %64 : vector<12x32xf32>
    %72 = arith.mulf %71, %69 : vector<12x32xf32>
    %73 = arith.mulf %64, %43 : vector<12x32xf32>
    %74 = arith.addf %72, %73 : vector<12x32xf32>
    %cst_28 = arith.constant dense<0xFF800000> : vector<32xf32>
    %75 = vector.multi_reduction <maximumf>, %74, %cst_28 [0] : vector<12x32xf32> to vector<32xf32>
    %76 = vector.shape_cast %75 : vector<32xf32> to vector<1x32xf32>
    %77 = vector.extract_strided_slice %38 {offsets = [1, 0, 0], sizes = [1, 12, 96], strides = [1, 1, 1]} : vector<4x12x96xf32> to vector<1x12x96xf32>
    %78 = vector.shape_cast %77 : vector<1x12x96xf32> to vector<12x96xf32>
    %cst_29 = arith.constant dense<0.000000e+00> : vector<12x96xf32>
    %79 = tpu.matmul %74, %40, %cst_29 {dimension_numbers = #tpu.dot_dimension_numbers<[1], [1], [0], [0], [0, 0, 1, 0], [], []>} : vector<12x32xf32>, vector<96x32xf32>, vector<12x96xf32> -> vector<12x96xf32>
    %80 = vector.broadcast %42 : vector<1x96xf32> to vector<12x96xf32>
    %81 = arith.addf %79, %80 : vector<12x96xf32>
    %82 = vector.extract_strided_slice %78 {offsets = [0, 0], sizes = [12, 32], strides = [1, 1]} : vector<12x96xf32> to vector<12x32xf32>
    %83 = vector.extract_strided_slice %81 {offsets = [0, 0], sizes = [12, 32], strides = [1, 1]} : vector<12x96xf32> to vector<12x32xf32>
    %84 = arith.addf %82, %83 : vector<12x32xf32>
    %85 = arith.negf %84 : vector<12x32xf32>
    %86 = math.exp %85 : vector<12x32xf32>
    %cst_30 = arith.constant 1.000000e+00 : f32
    %87 = vector.broadcast %cst_30 : f32 to vector<12x32xf32>
    %88 = arith.addf %87, %86 : vector<12x32xf32>
    %89 = arith.divf %87, %88 : vector<12x32xf32>
    %90 = vector.extract_strided_slice %78 {offsets = [0, 32], sizes = [12, 32], strides = [1, 1]} : vector<12x96xf32> to vector<12x32xf32>
    %91 = vector.extract_strided_slice %81 {offsets = [0, 32], sizes = [12, 32], strides = [1, 1]} : vector<12x96xf32> to vector<12x32xf32>
    %92 = arith.addf %90, %91 : vector<12x32xf32>
    %93 = arith.negf %92 : vector<12x32xf32>
    %94 = math.exp %93 : vector<12x32xf32>
    %cst_31 = arith.constant 1.000000e+00 : f32
    %95 = vector.broadcast %cst_31 : f32 to vector<12x32xf32>
    %96 = arith.addf %95, %94 : vector<12x32xf32>
    %97 = arith.divf %95, %96 : vector<12x32xf32>
    %98 = vector.extract_strided_slice %78 {offsets = [0, 64], sizes = [12, 32], strides = [1, 1]} : vector<12x96xf32> to vector<12x32xf32>
    %99 = vector.extract_strided_slice %81 {offsets = [0, 64], sizes = [12, 32], strides = [1, 1]} : vector<12x96xf32> to vector<12x32xf32>
    %100 = arith.mulf %89, %99 : vector<12x32xf32>
    %101 = arith.addf %98, %100 : vector<12x32xf32>
    %102 = math.tanh %101 : vector<12x32xf32>
    %cst_32 = arith.constant 1.000000e+00 : f32
    %103 = vector.broadcast %cst_32 : f32 to vector<12x32xf32>
    %104 = arith.subf %103, %97 : vector<12x32xf32>
    %105 = arith.mulf %104, %102 : vector<12x32xf32>
    %106 = arith.mulf %97, %74 : vector<12x32xf32>
    %107 = arith.addf %105, %106 : vector<12x32xf32>
    %cst_33 = arith.constant dense<0xFF800000> : vector<32xf32>
    %108 = vector.multi_reduction <maximumf>, %107, %cst_33 [0] : vector<12x32xf32> to vector<32xf32>
    %109 = vector.shape_cast %108 : vector<32xf32> to vector<1x32xf32>
    %110 = vector.extract_strided_slice %38 {offsets = [2, 0, 0], sizes = [1, 12, 96], strides = [1, 1, 1]} : vector<4x12x96xf32> to vector<1x12x96xf32>
    %111 = vector.shape_cast %110 : vector<1x12x96xf32> to vector<12x96xf32>
    %cst_34 = arith.constant dense<0.000000e+00> : vector<12x96xf32>
    %112 = tpu.matmul %107, %40, %cst_34 {dimension_numbers = #tpu.dot_dimension_numbers<[1], [1], [0], [0], [0, 0, 1, 0], [], []>} : vector<12x32xf32>, vector<96x32xf32>, vector<12x96xf32> -> vector<12x96xf32>
    %113 = vector.broadcast %42 : vector<1x96xf32> to vector<12x96xf32>
    %114 = arith.addf %112, %113 : vector<12x96xf32>
    %115 = vector.extract_strided_slice %111 {offsets = [0, 0], sizes = [12, 32], strides = [1, 1]} : vector<12x96xf32> to vector<12x32xf32>
    %116 = vector.extract_strided_slice %114 {offsets = [0, 0], sizes = [12, 32], strides = [1, 1]} : vector<12x96xf32> to vector<12x32xf32>
    %117 = arith.addf %115, %116 : vector<12x32xf32>
    %118 = arith.negf %117 : vector<12x32xf32>
    %119 = math.exp %118 : vector<12x32xf32>
    %cst_35 = arith.constant 1.000000e+00 : f32
    %120 = vector.broadcast %cst_35 : f32 to vector<12x32xf32>
    %121 = arith.addf %120, %119 : vector<12x32xf32>
    %122 = arith.divf %120, %121 : vector<12x32xf32>
    %123 = vector.extract_strided_slice %111 {offsets = [0, 32], sizes = [12, 32], strides = [1, 1]} : vector<12x96xf32> to vector<12x32xf32>
    %124 = vector.extract_strided_slice %114 {offsets = [0, 32], sizes = [12, 32], strides = [1, 1]} : vector<12x96xf32> to vector<12x32xf32>
    %125 = arith.addf %123, %124 : vector<12x32xf32>
    %126 = arith.negf %125 : vector<12x32xf32>
    %127 = math.exp %126 : vector<12x32xf32>
    %cst_36 = arith.constant 1.000000e+00 : f32
    %128 = vector.broadcast %cst_36 : f32 to vector<12x32xf32>
    %129 = arith.addf %128, %127 : vector<12x32xf32>
    %130 = arith.divf %128, %129 : vector<12x32xf32>
    %131 = vector.extract_strided_slice %111 {offsets = [0, 64], sizes = [12, 32], strides = [1, 1]} : vector<12x96xf32> to vector<12x32xf32>
    %132 = vector.extract_strided_slice %114 {offsets = [0, 64], sizes = [12, 32], strides = [1, 1]} : vector<12x96xf32> to vector<12x32xf32>
    %133 = arith.mulf %122, %132 : vector<12x32xf32>
    %134 = arith.addf %131, %133 : vector<12x32xf32>
    %135 = math.tanh %134 : vector<12x32xf32>
    %cst_37 = arith.constant 1.000000e+00 : f32
    %136 = vector.broadcast %cst_37 : f32 to vector<12x32xf32>
    %137 = arith.subf %136, %130 : vector<12x32xf32>
    %138 = arith.mulf %137, %135 : vector<12x32xf32>
    %139 = arith.mulf %130, %107 : vector<12x32xf32>
    %140 = arith.addf %138, %139 : vector<12x32xf32>
    %cst_38 = arith.constant dense<0xFF800000> : vector<32xf32>
    %141 = vector.multi_reduction <maximumf>, %140, %cst_38 [0] : vector<12x32xf32> to vector<32xf32>
    %142 = vector.shape_cast %141 : vector<32xf32> to vector<1x32xf32>
    %143 = vector.extract_strided_slice %38 {offsets = [3, 0, 0], sizes = [1, 12, 96], strides = [1, 1, 1]} : vector<4x12x96xf32> to vector<1x12x96xf32>
    %144 = vector.shape_cast %143 : vector<1x12x96xf32> to vector<12x96xf32>
    %cst_39 = arith.constant dense<0.000000e+00> : vector<12x96xf32>
    %145 = tpu.matmul %140, %40, %cst_39 {dimension_numbers = #tpu.dot_dimension_numbers<[1], [1], [0], [0], [0, 0, 1, 0], [], []>} : vector<12x32xf32>, vector<96x32xf32>, vector<12x96xf32> -> vector<12x96xf32>
    %146 = vector.broadcast %42 : vector<1x96xf32> to vector<12x96xf32>
    %147 = arith.addf %145, %146 : vector<12x96xf32>
    %148 = vector.extract_strided_slice %144 {offsets = [0, 0], sizes = [12, 32], strides = [1, 1]} : vector<12x96xf32> to vector<12x32xf32>
    %149 = vector.extract_strided_slice %147 {offsets = [0, 0], sizes = [12, 32], strides = [1, 1]} : vector<12x96xf32> to vector<12x32xf32>
    %150 = arith.addf %148, %149 : vector<12x32xf32>
    %151 = arith.negf %150 : vector<12x32xf32>
    %152 = math.exp %151 : vector<12x32xf32>
    %cst_40 = arith.constant 1.000000e+00 : f32
    %153 = vector.broadcast %cst_40 : f32 to vector<12x32xf32>
    %154 = arith.addf %153, %152 : vector<12x32xf32>
    %155 = arith.divf %153, %154 : vector<12x32xf32>
    %156 = vector.extract_strided_slice %144 {offsets = [0, 32], sizes = [12, 32], strides = [1, 1]} : vector<12x96xf32> to vector<12x32xf32>
    %157 = vector.extract_strided_slice %147 {offsets = [0, 32], sizes = [12, 32], strides = [1, 1]} : vector<12x96xf32> to vector<12x32xf32>
    %158 = arith.addf %156, %157 : vector<12x32xf32>
    %159 = arith.negf %158 : vector<12x32xf32>
    %160 = math.exp %159 : vector<12x32xf32>
    %cst_41 = arith.constant 1.000000e+00 : f32
    %161 = vector.broadcast %cst_41 : f32 to vector<12x32xf32>
    %162 = arith.addf %161, %160 : vector<12x32xf32>
    %163 = arith.divf %161, %162 : vector<12x32xf32>
    %164 = vector.extract_strided_slice %144 {offsets = [0, 64], sizes = [12, 32], strides = [1, 1]} : vector<12x96xf32> to vector<12x32xf32>
    %165 = vector.extract_strided_slice %147 {offsets = [0, 64], sizes = [12, 32], strides = [1, 1]} : vector<12x96xf32> to vector<12x32xf32>
    %166 = arith.mulf %155, %165 : vector<12x32xf32>
    %167 = arith.addf %164, %166 : vector<12x32xf32>
    %168 = math.tanh %167 : vector<12x32xf32>
    %cst_42 = arith.constant 1.000000e+00 : f32
    %169 = vector.broadcast %cst_42 : f32 to vector<12x32xf32>
    %170 = arith.subf %169, %163 : vector<12x32xf32>
    %171 = arith.mulf %170, %168 : vector<12x32xf32>
    %172 = arith.mulf %163, %140 : vector<12x32xf32>
    %173 = arith.addf %171, %172 : vector<12x32xf32>
    %cst_43 = arith.constant dense<0xFF800000> : vector<32xf32>
    %174 = vector.multi_reduction <maximumf>, %173, %cst_43 [0] : vector<12x32xf32> to vector<32xf32>
    %175 = vector.shape_cast %174 : vector<32xf32> to vector<1x32xf32>
    %176 = tpu.concatenate %76, %109, %142, %175 in 0 : vector<1x32xf32>, vector<1x32xf32>, vector<1x32xf32>, vector<1x32xf32> -> vector<4x32xf32>
    %c1 = arith.constant 1 : index
    %c0_44 = arith.constant 0 : index
    %c0_45 = arith.constant 0 : index
    %177 = vector.load %arg5[%c1, %c0_44, %c0_45] : memref<2x96x32xf32, #tpu.memory_space<vmem>>, vector<1x96x32xf32>
    %178 = vector.shape_cast %177 : vector<1x96x32xf32> to vector<96x32xf32>
    %cst_46 = arith.constant dense<0.000000e+00> : vector<48x96xf32>
    %179 = tpu.matmul %30, %178, %cst_46 {dimension_numbers = #tpu.dot_dimension_numbers<[1], [1], [0], [0], [0, 0, 1, 0], [], []>} : vector<48x32xf32>, vector<96x32xf32>, vector<48x96xf32> -> vector<48x96xf32>
    %c1_47 = arith.constant 1 : index
    %c0_48 = arith.constant 0 : index
    %c0_49 = arith.constant 0 : index
    %180 = vector.load %arg7[%c1_47, %c0_48, %c0_49] : memref<2x1x96xf32, #tpu.memory_space<vmem>>, vector<1x1x96xf32>
    %181 = vector.shape_cast %180 : vector<1x1x96xf32> to vector<1x96xf32>
    %182 = vector.broadcast %181 : vector<1x96xf32> to vector<48x96xf32>
    %183 = arith.addf %179, %182 : vector<48x96xf32>
    %184 = vector.shape_cast %183 : vector<48x96xf32> to vector<4x12x96xf32>
    %c1_50 = arith.constant 1 : index
    %c0_51 = arith.constant 0 : index
    %c0_52 = arith.constant 0 : index
    %185 = vector.load %arg6[%c1_50, %c0_51, %c0_52] : memref<2x96x32xf32, #tpu.memory_space<vmem>>, vector<1x96x32xf32>
    %186 = vector.shape_cast %185 : vector<1x96x32xf32> to vector<96x32xf32>
    %c1_53 = arith.constant 1 : index
    %c0_54 = arith.constant 0 : index
    %c0_55 = arith.constant 0 : index
    %187 = vector.load %arg8[%c1_53, %c0_54, %c0_55] : memref<2x1x96xf32, #tpu.memory_space<vmem>>, vector<1x1x96xf32>
    %188 = vector.shape_cast %187 : vector<1x1x96xf32> to vector<1x96xf32>
    %cst_56 = arith.constant 0.000000e+00 : f32
    %189 = vector.broadcast %cst_56 : f32 to vector<12x32xf32>
    %190 = vector.extract_strided_slice %184 {offsets = [3, 0, 0], sizes = [1, 12, 96], strides = [1, 1, 1]} : vector<4x12x96xf32> to vector<1x12x96xf32>
    %191 = vector.shape_cast %190 : vector<1x12x96xf32> to vector<12x96xf32>
    %cst_57 = arith.constant dense<0.000000e+00> : vector<12x96xf32>
    %192 = tpu.matmul %189, %186, %cst_57 {dimension_numbers = #tpu.dot_dimension_numbers<[1], [1], [0], [0], [0, 0, 1, 0], [], []>} : vector<12x32xf32>, vector<96x32xf32>, vector<12x96xf32> -> vector<12x96xf32>
    %193 = vector.broadcast %188 : vector<1x96xf32> to vector<12x96xf32>
    %194 = arith.addf %192, %193 : vector<12x96xf32>
    %195 = vector.extract_strided_slice %191 {offsets = [0, 0], sizes = [12, 32], strides = [1, 1]} : vector<12x96xf32> to vector<12x32xf32>
    %196 = vector.extract_strided_slice %194 {offsets = [0, 0], sizes = [12, 32], strides = [1, 1]} : vector<12x96xf32> to vector<12x32xf32>
    %197 = arith.addf %195, %196 : vector<12x32xf32>
    %198 = arith.negf %197 : vector<12x32xf32>
    %199 = math.exp %198 : vector<12x32xf32>
    %cst_58 = arith.constant 1.000000e+00 : f32
    %200 = vector.broadcast %cst_58 : f32 to vector<12x32xf32>
    %201 = arith.addf %200, %199 : vector<12x32xf32>
    %202 = arith.divf %200, %201 : vector<12x32xf32>
    %203 = vector.extract_strided_slice %191 {offsets = [0, 32], sizes = [12, 32], strides = [1, 1]} : vector<12x96xf32> to vector<12x32xf32>
    %204 = vector.extract_strided_slice %194 {offsets = [0, 32], sizes = [12, 32], strides = [1, 1]} : vector<12x96xf32> to vector<12x32xf32>
    %205 = arith.addf %203, %204 : vector<12x32xf32>
    %206 = arith.negf %205 : vector<12x32xf32>
    %207 = math.exp %206 : vector<12x32xf32>
    %cst_59 = arith.constant 1.000000e+00 : f32
    %208 = vector.broadcast %cst_59 : f32 to vector<12x32xf32>
    %209 = arith.addf %208, %207 : vector<12x32xf32>
    %210 = arith.divf %208, %209 : vector<12x32xf32>
    %211 = vector.extract_strided_slice %191 {offsets = [0, 64], sizes = [12, 32], strides = [1, 1]} : vector<12x96xf32> to vector<12x32xf32>
    %212 = vector.extract_strided_slice %194 {offsets = [0, 64], sizes = [12, 32], strides = [1, 1]} : vector<12x96xf32> to vector<12x32xf32>
    %213 = arith.mulf %202, %212 : vector<12x32xf32>
    %214 = arith.addf %211, %213 : vector<12x32xf32>
    %215 = math.tanh %214 : vector<12x32xf32>
    %cst_60 = arith.constant 1.000000e+00 : f32
    %216 = vector.broadcast %cst_60 : f32 to vector<12x32xf32>
    %217 = arith.subf %216, %210 : vector<12x32xf32>
    %218 = arith.mulf %217, %215 : vector<12x32xf32>
    %219 = arith.mulf %210, %189 : vector<12x32xf32>
    %220 = arith.addf %218, %219 : vector<12x32xf32>
    %cst_61 = arith.constant dense<0xFF800000> : vector<32xf32>
    %221 = vector.multi_reduction <maximumf>, %220, %cst_61 [0] : vector<12x32xf32> to vector<32xf32>
    %222 = vector.shape_cast %221 : vector<32xf32> to vector<1x32xf32>
    %223 = vector.extract_strided_slice %184 {offsets = [2, 0, 0], sizes = [1, 12, 96], strides = [1, 1, 1]} : vector<4x12x96xf32> to vector<1x12x96xf32>
    %224 = vector.shape_cast %223 : vector<1x12x96xf32> to vector<12x96xf32>
    %cst_62 = arith.constant dense<0.000000e+00> : vector<12x96xf32>
    %225 = tpu.matmul %220, %186, %cst_62 {dimension_numbers = #tpu.dot_dimension_numbers<[1], [1], [0], [0], [0, 0, 1, 0], [], []>} : vector<12x32xf32>, vector<96x32xf32>, vector<12x96xf32> -> vector<12x96xf32>
    %226 = vector.broadcast %188 : vector<1x96xf32> to vector<12x96xf32>
    %227 = arith.addf %225, %226 : vector<12x96xf32>
    %228 = vector.extract_strided_slice %224 {offsets = [0, 0], sizes = [12, 32], strides = [1, 1]} : vector<12x96xf32> to vector<12x32xf32>
    %229 = vector.extract_strided_slice %227 {offsets = [0, 0], sizes = [12, 32], strides = [1, 1]} : vector<12x96xf32> to vector<12x32xf32>
    %230 = arith.addf %228, %229 : vector<12x32xf32>
    %231 = arith.negf %230 : vector<12x32xf32>
    %232 = math.exp %231 : vector<12x32xf32>
    %cst_63 = arith.constant 1.000000e+00 : f32
    %233 = vector.broadcast %cst_63 : f32 to vector<12x32xf32>
    %234 = arith.addf %233, %232 : vector<12x32xf32>
    %235 = arith.divf %233, %234 : vector<12x32xf32>
    %236 = vector.extract_strided_slice %224 {offsets = [0, 32], sizes = [12, 32], strides = [1, 1]} : vector<12x96xf32> to vector<12x32xf32>
    %237 = vector.extract_strided_slice %227 {offsets = [0, 32], sizes = [12, 32], strides = [1, 1]} : vector<12x96xf32> to vector<12x32xf32>
    %238 = arith.addf %236, %237 : vector<12x32xf32>
    %239 = arith.negf %238 : vector<12x32xf32>
    %240 = math.exp %239 : vector<12x32xf32>
    %cst_64 = arith.constant 1.000000e+00 : f32
    %241 = vector.broadcast %cst_64 : f32 to vector<12x32xf32>
    %242 = arith.addf %241, %240 : vector<12x32xf32>
    %243 = arith.divf %241, %242 : vector<12x32xf32>
    %244 = vector.extract_strided_slice %224 {offsets = [0, 64], sizes = [12, 32], strides = [1, 1]} : vector<12x96xf32> to vector<12x32xf32>
    %245 = vector.extract_strided_slice %227 {offsets = [0, 64], sizes = [12, 32], strides = [1, 1]} : vector<12x96xf32> to vector<12x32xf32>
    %246 = arith.mulf %235, %245 : vector<12x32xf32>
    %247 = arith.addf %244, %246 : vector<12x32xf32>
    %248 = math.tanh %247 : vector<12x32xf32>
    %cst_65 = arith.constant 1.000000e+00 : f32
    %249 = vector.broadcast %cst_65 : f32 to vector<12x32xf32>
    %250 = arith.subf %249, %243 : vector<12x32xf32>
    %251 = arith.mulf %250, %248 : vector<12x32xf32>
    %252 = arith.mulf %243, %220 : vector<12x32xf32>
    %253 = arith.addf %251, %252 : vector<12x32xf32>
    %cst_66 = arith.constant dense<0xFF800000> : vector<32xf32>
    %254 = vector.multi_reduction <maximumf>, %253, %cst_66 [0] : vector<12x32xf32> to vector<32xf32>
    %255 = vector.shape_cast %254 : vector<32xf32> to vector<1x32xf32>
    %256 = vector.extract_strided_slice %184 {offsets = [1, 0, 0], sizes = [1, 12, 96], strides = [1, 1, 1]} : vector<4x12x96xf32> to vector<1x12x96xf32>
    %257 = vector.shape_cast %256 : vector<1x12x96xf32> to vector<12x96xf32>
    %cst_67 = arith.constant dense<0.000000e+00> : vector<12x96xf32>
    %258 = tpu.matmul %253, %186, %cst_67 {dimension_numbers = #tpu.dot_dimension_numbers<[1], [1], [0], [0], [0, 0, 1, 0], [], []>} : vector<12x32xf32>, vector<96x32xf32>, vector<12x96xf32> -> vector<12x96xf32>
    %259 = vector.broadcast %188 : vector<1x96xf32> to vector<12x96xf32>
    %260 = arith.addf %258, %259 : vector<12x96xf32>
    %261 = vector.extract_strided_slice %257 {offsets = [0, 0], sizes = [12, 32], strides = [1, 1]} : vector<12x96xf32> to vector<12x32xf32>
    %262 = vector.extract_strided_slice %260 {offsets = [0, 0], sizes = [12, 32], strides = [1, 1]} : vector<12x96xf32> to vector<12x32xf32>
    %263 = arith.addf %261, %262 : vector<12x32xf32>
    %264 = arith.negf %263 : vector<12x32xf32>
    %265 = math.exp %264 : vector<12x32xf32>
    %cst_68 = arith.constant 1.000000e+00 : f32
    %266 = vector.broadcast %cst_68 : f32 to vector<12x32xf32>
    %267 = arith.addf %266, %265 : vector<12x32xf32>
    %268 = arith.divf %266, %267 : vector<12x32xf32>
    %269 = vector.extract_strided_slice %257 {offsets = [0, 32], sizes = [12, 32], strides = [1, 1]} : vector<12x96xf32> to vector<12x32xf32>
    %270 = vector.extract_strided_slice %260 {offsets = [0, 32], sizes = [12, 32], strides = [1, 1]} : vector<12x96xf32> to vector<12x32xf32>
    %271 = arith.addf %269, %270 : vector<12x32xf32>
    %272 = arith.negf %271 : vector<12x32xf32>
    %273 = math.exp %272 : vector<12x32xf32>
    %cst_69 = arith.constant 1.000000e+00 : f32
    %274 = vector.broadcast %cst_69 : f32 to vector<12x32xf32>
    %275 = arith.addf %274, %273 : vector<12x32xf32>
    %276 = arith.divf %274, %275 : vector<12x32xf32>
    %277 = vector.extract_strided_slice %257 {offsets = [0, 64], sizes = [12, 32], strides = [1, 1]} : vector<12x96xf32> to vector<12x32xf32>
    %278 = vector.extract_strided_slice %260 {offsets = [0, 64], sizes = [12, 32], strides = [1, 1]} : vector<12x96xf32> to vector<12x32xf32>
    %279 = arith.mulf %268, %278 : vector<12x32xf32>
    %280 = arith.addf %277, %279 : vector<12x32xf32>
    %281 = math.tanh %280 : vector<12x32xf32>
    %cst_70 = arith.constant 1.000000e+00 : f32
    %282 = vector.broadcast %cst_70 : f32 to vector<12x32xf32>
    %283 = arith.subf %282, %276 : vector<12x32xf32>
    %284 = arith.mulf %283, %281 : vector<12x32xf32>
    %285 = arith.mulf %276, %253 : vector<12x32xf32>
    %286 = arith.addf %284, %285 : vector<12x32xf32>
    %cst_71 = arith.constant dense<0xFF800000> : vector<32xf32>
    %287 = vector.multi_reduction <maximumf>, %286, %cst_71 [0] : vector<12x32xf32> to vector<32xf32>
    %288 = vector.shape_cast %287 : vector<32xf32> to vector<1x32xf32>
    %289 = vector.extract_strided_slice %184 {offsets = [0, 0, 0], sizes = [1, 12, 96], strides = [1, 1, 1]} : vector<4x12x96xf32> to vector<1x12x96xf32>
    %290 = vector.shape_cast %289 : vector<1x12x96xf32> to vector<12x96xf32>
    %cst_72 = arith.constant dense<0.000000e+00> : vector<12x96xf32>
    %291 = tpu.matmul %286, %186, %cst_72 {dimension_numbers = #tpu.dot_dimension_numbers<[1], [1], [0], [0], [0, 0, 1, 0], [], []>} : vector<12x32xf32>, vector<96x32xf32>, vector<12x96xf32> -> vector<12x96xf32>
    %292 = vector.broadcast %188 : vector<1x96xf32> to vector<12x96xf32>
    %293 = arith.addf %291, %292 : vector<12x96xf32>
    %294 = vector.extract_strided_slice %290 {offsets = [0, 0], sizes = [12, 32], strides = [1, 1]} : vector<12x96xf32> to vector<12x32xf32>
    %295 = vector.extract_strided_slice %293 {offsets = [0, 0], sizes = [12, 32], strides = [1, 1]} : vector<12x96xf32> to vector<12x32xf32>
    %296 = arith.addf %294, %295 : vector<12x32xf32>
    %297 = arith.negf %296 : vector<12x32xf32>
    %298 = math.exp %297 : vector<12x32xf32>
    %cst_73 = arith.constant 1.000000e+00 : f32
    %299 = vector.broadcast %cst_73 : f32 to vector<12x32xf32>
    %300 = arith.addf %299, %298 : vector<12x32xf32>
    %301 = arith.divf %299, %300 : vector<12x32xf32>
    %302 = vector.extract_strided_slice %290 {offsets = [0, 32], sizes = [12, 32], strides = [1, 1]} : vector<12x96xf32> to vector<12x32xf32>
    %303 = vector.extract_strided_slice %293 {offsets = [0, 32], sizes = [12, 32], strides = [1, 1]} : vector<12x96xf32> to vector<12x32xf32>
    %304 = arith.addf %302, %303 : vector<12x32xf32>
    %305 = arith.negf %304 : vector<12x32xf32>
    %306 = math.exp %305 : vector<12x32xf32>
    %cst_74 = arith.constant 1.000000e+00 : f32
    %307 = vector.broadcast %cst_74 : f32 to vector<12x32xf32>
    %308 = arith.addf %307, %306 : vector<12x32xf32>
    %309 = arith.divf %307, %308 : vector<12x32xf32>
    %310 = vector.extract_strided_slice %290 {offsets = [0, 64], sizes = [12, 32], strides = [1, 1]} : vector<12x96xf32> to vector<12x32xf32>
    %311 = vector.extract_strided_slice %293 {offsets = [0, 64], sizes = [12, 32], strides = [1, 1]} : vector<12x96xf32> to vector<12x32xf32>
    %312 = arith.mulf %301, %311 : vector<12x32xf32>
    %313 = arith.addf %310, %312 : vector<12x32xf32>
    %314 = math.tanh %313 : vector<12x32xf32>
    %cst_75 = arith.constant 1.000000e+00 : f32
    %315 = vector.broadcast %cst_75 : f32 to vector<12x32xf32>
    %316 = arith.subf %315, %309 : vector<12x32xf32>
    %317 = arith.mulf %316, %314 : vector<12x32xf32>
    %318 = arith.mulf %309, %286 : vector<12x32xf32>
    %319 = arith.addf %317, %318 : vector<12x32xf32>
    %cst_76 = arith.constant dense<0xFF800000> : vector<32xf32>
    %320 = vector.multi_reduction <maximumf>, %319, %cst_76 [0] : vector<12x32xf32> to vector<32xf32>
    %321 = vector.shape_cast %320 : vector<32xf32> to vector<1x32xf32>
    %322 = tpu.concatenate %321, %288, %255, %222 in 0 : vector<1x32xf32>, vector<1x32xf32>, vector<1x32xf32>, vector<1x32xf32> -> vector<4x32xf32>
    %323 = tpu.concatenate %176, %322 in 1 : vector<4x32xf32>, vector<4x32xf32> -> vector<4x64xf32>
    %324 = math.tanh %323 : vector<4x64xf32>
    %c0_77 = arith.constant 0 : index
    %c0_78 = arith.constant 0 : index
    %325 = vector.load %arg13[%c0_77, %c0_78] : memref<1x64xf32, #tpu.memory_space<vmem>>, vector<1x64xf32>
    %326 = vector.broadcast %325 : vector<1x64xf32> to vector<4x64xf32>
    %327 = arith.mulf %324, %326 : vector<4x64xf32>
    %cst_79 = arith.constant dense<0.000000e+00> : vector<4xf32>
    %328 = vector.multi_reduction <add>, %327, %cst_79 [1] : vector<4x64xf32> to vector<4xf32>
    %329 = vector.shape_cast %328 : vector<4xf32> to vector<4x1xf32>
    %c0_80 = arith.constant 0 : index
    %c0_81 = arith.constant 0 : index
    %330 = vector.load %arg14[%c0_80, %c0_81] : memref<1x1xf32, #tpu.memory_space<vmem>>, vector<1x1xf32>
    %331 = vector.broadcast %330 : vector<1x1xf32> to vector<4x1xf32>
    %332 = arith.addf %329, %331 : vector<4x1xf32>
    %333 = tpu.iota {dimensions = array<i32: 0>} : vector<4x1xi32>
    %334 = vector.shape_cast %332 : vector<4x1xf32> to vector<1x4x1xf32>
    %cst_82 = arith.constant dense<0xFF800000> : vector<1xf32>
    %335 = vector.multi_reduction <maximumf>, %334, %cst_82 [1, 2] : vector<1x4x1xf32> to vector<1xf32>
    %336 = vector.shape_cast %335 : vector<1xf32> to vector<1x1x1xf32>
    %337 = vector.extract %336[0, 0, 0] : f32 from vector<1x1x1xf32>
    %338 = vector.broadcast %337 : f32 to vector<4x1xf32>
    %339 = arith.cmpf oge, %332, %338 : vector<4x1xf32>
    %c4_i32 = arith.constant 4 : i32
    %340 = vector.broadcast %c4_i32 : i32 to vector<4x1xi32>
    %341 = arith.select %339, %333, %340 : vector<4x1xi1>, vector<4x1xi32>
    %342 = vector.shape_cast %341 : vector<4x1xi32> to vector<1x4x1xi32>
    %cst_83 = arith.constant dense<2147483647> : vector<1xi32>
    %343 = vector.multi_reduction <minsi>, %342, %cst_83 [1, 2] : vector<1x4x1xi32> to vector<1xi32>
    %344 = vector.shape_cast %343 : vector<1xi32> to vector<1x1x1xi32>
    %345 = vector.extract %344[0, 0, 0] : i32 from vector<1x1x1xi32>
    %c0_84 = arith.constant 0 : index
    %c0_85 = arith.constant 0 : index
    %346 = vector.load %arg3[%c0_84, %c0_85] : memref<64x32xf32, #tpu.memory_space<vmem>>, vector<64x32xf32>
    %cst_86 = arith.constant dense<0.000000e+00> : vector<48x64xf32>
    %347 = tpu.matmul %1, %346, %cst_86 {dimension_numbers = #tpu.dot_dimension_numbers<[1], [1], [0], [0], [0, 0, 1, 0], [], []>} : vector<48x32xf32>, vector<64x32xf32>, vector<48x64xf32> -> vector<48x64xf32>
    %c0_87 = arith.constant 0 : index
    %c0_88 = arith.constant 0 : index
    %348 = vector.load %arg4[%c0_87, %c0_88] : memref<1x64xf32, #tpu.memory_space<vmem>>, vector<1x64xf32>
    %349 = vector.broadcast %348 : vector<1x64xf32> to vector<48x64xf32>
    %350 = arith.addf %347, %349 : vector<48x64xf32>
    %351 = vector.extract_strided_slice %350 {offsets = [0, 0], sizes = [48, 32], strides = [1, 1]} : vector<48x64xf32> to vector<48x32xf32>
    %352 = arith.negf %351 : vector<48x32xf32>
    %353 = math.exp %352 : vector<48x32xf32>
    %cst_89 = arith.constant 1.000000e+00 : f32
    %354 = vector.broadcast %cst_89 : f32 to vector<48x32xf32>
    %355 = arith.addf %354, %353 : vector<48x32xf32>
    %356 = arith.divf %354, %355 : vector<48x32xf32>
    %357 = vector.extract_strided_slice %350 {offsets = [0, 32], sizes = [48, 32], strides = [1, 1]} : vector<48x64xf32> to vector<48x32xf32>
    %358 = math.tanh %357 : vector<48x32xf32>
    %359 = arith.mulf %356, %358 : vector<48x32xf32>
    %360 = vector.shape_cast %359 : vector<48x32xf32> to vector<4x12x32xf32>
    %361 = tpu.iota {dimensions = array<i32: 0>} : vector<4x1xi32>
    %362 = vector.broadcast %345 : i32 to vector<4x1xi32>
    %363 = arith.cmpi eq, %361, %362 : vector<4x1xi32>
    %364 = arith.extui %363 : vector<4x1xi1> to vector<4x1xi32>
    %365 = arith.sitofp %364 : vector<4x1xi32> to vector<4x1xf32>
    %366 = vector.shape_cast %365 : vector<4x1xf32> to vector<4x1x1xf32>
    %367 = vector.broadcast %366 : vector<4x1x1xf32> to vector<4x12x32xf32>
    %368 = arith.mulf %360, %367 : vector<4x12x32xf32>
    %cst_90 = arith.constant dense<0.000000e+00> : vector<12x32xf32>
    %369 = vector.multi_reduction <add>, %368, %cst_90 [0] : vector<4x12x32xf32> to vector<12x32xf32>
    %cst_91 = arith.constant dense<0.000000e+00> : vector<48x12xf32>
    %370 = tpu.matmul %359, %369, %cst_91 {dimension_numbers = #tpu.dot_dimension_numbers<[1], [1], [0], [0], [0, 0, 1, 0], [], []>} : vector<48x32xf32>, vector<12x32xf32>, vector<48x12xf32> -> vector<48x12xf32>
    %371 = vector.shape_cast %370 : vector<48x12xf32> to vector<4x12x12xf32>
    %cst_92 = arith.constant dense<0xFF800000> : vector<12x12xf32>
    %372 = vector.multi_reduction <maximumf>, %371, %cst_92 [0] : vector<4x12x12xf32> to vector<12x12xf32>
    %373 = vector.shape_cast %372 : vector<12x12xf32> to vector<1x12x12xf32>
    %374 = vector.broadcast %373 : vector<1x12x12xf32> to vector<4x12x12xf32>
    %375 = arith.subf %371, %374 : vector<4x12x12xf32>
    %376 = math.exp %375 : vector<4x12x12xf32>
    %cst_93 = arith.constant dense<0.000000e+00> : vector<12x12xf32>
    %377 = vector.multi_reduction <add>, %376, %cst_93 [0] : vector<4x12x12xf32> to vector<12x12xf32>
    %378 = vector.shape_cast %377 : vector<12x12xf32> to vector<1x12x12xf32>
    %379 = tpu.reciprocal %378 {approx = true} : vector<1x12x12xf32> -> vector<1x12x12xf32>
    %380 = vector.broadcast %379 : vector<1x12x12xf32> to vector<4x12x12xf32>
    %381 = arith.mulf %376, %380 : vector<4x12x12xf32>
    %382 = vector.shape_cast %381 : vector<4x12x12xf32> to vector<48x12xf32>
    %cst_94 = arith.constant dense<0.000000e+00> : vector<48x32xf32>
    %383 = tpu.matmul %382, %369, %cst_94 {dimension_numbers = #tpu.dot_dimension_numbers<[1], [0], [0], [1], [0, 0, 1, 1], [], []>} : vector<48x12xf32>, vector<12x32xf32>, vector<48x32xf32> -> vector<48x32xf32>
    %384 = arith.mulf %359, %383 : vector<48x32xf32>
    %c0_95 = arith.constant 0 : index
    %c0_96 = arith.constant 0 : index
    %c0_97 = arith.constant 0 : index
    %385 = vector.load %arg9[%c0_95, %c0_96, %c0_97] : memref<2x96x32xf32, #tpu.memory_space<vmem>>, vector<1x96x32xf32>
    %386 = vector.shape_cast %385 : vector<1x96x32xf32> to vector<96x32xf32>
    %cst_98 = arith.constant dense<0.000000e+00> : vector<48x96xf32>
    %387 = tpu.matmul %384, %386, %cst_98 {dimension_numbers = #tpu.dot_dimension_numbers<[1], [1], [0], [0], [0, 0, 1, 0], [], []>} : vector<48x32xf32>, vector<96x32xf32>, vector<48x96xf32> -> vector<48x96xf32>
    %c0_99 = arith.constant 0 : index
    %c0_100 = arith.constant 0 : index
    %c0_101 = arith.constant 0 : index
    %388 = vector.load %arg11[%c0_99, %c0_100, %c0_101] : memref<2x1x96xf32, #tpu.memory_space<vmem>>, vector<1x1x96xf32>
    %389 = vector.shape_cast %388 : vector<1x1x96xf32> to vector<1x96xf32>
    %390 = vector.broadcast %389 : vector<1x96xf32> to vector<48x96xf32>
    %391 = arith.addf %387, %390 : vector<48x96xf32>
    %392 = vector.shape_cast %391 : vector<48x96xf32> to vector<4x12x96xf32>
    %c0_102 = arith.constant 0 : index
    %c0_103 = arith.constant 0 : index
    %c0_104 = arith.constant 0 : index
    %393 = vector.load %arg10[%c0_102, %c0_103, %c0_104] : memref<2x96x32xf32, #tpu.memory_space<vmem>>, vector<1x96x32xf32>
    %394 = vector.shape_cast %393 : vector<1x96x32xf32> to vector<96x32xf32>
    %c0_105 = arith.constant 0 : index
    %c0_106 = arith.constant 0 : index
    %c0_107 = arith.constant 0 : index
    %395 = vector.load %arg12[%c0_105, %c0_106, %c0_107] : memref<2x1x96xf32, #tpu.memory_space<vmem>>, vector<1x1x96xf32>
    %396 = vector.shape_cast %395 : vector<1x1x96xf32> to vector<1x96xf32>
    %cst_108 = arith.constant 0.000000e+00 : f32
    %397 = vector.broadcast %cst_108 : f32 to vector<12x32xf32>
    %398 = vector.extract_strided_slice %392 {offsets = [0, 0, 0], sizes = [1, 12, 96], strides = [1, 1, 1]} : vector<4x12x96xf32> to vector<1x12x96xf32>
    %399 = vector.shape_cast %398 : vector<1x12x96xf32> to vector<12x96xf32>
    %cst_109 = arith.constant dense<0.000000e+00> : vector<12x96xf32>
    %400 = tpu.matmul %397, %394, %cst_109 {dimension_numbers = #tpu.dot_dimension_numbers<[1], [1], [0], [0], [0, 0, 1, 0], [], []>} : vector<12x32xf32>, vector<96x32xf32>, vector<12x96xf32> -> vector<12x96xf32>
    %401 = vector.broadcast %396 : vector<1x96xf32> to vector<12x96xf32>
    %402 = arith.addf %400, %401 : vector<12x96xf32>
    %403 = vector.extract_strided_slice %399 {offsets = [0, 0], sizes = [12, 32], strides = [1, 1]} : vector<12x96xf32> to vector<12x32xf32>
    %404 = vector.extract_strided_slice %402 {offsets = [0, 0], sizes = [12, 32], strides = [1, 1]} : vector<12x96xf32> to vector<12x32xf32>
    %405 = arith.addf %403, %404 : vector<12x32xf32>
    %406 = arith.negf %405 : vector<12x32xf32>
    %407 = math.exp %406 : vector<12x32xf32>
    %cst_110 = arith.constant 1.000000e+00 : f32
    %408 = vector.broadcast %cst_110 : f32 to vector<12x32xf32>
    %409 = arith.addf %408, %407 : vector<12x32xf32>
    %410 = arith.divf %408, %409 : vector<12x32xf32>
    %411 = vector.extract_strided_slice %399 {offsets = [0, 32], sizes = [12, 32], strides = [1, 1]} : vector<12x96xf32> to vector<12x32xf32>
    %412 = vector.extract_strided_slice %402 {offsets = [0, 32], sizes = [12, 32], strides = [1, 1]} : vector<12x96xf32> to vector<12x32xf32>
    %413 = arith.addf %411, %412 : vector<12x32xf32>
    %414 = arith.negf %413 : vector<12x32xf32>
    %415 = math.exp %414 : vector<12x32xf32>
    %cst_111 = arith.constant 1.000000e+00 : f32
    %416 = vector.broadcast %cst_111 : f32 to vector<12x32xf32>
    %417 = arith.addf %416, %415 : vector<12x32xf32>
    %418 = arith.divf %416, %417 : vector<12x32xf32>
    %419 = vector.extract_strided_slice %399 {offsets = [0, 64], sizes = [12, 32], strides = [1, 1]} : vector<12x96xf32> to vector<12x32xf32>
    %420 = vector.extract_strided_slice %402 {offsets = [0, 64], sizes = [12, 32], strides = [1, 1]} : vector<12x96xf32> to vector<12x32xf32>
    %421 = arith.mulf %410, %420 : vector<12x32xf32>
    %422 = arith.addf %419, %421 : vector<12x32xf32>
    %423 = math.tanh %422 : vector<12x32xf32>
    %cst_112 = arith.constant 1.000000e+00 : f32
    %424 = vector.broadcast %cst_112 : f32 to vector<12x32xf32>
    %425 = arith.subf %424, %418 : vector<12x32xf32>
    %426 = arith.mulf %425, %423 : vector<12x32xf32>
    %427 = arith.mulf %418, %397 : vector<12x32xf32>
    %428 = arith.addf %426, %427 : vector<12x32xf32>
    %cst_113 = arith.constant dense<0xFF800000> : vector<32xf32>
    %429 = vector.multi_reduction <maximumf>, %428, %cst_113 [0] : vector<12x32xf32> to vector<32xf32>
    %430 = vector.shape_cast %429 : vector<32xf32> to vector<1x32xf32>
    %431 = vector.extract_strided_slice %392 {offsets = [1, 0, 0], sizes = [1, 12, 96], strides = [1, 1, 1]} : vector<4x12x96xf32> to vector<1x12x96xf32>
    %432 = vector.shape_cast %431 : vector<1x12x96xf32> to vector<12x96xf32>
    %cst_114 = arith.constant dense<0.000000e+00> : vector<12x96xf32>
    %433 = tpu.matmul %428, %394, %cst_114 {dimension_numbers = #tpu.dot_dimension_numbers<[1], [1], [0], [0], [0, 0, 1, 0], [], []>} : vector<12x32xf32>, vector<96x32xf32>, vector<12x96xf32> -> vector<12x96xf32>
    %434 = vector.broadcast %396 : vector<1x96xf32> to vector<12x96xf32>
    %435 = arith.addf %433, %434 : vector<12x96xf32>
    %436 = vector.extract_strided_slice %432 {offsets = [0, 0], sizes = [12, 32], strides = [1, 1]} : vector<12x96xf32> to vector<12x32xf32>
    %437 = vector.extract_strided_slice %435 {offsets = [0, 0], sizes = [12, 32], strides = [1, 1]} : vector<12x96xf32> to vector<12x32xf32>
    %438 = arith.addf %436, %437 : vector<12x32xf32>
    %439 = arith.negf %438 : vector<12x32xf32>
    %440 = math.exp %439 : vector<12x32xf32>
    %cst_115 = arith.constant 1.000000e+00 : f32
    %441 = vector.broadcast %cst_115 : f32 to vector<12x32xf32>
    %442 = arith.addf %441, %440 : vector<12x32xf32>
    %443 = arith.divf %441, %442 : vector<12x32xf32>
    %444 = vector.extract_strided_slice %432 {offsets = [0, 32], sizes = [12, 32], strides = [1, 1]} : vector<12x96xf32> to vector<12x32xf32>
    %445 = vector.extract_strided_slice %435 {offsets = [0, 32], sizes = [12, 32], strides = [1, 1]} : vector<12x96xf32> to vector<12x32xf32>
    %446 = arith.addf %444, %445 : vector<12x32xf32>
    %447 = arith.negf %446 : vector<12x32xf32>
    %448 = math.exp %447 : vector<12x32xf32>
    %cst_116 = arith.constant 1.000000e+00 : f32
    %449 = vector.broadcast %cst_116 : f32 to vector<12x32xf32>
    %450 = arith.addf %449, %448 : vector<12x32xf32>
    %451 = arith.divf %449, %450 : vector<12x32xf32>
    %452 = vector.extract_strided_slice %432 {offsets = [0, 64], sizes = [12, 32], strides = [1, 1]} : vector<12x96xf32> to vector<12x32xf32>
    %453 = vector.extract_strided_slice %435 {offsets = [0, 64], sizes = [12, 32], strides = [1, 1]} : vector<12x96xf32> to vector<12x32xf32>
    %454 = arith.mulf %443, %453 : vector<12x32xf32>
    %455 = arith.addf %452, %454 : vector<12x32xf32>
    %456 = math.tanh %455 : vector<12x32xf32>
    %cst_117 = arith.constant 1.000000e+00 : f32
    %457 = vector.broadcast %cst_117 : f32 to vector<12x32xf32>
    %458 = arith.subf %457, %451 : vector<12x32xf32>
    %459 = arith.mulf %458, %456 : vector<12x32xf32>
    %460 = arith.mulf %451, %428 : vector<12x32xf32>
    %461 = arith.addf %459, %460 : vector<12x32xf32>
    %cst_118 = arith.constant dense<0xFF800000> : vector<32xf32>
    %462 = vector.multi_reduction <maximumf>, %461, %cst_118 [0] : vector<12x32xf32> to vector<32xf32>
    %463 = vector.shape_cast %462 : vector<32xf32> to vector<1x32xf32>
    %464 = vector.extract_strided_slice %392 {offsets = [2, 0, 0], sizes = [1, 12, 96], strides = [1, 1, 1]} : vector<4x12x96xf32> to vector<1x12x96xf32>
    %465 = vector.shape_cast %464 : vector<1x12x96xf32> to vector<12x96xf32>
    %cst_119 = arith.constant dense<0.000000e+00> : vector<12x96xf32>
    %466 = tpu.matmul %461, %394, %cst_119 {dimension_numbers = #tpu.dot_dimension_numbers<[1], [1], [0], [0], [0, 0, 1, 0], [], []>} : vector<12x32xf32>, vector<96x32xf32>, vector<12x96xf32> -> vector<12x96xf32>
    %467 = vector.broadcast %396 : vector<1x96xf32> to vector<12x96xf32>
    %468 = arith.addf %466, %467 : vector<12x96xf32>
    %469 = vector.extract_strided_slice %465 {offsets = [0, 0], sizes = [12, 32], strides = [1, 1]} : vector<12x96xf32> to vector<12x32xf32>
    %470 = vector.extract_strided_slice %468 {offsets = [0, 0], sizes = [12, 32], strides = [1, 1]} : vector<12x96xf32> to vector<12x32xf32>
    %471 = arith.addf %469, %470 : vector<12x32xf32>
    %472 = arith.negf %471 : vector<12x32xf32>
    %473 = math.exp %472 : vector<12x32xf32>
    %cst_120 = arith.constant 1.000000e+00 : f32
    %474 = vector.broadcast %cst_120 : f32 to vector<12x32xf32>
    %475 = arith.addf %474, %473 : vector<12x32xf32>
    %476 = arith.divf %474, %475 : vector<12x32xf32>
    %477 = vector.extract_strided_slice %465 {offsets = [0, 32], sizes = [12, 32], strides = [1, 1]} : vector<12x96xf32> to vector<12x32xf32>
    %478 = vector.extract_strided_slice %468 {offsets = [0, 32], sizes = [12, 32], strides = [1, 1]} : vector<12x96xf32> to vector<12x32xf32>
    %479 = arith.addf %477, %478 : vector<12x32xf32>
    %480 = arith.negf %479 : vector<12x32xf32>
    %481 = math.exp %480 : vector<12x32xf32>
    %cst_121 = arith.constant 1.000000e+00 : f32
    %482 = vector.broadcast %cst_121 : f32 to vector<12x32xf32>
    %483 = arith.addf %482, %481 : vector<12x32xf32>
    %484 = arith.divf %482, %483 : vector<12x32xf32>
    %485 = vector.extract_strided_slice %465 {offsets = [0, 64], sizes = [12, 32], strides = [1, 1]} : vector<12x96xf32> to vector<12x32xf32>
    %486 = vector.extract_strided_slice %468 {offsets = [0, 64], sizes = [12, 32], strides = [1, 1]} : vector<12x96xf32> to vector<12x32xf32>
    %487 = arith.mulf %476, %486 : vector<12x32xf32>
    %488 = arith.addf %485, %487 : vector<12x32xf32>
    %489 = math.tanh %488 : vector<12x32xf32>
    %cst_122 = arith.constant 1.000000e+00 : f32
    %490 = vector.broadcast %cst_122 : f32 to vector<12x32xf32>
    %491 = arith.subf %490, %484 : vector<12x32xf32>
    %492 = arith.mulf %491, %489 : vector<12x32xf32>
    %493 = arith.mulf %484, %461 : vector<12x32xf32>
    %494 = arith.addf %492, %493 : vector<12x32xf32>
    %cst_123 = arith.constant dense<0xFF800000> : vector<32xf32>
    %495 = vector.multi_reduction <maximumf>, %494, %cst_123 [0] : vector<12x32xf32> to vector<32xf32>
    %496 = vector.shape_cast %495 : vector<32xf32> to vector<1x32xf32>
    %497 = vector.extract_strided_slice %392 {offsets = [3, 0, 0], sizes = [1, 12, 96], strides = [1, 1, 1]} : vector<4x12x96xf32> to vector<1x12x96xf32>
    %498 = vector.shape_cast %497 : vector<1x12x96xf32> to vector<12x96xf32>
    %cst_124 = arith.constant dense<0.000000e+00> : vector<12x96xf32>
    %499 = tpu.matmul %494, %394, %cst_124 {dimension_numbers = #tpu.dot_dimension_numbers<[1], [1], [0], [0], [0, 0, 1, 0], [], []>} : vector<12x32xf32>, vector<96x32xf32>, vector<12x96xf32> -> vector<12x96xf32>
    %500 = vector.broadcast %396 : vector<1x96xf32> to vector<12x96xf32>
    %501 = arith.addf %499, %500 : vector<12x96xf32>
    %502 = vector.extract_strided_slice %498 {offsets = [0, 0], sizes = [12, 32], strides = [1, 1]} : vector<12x96xf32> to vector<12x32xf32>
    %503 = vector.extract_strided_slice %501 {offsets = [0, 0], sizes = [12, 32], strides = [1, 1]} : vector<12x96xf32> to vector<12x32xf32>
    %504 = arith.addf %502, %503 : vector<12x32xf32>
    %505 = arith.negf %504 : vector<12x32xf32>
    %506 = math.exp %505 : vector<12x32xf32>
    %cst_125 = arith.constant 1.000000e+00 : f32
    %507 = vector.broadcast %cst_125 : f32 to vector<12x32xf32>
    %508 = arith.addf %507, %506 : vector<12x32xf32>
    %509 = arith.divf %507, %508 : vector<12x32xf32>
    %510 = vector.extract_strided_slice %498 {offsets = [0, 32], sizes = [12, 32], strides = [1, 1]} : vector<12x96xf32> to vector<12x32xf32>
    %511 = vector.extract_strided_slice %501 {offsets = [0, 32], sizes = [12, 32], strides = [1, 1]} : vector<12x96xf32> to vector<12x32xf32>
    %512 = arith.addf %510, %511 : vector<12x32xf32>
    %513 = arith.negf %512 : vector<12x32xf32>
    %514 = math.exp %513 : vector<12x32xf32>
    %cst_126 = arith.constant 1.000000e+00 : f32
    %515 = vector.broadcast %cst_126 : f32 to vector<12x32xf32>
    %516 = arith.addf %515, %514 : vector<12x32xf32>
    %517 = arith.divf %515, %516 : vector<12x32xf32>
    %518 = vector.extract_strided_slice %498 {offsets = [0, 64], sizes = [12, 32], strides = [1, 1]} : vector<12x96xf32> to vector<12x32xf32>
    %519 = vector.extract_strided_slice %501 {offsets = [0, 64], sizes = [12, 32], strides = [1, 1]} : vector<12x96xf32> to vector<12x32xf32>
    %520 = arith.mulf %509, %519 : vector<12x32xf32>
    %521 = arith.addf %518, %520 : vector<12x32xf32>
    %522 = math.tanh %521 : vector<12x32xf32>
    %cst_127 = arith.constant 1.000000e+00 : f32
    %523 = vector.broadcast %cst_127 : f32 to vector<12x32xf32>
    %524 = arith.subf %523, %517 : vector<12x32xf32>
    %525 = arith.mulf %524, %522 : vector<12x32xf32>
    %526 = arith.mulf %517, %494 : vector<12x32xf32>
    %527 = arith.addf %525, %526 : vector<12x32xf32>
    %cst_128 = arith.constant dense<0xFF800000> : vector<32xf32>
    %528 = vector.multi_reduction <maximumf>, %527, %cst_128 [0] : vector<12x32xf32> to vector<32xf32>
    %529 = vector.shape_cast %528 : vector<32xf32> to vector<1x32xf32>
    %530 = tpu.concatenate %430, %463, %496, %529 in 0 : vector<1x32xf32>, vector<1x32xf32>, vector<1x32xf32>, vector<1x32xf32> -> vector<4x32xf32>
    %c1_129 = arith.constant 1 : index
    %c0_130 = arith.constant 0 : index
    %c0_131 = arith.constant 0 : index
    %531 = vector.load %arg9[%c1_129, %c0_130, %c0_131] : memref<2x96x32xf32, #tpu.memory_space<vmem>>, vector<1x96x32xf32>
    %532 = vector.shape_cast %531 : vector<1x96x32xf32> to vector<96x32xf32>
    %cst_132 = arith.constant dense<0.000000e+00> : vector<48x96xf32>
    %533 = tpu.matmul %384, %532, %cst_132 {dimension_numbers = #tpu.dot_dimension_numbers<[1], [1], [0], [0], [0, 0, 1, 0], [], []>} : vector<48x32xf32>, vector<96x32xf32>, vector<48x96xf32> -> vector<48x96xf32>
    %c1_133 = arith.constant 1 : index
    %c0_134 = arith.constant 0 : index
    %c0_135 = arith.constant 0 : index
    %534 = vector.load %arg11[%c1_133, %c0_134, %c0_135] : memref<2x1x96xf32, #tpu.memory_space<vmem>>, vector<1x1x96xf32>
    %535 = vector.shape_cast %534 : vector<1x1x96xf32> to vector<1x96xf32>
    %536 = vector.broadcast %535 : vector<1x96xf32> to vector<48x96xf32>
    %537 = arith.addf %533, %536 : vector<48x96xf32>
    %538 = vector.shape_cast %537 : vector<48x96xf32> to vector<4x12x96xf32>
    %c1_136 = arith.constant 1 : index
    %c0_137 = arith.constant 0 : index
    %c0_138 = arith.constant 0 : index
    %539 = vector.load %arg10[%c1_136, %c0_137, %c0_138] : memref<2x96x32xf32, #tpu.memory_space<vmem>>, vector<1x96x32xf32>
    %540 = vector.shape_cast %539 : vector<1x96x32xf32> to vector<96x32xf32>
    %c1_139 = arith.constant 1 : index
    %c0_140 = arith.constant 0 : index
    %c0_141 = arith.constant 0 : index
    %541 = vector.load %arg12[%c1_139, %c0_140, %c0_141] : memref<2x1x96xf32, #tpu.memory_space<vmem>>, vector<1x1x96xf32>
    %542 = vector.shape_cast %541 : vector<1x1x96xf32> to vector<1x96xf32>
    %cst_142 = arith.constant 0.000000e+00 : f32
    %543 = vector.broadcast %cst_142 : f32 to vector<12x32xf32>
    %544 = vector.extract_strided_slice %538 {offsets = [3, 0, 0], sizes = [1, 12, 96], strides = [1, 1, 1]} : vector<4x12x96xf32> to vector<1x12x96xf32>
    %545 = vector.shape_cast %544 : vector<1x12x96xf32> to vector<12x96xf32>
    %cst_143 = arith.constant dense<0.000000e+00> : vector<12x96xf32>
    %546 = tpu.matmul %543, %540, %cst_143 {dimension_numbers = #tpu.dot_dimension_numbers<[1], [1], [0], [0], [0, 0, 1, 0], [], []>} : vector<12x32xf32>, vector<96x32xf32>, vector<12x96xf32> -> vector<12x96xf32>
    %547 = vector.broadcast %542 : vector<1x96xf32> to vector<12x96xf32>
    %548 = arith.addf %546, %547 : vector<12x96xf32>
    %549 = vector.extract_strided_slice %545 {offsets = [0, 0], sizes = [12, 32], strides = [1, 1]} : vector<12x96xf32> to vector<12x32xf32>
    %550 = vector.extract_strided_slice %548 {offsets = [0, 0], sizes = [12, 32], strides = [1, 1]} : vector<12x96xf32> to vector<12x32xf32>
    %551 = arith.addf %549, %550 : vector<12x32xf32>
    %552 = arith.negf %551 : vector<12x32xf32>
    %553 = math.exp %552 : vector<12x32xf32>
    %cst_144 = arith.constant 1.000000e+00 : f32
    %554 = vector.broadcast %cst_144 : f32 to vector<12x32xf32>
    %555 = arith.addf %554, %553 : vector<12x32xf32>
    %556 = arith.divf %554, %555 : vector<12x32xf32>
    %557 = vector.extract_strided_slice %545 {offsets = [0, 32], sizes = [12, 32], strides = [1, 1]} : vector<12x96xf32> to vector<12x32xf32>
    %558 = vector.extract_strided_slice %548 {offsets = [0, 32], sizes = [12, 32], strides = [1, 1]} : vector<12x96xf32> to vector<12x32xf32>
    %559 = arith.addf %557, %558 : vector<12x32xf32>
    %560 = arith.negf %559 : vector<12x32xf32>
    %561 = math.exp %560 : vector<12x32xf32>
    %cst_145 = arith.constant 1.000000e+00 : f32
    %562 = vector.broadcast %cst_145 : f32 to vector<12x32xf32>
    %563 = arith.addf %562, %561 : vector<12x32xf32>
    %564 = arith.divf %562, %563 : vector<12x32xf32>
    %565 = vector.extract_strided_slice %545 {offsets = [0, 64], sizes = [12, 32], strides = [1, 1]} : vector<12x96xf32> to vector<12x32xf32>
    %566 = vector.extract_strided_slice %548 {offsets = [0, 64], sizes = [12, 32], strides = [1, 1]} : vector<12x96xf32> to vector<12x32xf32>
    %567 = arith.mulf %556, %566 : vector<12x32xf32>
    %568 = arith.addf %565, %567 : vector<12x32xf32>
    %569 = math.tanh %568 : vector<12x32xf32>
    %cst_146 = arith.constant 1.000000e+00 : f32
    %570 = vector.broadcast %cst_146 : f32 to vector<12x32xf32>
    %571 = arith.subf %570, %564 : vector<12x32xf32>
    %572 = arith.mulf %571, %569 : vector<12x32xf32>
    %573 = arith.mulf %564, %543 : vector<12x32xf32>
    %574 = arith.addf %572, %573 : vector<12x32xf32>
    %cst_147 = arith.constant dense<0xFF800000> : vector<32xf32>
    %575 = vector.multi_reduction <maximumf>, %574, %cst_147 [0] : vector<12x32xf32> to vector<32xf32>
    %576 = vector.shape_cast %575 : vector<32xf32> to vector<1x32xf32>
    %577 = vector.extract_strided_slice %538 {offsets = [2, 0, 0], sizes = [1, 12, 96], strides = [1, 1, 1]} : vector<4x12x96xf32> to vector<1x12x96xf32>
    %578 = vector.shape_cast %577 : vector<1x12x96xf32> to vector<12x96xf32>
    %cst_148 = arith.constant dense<0.000000e+00> : vector<12x96xf32>
    %579 = tpu.matmul %574, %540, %cst_148 {dimension_numbers = #tpu.dot_dimension_numbers<[1], [1], [0], [0], [0, 0, 1, 0], [], []>} : vector<12x32xf32>, vector<96x32xf32>, vector<12x96xf32> -> vector<12x96xf32>
    %580 = vector.broadcast %542 : vector<1x96xf32> to vector<12x96xf32>
    %581 = arith.addf %579, %580 : vector<12x96xf32>
    %582 = vector.extract_strided_slice %578 {offsets = [0, 0], sizes = [12, 32], strides = [1, 1]} : vector<12x96xf32> to vector<12x32xf32>
    %583 = vector.extract_strided_slice %581 {offsets = [0, 0], sizes = [12, 32], strides = [1, 1]} : vector<12x96xf32> to vector<12x32xf32>
    %584 = arith.addf %582, %583 : vector<12x32xf32>
    %585 = arith.negf %584 : vector<12x32xf32>
    %586 = math.exp %585 : vector<12x32xf32>
    %cst_149 = arith.constant 1.000000e+00 : f32
    %587 = vector.broadcast %cst_149 : f32 to vector<12x32xf32>
    %588 = arith.addf %587, %586 : vector<12x32xf32>
    %589 = arith.divf %587, %588 : vector<12x32xf32>
    %590 = vector.extract_strided_slice %578 {offsets = [0, 32], sizes = [12, 32], strides = [1, 1]} : vector<12x96xf32> to vector<12x32xf32>
    %591 = vector.extract_strided_slice %581 {offsets = [0, 32], sizes = [12, 32], strides = [1, 1]} : vector<12x96xf32> to vector<12x32xf32>
    %592 = arith.addf %590, %591 : vector<12x32xf32>
    %593 = arith.negf %592 : vector<12x32xf32>
    %594 = math.exp %593 : vector<12x32xf32>
    %cst_150 = arith.constant 1.000000e+00 : f32
    %595 = vector.broadcast %cst_150 : f32 to vector<12x32xf32>
    %596 = arith.addf %595, %594 : vector<12x32xf32>
    %597 = arith.divf %595, %596 : vector<12x32xf32>
    %598 = vector.extract_strided_slice %578 {offsets = [0, 64], sizes = [12, 32], strides = [1, 1]} : vector<12x96xf32> to vector<12x32xf32>
    %599 = vector.extract_strided_slice %581 {offsets = [0, 64], sizes = [12, 32], strides = [1, 1]} : vector<12x96xf32> to vector<12x32xf32>
    %600 = arith.mulf %589, %599 : vector<12x32xf32>
    %601 = arith.addf %598, %600 : vector<12x32xf32>
    %602 = math.tanh %601 : vector<12x32xf32>
    %cst_151 = arith.constant 1.000000e+00 : f32
    %603 = vector.broadcast %cst_151 : f32 to vector<12x32xf32>
    %604 = arith.subf %603, %597 : vector<12x32xf32>
    %605 = arith.mulf %604, %602 : vector<12x32xf32>
    %606 = arith.mulf %597, %574 : vector<12x32xf32>
    %607 = arith.addf %605, %606 : vector<12x32xf32>
    %cst_152 = arith.constant dense<0xFF800000> : vector<32xf32>
    %608 = vector.multi_reduction <maximumf>, %607, %cst_152 [0] : vector<12x32xf32> to vector<32xf32>
    %609 = vector.shape_cast %608 : vector<32xf32> to vector<1x32xf32>
    %610 = vector.extract_strided_slice %538 {offsets = [1, 0, 0], sizes = [1, 12, 96], strides = [1, 1, 1]} : vector<4x12x96xf32> to vector<1x12x96xf32>
    %611 = vector.shape_cast %610 : vector<1x12x96xf32> to vector<12x96xf32>
    %cst_153 = arith.constant dense<0.000000e+00> : vector<12x96xf32>
    %612 = tpu.matmul %607, %540, %cst_153 {dimension_numbers = #tpu.dot_dimension_numbers<[1], [1], [0], [0], [0, 0, 1, 0], [], []>} : vector<12x32xf32>, vector<96x32xf32>, vector<12x96xf32> -> vector<12x96xf32>
    %613 = vector.broadcast %542 : vector<1x96xf32> to vector<12x96xf32>
    %614 = arith.addf %612, %613 : vector<12x96xf32>
    %615 = vector.extract_strided_slice %611 {offsets = [0, 0], sizes = [12, 32], strides = [1, 1]} : vector<12x96xf32> to vector<12x32xf32>
    %616 = vector.extract_strided_slice %614 {offsets = [0, 0], sizes = [12, 32], strides = [1, 1]} : vector<12x96xf32> to vector<12x32xf32>
    %617 = arith.addf %615, %616 : vector<12x32xf32>
    %618 = arith.negf %617 : vector<12x32xf32>
    %619 = math.exp %618 : vector<12x32xf32>
    %cst_154 = arith.constant 1.000000e+00 : f32
    %620 = vector.broadcast %cst_154 : f32 to vector<12x32xf32>
    %621 = arith.addf %620, %619 : vector<12x32xf32>
    %622 = arith.divf %620, %621 : vector<12x32xf32>
    %623 = vector.extract_strided_slice %611 {offsets = [0, 32], sizes = [12, 32], strides = [1, 1]} : vector<12x96xf32> to vector<12x32xf32>
    %624 = vector.extract_strided_slice %614 {offsets = [0, 32], sizes = [12, 32], strides = [1, 1]} : vector<12x96xf32> to vector<12x32xf32>
    %625 = arith.addf %623, %624 : vector<12x32xf32>
    %626 = arith.negf %625 : vector<12x32xf32>
    %627 = math.exp %626 : vector<12x32xf32>
    %cst_155 = arith.constant 1.000000e+00 : f32
    %628 = vector.broadcast %cst_155 : f32 to vector<12x32xf32>
    %629 = arith.addf %628, %627 : vector<12x32xf32>
    %630 = arith.divf %628, %629 : vector<12x32xf32>
    %631 = vector.extract_strided_slice %611 {offsets = [0, 64], sizes = [12, 32], strides = [1, 1]} : vector<12x96xf32> to vector<12x32xf32>
    %632 = vector.extract_strided_slice %614 {offsets = [0, 64], sizes = [12, 32], strides = [1, 1]} : vector<12x96xf32> to vector<12x32xf32>
    %633 = arith.mulf %622, %632 : vector<12x32xf32>
    %634 = arith.addf %631, %633 : vector<12x32xf32>
    %635 = math.tanh %634 : vector<12x32xf32>
    %cst_156 = arith.constant 1.000000e+00 : f32
    %636 = vector.broadcast %cst_156 : f32 to vector<12x32xf32>
    %637 = arith.subf %636, %630 : vector<12x32xf32>
    %638 = arith.mulf %637, %635 : vector<12x32xf32>
    %639 = arith.mulf %630, %607 : vector<12x32xf32>
    %640 = arith.addf %638, %639 : vector<12x32xf32>
    %cst_157 = arith.constant dense<0xFF800000> : vector<32xf32>
    %641 = vector.multi_reduction <maximumf>, %640, %cst_157 [0] : vector<12x32xf32> to vector<32xf32>
    %642 = vector.shape_cast %641 : vector<32xf32> to vector<1x32xf32>
    %643 = vector.extract_strided_slice %538 {offsets = [0, 0, 0], sizes = [1, 12, 96], strides = [1, 1, 1]} : vector<4x12x96xf32> to vector<1x12x96xf32>
    %644 = vector.shape_cast %643 : vector<1x12x96xf32> to vector<12x96xf32>
    %cst_158 = arith.constant dense<0.000000e+00> : vector<12x96xf32>
    %645 = tpu.matmul %640, %540, %cst_158 {dimension_numbers = #tpu.dot_dimension_numbers<[1], [1], [0], [0], [0, 0, 1, 0], [], []>} : vector<12x32xf32>, vector<96x32xf32>, vector<12x96xf32> -> vector<12x96xf32>
    %646 = vector.broadcast %542 : vector<1x96xf32> to vector<12x96xf32>
    %647 = arith.addf %645, %646 : vector<12x96xf32>
    %648 = vector.extract_strided_slice %644 {offsets = [0, 0], sizes = [12, 32], strides = [1, 1]} : vector<12x96xf32> to vector<12x32xf32>
    %649 = vector.extract_strided_slice %647 {offsets = [0, 0], sizes = [12, 32], strides = [1, 1]} : vector<12x96xf32> to vector<12x32xf32>
    %650 = arith.addf %648, %649 : vector<12x32xf32>
    %651 = arith.negf %650 : vector<12x32xf32>
    %652 = math.exp %651 : vector<12x32xf32>
    %cst_159 = arith.constant 1.000000e+00 : f32
    %653 = vector.broadcast %cst_159 : f32 to vector<12x32xf32>
    %654 = arith.addf %653, %652 : vector<12x32xf32>
    %655 = arith.divf %653, %654 : vector<12x32xf32>
    %656 = vector.extract_strided_slice %644 {offsets = [0, 32], sizes = [12, 32], strides = [1, 1]} : vector<12x96xf32> to vector<12x32xf32>
    %657 = vector.extract_strided_slice %647 {offsets = [0, 32], sizes = [12, 32], strides = [1, 1]} : vector<12x96xf32> to vector<12x32xf32>
    %658 = arith.addf %656, %657 : vector<12x32xf32>
    %659 = arith.negf %658 : vector<12x32xf32>
    %660 = math.exp %659 : vector<12x32xf32>
    %cst_160 = arith.constant 1.000000e+00 : f32
    %661 = vector.broadcast %cst_160 : f32 to vector<12x32xf32>
    %662 = arith.addf %661, %660 : vector<12x32xf32>
    %663 = arith.divf %661, %662 : vector<12x32xf32>
    %664 = vector.extract_strided_slice %644 {offsets = [0, 64], sizes = [12, 32], strides = [1, 1]} : vector<12x96xf32> to vector<12x32xf32>
    %665 = vector.extract_strided_slice %647 {offsets = [0, 64], sizes = [12, 32], strides = [1, 1]} : vector<12x96xf32> to vector<12x32xf32>
    %666 = arith.mulf %655, %665 : vector<12x32xf32>
    %667 = arith.addf %664, %666 : vector<12x32xf32>
    %668 = math.tanh %667 : vector<12x32xf32>
    %cst_161 = arith.constant 1.000000e+00 : f32
    %669 = vector.broadcast %cst_161 : f32 to vector<12x32xf32>
    %670 = arith.subf %669, %663 : vector<12x32xf32>
    %671 = arith.mulf %670, %668 : vector<12x32xf32>
    %672 = arith.mulf %663, %640 : vector<12x32xf32>
    %673 = arith.addf %671, %672 : vector<12x32xf32>
    %cst_162 = arith.constant dense<0xFF800000> : vector<32xf32>
    %674 = vector.multi_reduction <maximumf>, %673, %cst_162 [0] : vector<12x32xf32> to vector<32xf32>
    %675 = vector.shape_cast %674 : vector<32xf32> to vector<1x32xf32>
    %676 = tpu.concatenate %675, %642, %609, %576 in 0 : vector<1x32xf32>, vector<1x32xf32>, vector<1x32xf32>, vector<1x32xf32> -> vector<4x32xf32>
    %677 = tpu.concatenate %530, %676 in 1 : vector<4x32xf32>, vector<4x32xf32> -> vector<4x64xf32>
    %678 = math.tanh %677 : vector<4x64xf32>
    %679 = tpu.concatenate %324, %678 in 1 : vector<4x64xf32>, vector<4x64xf32> -> vector<4x128xf32>
    %c0_163 = arith.constant 0 : index
    %c0_164 = arith.constant 0 : index
    %680 = vector.load %arg15[%c0_163, %c0_164] : memref<1x128xf32, #tpu.memory_space<vmem>>, vector<1x128xf32>
    %681 = vector.broadcast %680 : vector<1x128xf32> to vector<4x128xf32>
    %682 = arith.mulf %679, %681 : vector<4x128xf32>
    %cst_165 = arith.constant dense<0.000000e+00> : vector<4xf32>
    %683 = vector.multi_reduction <add>, %682, %cst_165 [1] : vector<4x128xf32> to vector<4xf32>
    %684 = vector.shape_cast %683 : vector<4xf32> to vector<4x1xf32>
    %c0_166 = arith.constant 0 : index
    %c0_167 = arith.constant 0 : index
    %685 = vector.load %arg16[%c0_166, %c0_167] : memref<1x1xf32, #tpu.memory_space<vmem>>, vector<1x1xf32>
    %686 = vector.broadcast %685 : vector<1x1xf32> to vector<4x1xf32>
    %687 = arith.addf %684, %686 : vector<4x1xf32>
    %cst_168 = arith.constant dense<0xFF800000> : vector<1xf32>
    %688 = vector.multi_reduction <maximumf>, %687, %cst_168 [0] : vector<4x1xf32> to vector<1xf32>
    %689 = vector.shape_cast %688 : vector<1xf32> to vector<1x1xf32>
    %690 = vector.broadcast %689 : vector<1x1xf32> to vector<4x1xf32>
    %691 = arith.subf %687, %690 : vector<4x1xf32>
    %692 = math.exp %691 : vector<4x1xf32>
    %cst_169 = arith.constant dense<0.000000e+00> : vector<1xf32>
    %693 = vector.multi_reduction <add>, %692, %cst_169 [0] : vector<4x1xf32> to vector<1xf32>
    %694 = vector.shape_cast %693 : vector<1xf32> to vector<1x1xf32>
    %695 = math.log %694 : vector<1x1xf32>
    %696 = arith.addf %689, %695 : vector<1x1xf32>
    %697 = vector.broadcast %696 : vector<1x1xf32> to vector<4x1xf32>
    %698 = arith.subf %687, %697 : vector<4x1xf32>
    %c0_170 = arith.constant 0 : index
    %c0_171 = arith.constant 0 : index
    %699 = vector.load %arg17[%c0_170, %c0_171] : memref<4x1xf32, #tpu.memory_space<vmem>>, vector<4x1xf32>
    tpu.vector_store %arg17[%c0_170, %c0_171], %698 {strides = array<i32>} : memref<4x1xf32, #tpu.memory_space<vmem>>, vector<4x1xf32>,
    return
  }
}

</mosaic_0001>

<bundles_post_ra>
// kernel: comp_agg_wikiqa_forward.1
= control target key start
LH: loop header
LB: loop body
LE: loop exit
PB: predicated region body
PF: predicated region fallthrough
CT: control target
= control target key end

     0   :  { %vm83_vm0 = vcmask 261120   ;;  %vm537_vm2 = vcmask 1041408   ;;  %vm7909_vm3 = vmmov 1   ;;  %vm452_vm5 = vcmask 80896   ;;  %s7911_s25 = smov 64   ;;  %s10214_s1 = inlined_call_operand.vmem [shape: f32[64,32], index: 1, kind: input, shape index: {}]   ;;  %s10215_s0 = inlined_call_operand.vmem [shape: f32[64,32], index: 0, kind: input, shape index: {}]   ;;  %s10216_s2 = inlined_call_operand.vmem [shape: f32[1,64], index: 2, kind: input, shape index: {}]   ;;  %s10217_s6 = inlined_call_operand.vmem [shape: f32[2,96,32], index: 6, kind: input, shape index: {}]   ;;  %s10218_s5 = inlined_call_operand.vmem [shape: f32[2,96,32], index: 5, kind: input, shape index: {}]   ;;  %s10219_s8 = inlined_call_operand.vmem [shape: f32[2,1,96], index: 8, kind: input, shape index: {}]   ;;  %s10220_s7 = inlined_call_operand.vmem [shape: f32[2,1,96], index: 7, kind: input, shape index: {}]   ;;  %s10221_s14 = inlined_call_operand.<no memory space> [shape: f32[1,1], index: 14, kind: input, shape index: {}]   ;;  %s10222_s13 = inlined_call_operand.vmem [shape: f32[1,64], index: 13, kind: input, shape index: {}]   ;;  %s10223_s3 = inlined_call_operand.vmem [shape: f32[64,32], index: 3, kind: input, shape index: {}]   ;;  %s10224_s4 = inlined_call_operand.vmem [shape: f32[1,64], index: 4, kind: input, shape index: {}]   ;;  %s10225_s10 = inlined_call_operand.vmem [shape: f32[2,96,32], index: 10, kind: input, shape index: {}]   ;;  %s10226_s9 = inlined_call_operand.vmem [shape: f32[2,96,32], index: 9, kind: input, shape index: {}]   ;;  %s10227_s12 = inlined_call_operand.vmem [shape: f32[2,1,96], index: 12, kind: input, shape index: {}]   ;;  %s10228_s11 = inlined_call_operand.vmem [shape: f32[2,1,96], index: 11, kind: input, shape index: {}]   ;;  %s10229_s16 = inlined_call_operand.<no memory space> [shape: f32[1,1], index: 16, kind: input, shape index: {}]   ;;  %s10230_s15 = inlined_call_operand.vmem [shape: f32[1,128], index: 15, kind: input, shape index: {}]   ;;  %s10231_s17 = inlined_call_operand.vmem [shape: f32[4,1], index: 17, kind: output, shape index: {}]  }
   0x1   :  { %10234 = sst [smem:[#allocation4_spill]] %s10214_s1  ;;  %vm8010_vm1 = vmpackc.low %vm83_vm0, %vm83_vm0  ;;  %v5163_v21 = vld [vmem:[%s10216_s2] ss:$0 sm:$0xff]  ;;  %s7908_s2 = smov 96   ;;  %vm1044_vm6 = vcmask 523520   ;;  %vm1046_vm7 = vcmask 519424  }
   0x2   :  { %10235 = sst [smem:[#allocation5_spill]] %s10215_s0  ;;  %s10236_s26 = sld [smem:[#allocation4_spill]]  ;;  %vm8097_vm4 = vmpackc.low %vm537_vm2, %vm7909_vm3  ;;  %vm1582_vm8 = vcmask 1040384   ;;  %vm1585_vm9 = vcmask 1042432   ;;  %vm2526_vm10 = vcmask 519168   ;;  %vm2540_vm11 = vcmask 3072  }
   0x3   :  { %s10239_s20 = sld [smem:[#allocation5_spill]] }
   0x8   :  { %v68_v0 = vld [vmem:[%s10236_s26] sm:$0xff]  ;;  %v69_v1 = vld [vmem:[%s10236_s26 + $0x8] sm:$0xff]  ;;  %v70_v4 = vld [vmem:[%s10236_s26 + $0x10] sm:$0xff] }
   0x9   :  { %v6667_v3 = vpack.c.bf16 %v69_v1, %v68_v0  ;;  %v71_v5 = vld [vmem:[%s10236_s26 + $0x18] sm:$0xff]  ;;  %v60_v7 = vld [vmem:[%s10239_s20] sm:$0xff]  ;;  %v73_v9 = vld [vmem:[%s10236_s26 + $0x28] sm:$0xff] }
   0xa   :  { %v6673_v6 = vpack.c.bf16 %v71_v5, %v70_v4  ;;  %6014 = vmatprep.mubr.msk.f32.mxu0 %vm83_vm0, %v60_v7  ;;  %v72_v8 = vld [vmem:[%s10236_s26 + $0x20] sm:$0xff]  ;;  %v74_v11 = vld [vmem:[%s10236_s26 + $0x30] sm:$0xff]  ;;  %v75_v12 = vld [vmem:[%s10236_s26 + $0x38] sm:$0xff] }
   0xb   :  { %6669 = vmatprep.subr.msk.bf16.mxu0 %vm8010_vm1, %v6667_v3  ;;  %v6679_v10 = vpack.c.bf16 %v73_v9, %v72_v8  ;;  %v6685_v13 = vpack.c.bf16 %v75_v12, %v74_v11  ;;  %v61_v14 = vld [vmem:[%s10239_s20 + $0x8] sm:$0xff]  ;;  %v62_v15 = vld [vmem:[%s10239_s20 + $0x10] sm:$0xff]  ;;  %v63_v16 = vld [vmem:[%s10239_s20 + $0x18] sm:$0xff] }
   0xc   :  { %6672 = vmatpush3.bf16.xpose.msk.msra.mxu0 %vm8010_vm1, %v6667_v3  ;;  %v64_v17 = vld [vmem:[%s10239_s20 + $0x20] sm:$0xff]  ;;  %v65_v18 = vld [vmem:[%s10239_s20 + $0x28] sm:$0xff]  ;;  %v66_v19 = vld [vmem:[%s10239_s20 + $0x30] sm:$0xff] }
   0xd   :  { %6675 = vmatprep.subr.msk.bf16.mxu0 %vm8010_vm1, %v6673_v6  ;;  %v67_v20 = vld [vmem:[%s10239_s20 + $0x38] sm:$0xff] }
  0x14   :  { %6678 = vmatpush3.bf16.xpose.msk.msra.mxu0 %vm8010_vm1, %v6673_v6 }
  0x15   :  { %6681 = vmatprep.subr.msk.bf16.mxu0 %vm8010_vm1, %v6679_v10 }
  0x1c   :  { %6684 = vmatpush3.bf16.xpose.msk.msra.mxu0 %vm8010_vm1, %v6679_v10 }
  0x1d   :  { %6687 = vmatprep.subr.msk.bf16.mxu0 %vm8010_vm1, %v6685_v13 }
  0x24   :  { %6690 = vmatpush3.bf16.xpose.msk.msra.mxu0 %vm8010_vm1, %v6685_v13 }
  0x2b   :  { %6015 = vmatmul.mubr.msk.f32.vlgmr.msra.gmra.mrb[0].mxu0 %vm83_vm0, %v61_v14 }
  0x2c   :  { %6017 = vmatprep.mubr.msk.f32.mxu0 %vm83_vm0, %v62_v15 }
  0x2f   :  { %6018 = vmatmul.mubr.msk.f32.gmra.mrb[2].mxu0 %vm83_vm0, %v63_v16 }
  0x30   :  { %6020 = vmatprep.mubr.msk.f32.mxu0 %vm83_vm0, %v64_v17 }
  0x33   :  { %6021 = vmatmul.mubr.msk.f32.gmra.mrb[4].mxu0 %vm83_vm0, %v65_v18 }
  0x34   :  { %6023 = vmatprep.mubr.msk.f32.mxu0 %vm83_vm0, %v66_v19 }
  0x37   :  { %6024 = vmatmul.mubr.msk.f32.gmra.mrb[6].mxu0 %vm83_vm0, %v67_v20 }
  0xfe   :  { %v6016_v22 = vpop.f32.mrb[0].mxu0 }
  0xff   :  { %v198_v23 = vpop.f32.mrb[1].mxu0  ;;  %v204_v25 = vadd.f32 %v6016_v22, %v5163_v21 }
 0x100   :  { %v199_v24 = vadd.f32 %v5163_v21, %v198_v23 }
 0x101   :  { %v5181_v46 = vmul.f32 -1.442695, %v204_v25 }
 0x102   :  { %7467 = vtanh.f32 %v199_v24  ;;  %v6019_v26 = vpop.f32.mrb[2].mxu0  ;;  %v5180_v47 = vmul.f32 -1.442695, %v199_v24 }
 0x103   :  { %v208_v27 = vpop.f32.mrb[3].mxu0  ;;  %v214_v28 = vadd.f32 %v6019_v26, %v5163_v21  ;;  %7469 = vtanh.f32 %v204_v25 }
 0x104   :  { %v209_v29 = vadd.f32 %v5163_v21, %v208_v27 }
 0x105   :  { %v5183_v50 = vmul.f32 -1.442695, %v214_v28 }
 0x106   :  { %7471 = vtanh.f32 %v209_v29  ;;  %v6022_v30 = vpop.f32.mrb[4].mxu0  ;;  %v5182_v48 = vmul.f32 -1.442695, %v209_v29 }
 0x107   :  { %v218_v31 = vpop.f32.mrb[5].mxu0  ;;  %7473 = vtanh.f32 %v214_v28  ;;  %v224_v32 = vadd.f32 %v6022_v30, %v5163_v21 }
 0x108   :  { %v219_v33 = vadd.f32 %v5163_v21, %v218_v31 }
 0x109   :  { %v5185_v51 = vmul.f32 -1.442695, %v224_v32 }
 0x10a   :  { %7475 = vtanh.f32 %v219_v33  ;;  %v6025_v34 = vpop.f32.mrb[6].mxu0  ;;  %v5184_v49 = vmul.f32 -1.442695, %v219_v33 }
 0x10b   :  { %v228_v35 = vpop.f32.mrb[7].mxu0  ;;  %7477 = vtanh.f32 %v224_v32  ;;  %v234_v37 = vadd.f32 %v6025_v34, %v5163_v21 }
 0x10c   :  { %v7468_v36 = vpop.eup %7467  ;;  %v229_v38 = vadd.f32 %v5163_v21, %v228_v35 }
 0x10d   :  { %301 = vrot.lane.b32.xlu0 %v7468_v36, %s7908_s2  ;;  %v7470_v39 = vpop.eup %7469  ;;  %v5187_v56 = vmul.f32 -1.442695, %v234_v37 }
 0x10e   :  { %7479 = vtanh.f32 %v229_v38  ;;  %v5186_v52 = vmul.f32 -1.442695, %v229_v38 }
 0x10f   :  { %7481 = vtanh.f32 %v234_v37 }
 0x110   :  { %v7472_v40 = vpop.eup %7471  ;;  %7483 = vpow2.f32 %v5181_v46 }
 0x111   :  { %305 = vrot.lane.b32.xlu1 %v7472_v40, %s7908_s2  ;;  %303 = vrot.lane.b32.xlu0 %v7470_v39, %s7908_s2  ;;  %v7474_v41 = vpop.eup %7473  ;;  %7485 = vpow2.f32 %v5180_v47 }
 0x112   :  { %7487 = vpow2.f32 %v5182_v48 }
 0x113   :  { %7489 = vpow2.f32 %v5184_v49 }
 0x114   :  { %v7476_v42 = vpop.eup %7475  ;;  %7491 = vpow2.f32 %v5183_v50 }
 0x115   :  { %307 = vrot.lane.b32.xlu1 %v7474_v41, %s7908_s2  ;;  %309 = vrot.lane.b32.xlu0 %v7476_v42, %s7908_s2  ;;  %v7478_v43 = vpop.eup %7477  ;;  %7493 = vpow2.f32 %v5185_v51 }
 0x116   :  { %7495 = vpow2.f32 %v5186_v52 }
 0x117   :  { %7497 = vpow2.f32 %v5187_v56 }
 0x118   :  { %v7480_v44 = vpop.eup %7479 }
 0x119   :  { %311 = vrot.lane.b32.xlu1 %v7478_v43, %s7908_s2  ;;  %313 = vrot.lane.b32.xlu0 %v7480_v44, %s7908_s2  ;;  %v7482_v45 = vpop.eup %7481 }
 0x11a   :  { %v7484_v53 = vpop.eup %7483 }
 0x11b   :  { %v7486_v54 = vpop.eup %7485  ;;  %v262_v57 = vadd.f32 1.0, %v7484_v53 }
 0x11c   :  { %v7488_v55 = vpop.eup %7487  ;;  %v261_v58 = vadd.f32 1.0, %v7486_v54 }
 0x11d   :  { %315 = vrot.lane.b32.xlu1 %v7482_v45, %s7908_s2  ;;  %v263_v59 = vadd.f32 1.0, %v7488_v55  ;;  %7499 = vrcp.f32 %v262_v57  ;;  %v7490_v60 = vpop.eup %7489 }
 0x11e   :  { %7501 = vrcp.f32 %v261_v58  ;;  %v7492_v61 = vpop.eup %7491  ;;  %v265_v63 = vadd.f32 1.0, %v7490_v60 }
 0x11f   :  { %7503 = vrcp.f32 %v263_v59  ;;  %v7494_v62 = vpop.eup %7493  ;;  %v264_v1 = vadd.f32 1.0, %v7492_v61 }
 0x120   :  { %v7496_v0 = vpop.eup %7495  ;;  %v266_v3 = vadd.f32 1.0, %v7494_v62  ;;  %7505 = vrcp.f32 %v265_v63 }
 0x121   :  { %v7498_v5 = vpop.eup %7497  ;;  %v267_v6 = vadd.f32 1.0, %v7496_v0  ;;  %7507 = vrcp.f32 %v264_v1  ;;  %v827_v1 = vld [vmem:[%s10217_s6] sm:$0xff] }
 0x122   :  { %7509 = vrcp.f32 %v266_v3  ;;  %v268_v10 = vadd.f32 1.0, %v7498_v5  ;;  %v828_v3 = vld [vmem:[%s10217_s6 + $0x8] sm:$0xff]  ;;  %v7910_v5 = vmov 0.0  }
 0x123   :  { %7511 = vrcp.f32 %v267_v6  ;;  %6109 = vmatprep.mubr.f32.mxu0 %v7910_v5  ;;  %v8167_v6 = vpack.c.bf16 %v828_v3, %v827_v1  ;;  %v8355_v3 = vld [vmem:[%s10219_s8] ss:$0 sm:$0xff] }
 0x124   :  { %7513 = vrcp.f32 %v268_v10  ;;  %v832_v10 = vld [vmem:[%s10217_s6 + $0x28] sm:$0xff] }
 0x125   :  { %6741 = vmatprep.subr.msk.bf16.mxu0 %vm8010_vm1, %v8167_v6 }
 0x126   :  { %6744 = vmatpush3.bf16.xpose.msk.msra.mxu0 %vm8010_vm1, %v8167_v6 }
 0x127   :  { %v7500_v7 = vpop.eup %7499 }
 0x128   :  { %v7502_v8 = vpop.eup %7501 }
 0x129   :  { %v7504_v9 = vpop.eup %7503 }
 0x12a   :  { %v7506_v20 = vpop.eup %7505 }
 0x12b   :  { %v7508_v22 = vpop.eup %7507 }
 0x12c   :  { %v7510_v23 = vpop.eup %7509 }
 0x12d   :  { %v7512_v25 = vpop.eup %7511 }
 0x12e   :  { %v7514_v29 = vpop.eup %7513 }
 0x17f   :  { %v302_v4 = vpop.permute.xlu0 %301 }
 0x180   :  { %v325_v13 = vmul.f32 %v7502_v8, %v302_v4  ;;  %v829_v4 = vld [vmem:[%s10217_s6 + $0x10] sm:$0xff] }
 0x183   :  { %v306_v11 = vpop.permute.xlu1 %305  ;;  %v304_v12 = vpop.permute.xlu0 %303 }
 0x184   :  { %v326_v14 = vmul.f32 %v7500_v7, %v304_v12  ;;  %v8091_v15 = vmul.f32 %v7504_v9, %v306_v11  ;;  %v830_v7 = vld [vmem:[%s10217_s6 + $0x18] sm:$0xff]  ;;  %v831_v9 = vld [vmem:[%s10217_s6 + $0x20] sm:$0xff]  ;;  %v833_v12 = vld [vmem:[%s10217_s6 + $0x30] sm:$0xff] }
 0x185   :  { %v8172_v8 = vpack.c.bf16 %v830_v7, %v829_v4  ;;  %v8189_v11 = vpack.c.bf16 %v832_v10, %v831_v9 }
 0x186   :  { %v6691_v16 = vpack.c.bf16 %v326_v14, %v325_v13  ;;  %6030 = vmatprep.mubr.msk.f32.mxu1 %vm83_vm0, %v8091_v15  ;;  %v834_v13 = vld [vmem:[%s10217_s6 + $0x38] sm:$0xff] }
 0x187   :  { %v308_v17 = vpop.permute.xlu1 %307  ;;  %v310_v19 = vpop.permute.xlu0 %309  ;;  %6747 = vmatprep.subr.msk.bf16.mxu0 %vm8010_vm1, %v8172_v8  ;;  %v8203_v14 = vpack.c.bf16 %v834_v13, %v833_v12 }
 0x188   :  { %6693 = vmatprep.subr.msk.bf16.mxu1 %vm8010_vm1, %v6691_v16  ;;  %v8107_v24 = vmul.f32 %v7506_v20, %v310_v19  ;;  %v8109_v26 = vmul.f32 %v7508_v22, %v308_v17  ;;  %6750 = vmatpush3.bf16.xpose.msk.msra.mxu0 %vm8010_vm1, %v8172_v8  ;;  %v836_v17 = vld [vmem:[%s10217_s6 + $0x48] sm:$0xff]  ;;  %v837_v19 = vld [vmem:[%s10217_s6 + $0x50] sm:$0xff]  ;;  %v838_v20 = vld [vmem:[%s10217_s6 + $0x58] sm:$0xff] }
 0x189   :  { %6696 = vmatpush3.bf16.xpose.msk.msra.mxu1 %vm8010_vm1, %v6691_v16  ;;  %6753 = vmatprep.subr.msk.bf16.mxu0 %vm8010_vm1, %v8189_v11 }
 0x18a   :  { %6699 = vmatprep.subr.msk.bf16.mxu1 %vm8097_vm4, %v6691_v16 }
 0x18b   :  { %v312_v21 = vpop.permute.xlu1 %311  ;;  %v314_v27 = vpop.permute.xlu0 %313 }
 0x18c   :  { %v8113_v28 = vmul.f32 %v7510_v23, %v312_v21  ;;  %v8119_v30 = vmul.f32 %v7512_v25, %v314_v27  ;;  %v8231_v21 = vpack.c.bf16 %v838_v20, %v837_v19 }
 0x18f   :  { %v316_v31 = vpop.permute.xlu1 %315 }
 0x190   :  { %6031 = vmatmul.mubr.msk.f32.vlgmr.msra.gmra.mrb[0].mxu1 %vm83_vm0, %v8109_v26  ;;  %v8123_v32 = vmul.f32 %v7514_v29, %v316_v31  ;;  %6756 = vmatpush3.bf16.xpose.msk.msra.mxu0 %vm8010_vm1, %v8189_v11 }
 0x191   :  { %6702 = vmatpush3.bf16.msk.msra.mxu1 %vm8097_vm4, %v6691_v16  ;;  %6033 = vmatprep.mubr.msk.f32.mxu1 %vm83_vm0, %v8107_v24  ;;  %v835_v16 = vld [vmem:[%s10217_s6 + $0x40] sm:$0xff] }
 0x192   :  { %6759 = vmatprep.subr.msk.bf16.mxu0 %vm8010_vm1, %v8203_v14  ;;  %v8217_v18 = vpack.c.bf16 %v836_v17, %v835_v16 }
 0x194   :  { %6034 = vmatmul.mubr.msk.f32.gmra.mrb[2].mxu1 %vm83_vm0, %v8113_v28 }
 0x195   :  { %6036 = vmatprep.mubr.msk.f32.mxu1 %vm83_vm0, %v8119_v30 }
 0x198   :  { %6037 = vmatmul.mubr.msk.f32.gmra.mrb[4].mxu1 %vm83_vm0, %v8123_v32  ;;  %6762 = vmatpush3.bf16.xpose.msk.msra.mxu0 %vm8010_vm1, %v8203_v14 }
 0x199   :  { %6765 = vmatprep.subr.msk.bf16.mxu0 %vm8010_vm1, %v8217_v18 }
 0x1a0   :  { %6768 = vmatpush3.bf16.xpose.msk.msra.mxu0 %vm8010_vm1, %v8217_v18 }
 0x1a1   :  { %6771 = vmatprep.subr.msk.bf16.mxu0 %vm8010_vm1, %v8231_v21 }
 0x1a8   :  { %6774 = vmatpush3.bf16.xpose.msk.msra.mxu0 %vm8010_vm1, %v8231_v21 }
 0x1a9   :  { %6813 = vmatprep.subr.msk.bf16.mxu0 %vm8010_vm1, %v8167_v6 }
 0x1af   :  { %6110 = vmatmul.mubr.f32.vlgmr.msra.gmra.mrb[8].mxu0 %v7910_v5 }
 0x1b0   :  { %6816 = vmatpush3.bf16.xpose.msk.msra.mxu0 %vm8010_vm1, %v8167_v6 }
 0x1b1   :  { %6819 = vmatprep.subr.msk.bf16.mxu0 %vm8010_vm1, %v8172_v8 }
 0x1b8   :  { %6822 = vmatpush3.bf16.xpose.msk.msra.mxu0 %vm8010_vm1, %v8172_v8 }
 0x1b9   :  { %6825 = vmatprep.subr.msk.bf16.mxu0 %vm8010_vm1, %v8189_v11 }
 0x1c0   :  { %6828 = vmatpush3.bf16.xpose.msk.msra.mxu0 %vm8010_vm1, %v8189_v11 }
 0x1c1   :  { %6831 = vmatprep.subr.msk.bf16.mxu0 %vm8010_vm1, %v8203_v14 }
 0x1c8   :  { %6834 = vmatpush3.bf16.xpose.msk.msra.mxu0 %vm8010_vm1, %v8203_v14 }
 0x1c9   :  { %6837 = vmatprep.subr.msk.bf16.mxu0 %vm8010_vm1, %v8217_v18 }
 0x1d0   :  { %6840 = vmatpush3.bf16.xpose.msk.msra.mxu0 %vm8010_vm1, %v8217_v18 }
 0x1d1   :  { %6843 = vmatprep.subr.msk.bf16.mxu0 %vm8010_vm1, %v8231_v21 }
 0x1d8   :  { %6846 = vmatpush3.bf16.xpose.msk.msra.mxu0 %vm8010_vm1, %v8231_v21 }
 0x263   :  { %v6032_v33 = vpop.f32.mrb[0].mxu1 }
 0x264   :  { %v423_v34 = vpop.f32.mrb[1].mxu1  ;;  %v456_v35 = vsel %vm452_vm5, %v6032_v33, -inf }
 0x265   :  { %457 = vmax.xlane.f32.xlu1 %v456_v35  ;;  %v453_v36 = vsel %vm452_vm5, %v423_v34, -inf }
 0x266   :  { %454 = vmax.xlane.f32.xlu0 %v453_v36 }
 0x267   :  { %v8131_v37 = vpop.f32.mrb[2].mxu1 }
 0x268   :  { %v433_v38 = vpop.f32.mrb[3].mxu1  ;;  %v462_v62 = vsel %vm452_vm5, %v8131_v37, -inf }
 0x269   :  { %v459_v39 = vsel %vm452_vm5, %v433_v38, -inf }
 0x26a   :  { %460 = vmax.xlane.f32.xlu1 %v459_v39 }
 0x26b   :  { %v8134_v40 = vpop.f32.mrb[4].mxu1 }
 0x26c   :  { %v443_v41 = vpop.f32.mrb[5].mxu1  ;;  %v468_v0 = vsel %vm452_vm5, %v8134_v40, -inf }
 0x26d   :  { %v465_v42 = vsel %vm452_vm5, %v443_v41, -inf }
 0x26e   :  { %466 = vmax.xlane.f32.xlu1 %v465_v42 }
 0x282   :  { %v6111_v4 = vpop.f32.mrb[8].mxu0 }
 0x283   :  { %v951_v7 = vpop.f32.mrb[9].mxu0  ;;  %v957_v12 = vadd.f32 %v6111_v4, %v8355_v3 }
 0x284   :  { %v952_v10 = vadd.f32 %v8355_v3, %v951_v7 }
 0x286   :  { %v962_v13 = vcombine.high %v952_v10, %v952_v10 }
 0x2f2   :  { %v458_v43 = vpop.xlane.xlu1 %457 }
 0x2f3   :  { %v472_v44 = vsub.f32 %v6032_v33, %v458_v43  ;;  %v455_v45 = vpop.xlane.xlu0 %454 }
 0x2f4   :  { %v471_v46 = vsub.f32 %v423_v34, %v455_v45 }
 0x2f5   :  { %v479_v47 = vmul.f32 1.442695, %v472_v44 }
 0x2f6   :  { %v477_v48 = vmul.f32 1.442695, %v471_v46  ;;  %v641_v46 = vld [vmem:[%s10218_s5] sm:$0xff] }
 0x2f7   :  { %v461_v49 = vpop.xlane.xlu1 %460 }
 0x2f8   :  { %7515 = vpow2.f32 %v477_v48  ;;  %v473_v50 = vsub.f32 %v433_v38, %v461_v49  ;;  %v643_v48 = vld [vmem:[%s10218_s5 + $0x10] sm:$0xff] }
 0x2f9   :  { %7517 = vpow2.f32 %v479_v47  ;;  %v642_v47 = vld [vmem:[%s10218_s5 + $0x8] sm:$0xff] }
 0x2fa   :  { %v481_v51 = vmul.f32 1.442695, %v473_v50  ;;  %v6703_v49 = vpack.c.bf16 %v642_v47, %v641_v46  ;;  %v644_v50 = vld [vmem:[%s10218_s5 + $0x18] sm:$0xff] }
 0x2fb   :  { %v467_v52 = vpop.xlane.xlu1 %466 }
 0x2fc   :  { %7519 = vpow2.f32 %v481_v51  ;;  %v475_v53 = vsub.f32 %v443_v41, %v467_v52  ;;  %v6709_v51 = vpack.c.bf16 %v644_v50, %v643_v48  ;;  %6705 = vmatprep.subr.msk.bf16.mxu1 %vm8010_vm1, %v6703_v49  ;;  %v645_v52 = vld [vmem:[%s10218_s5 + $0x20] sm:$0xff] }
 0x2fe   :  { %v485_v54 = vmul.f32 1.442695, %v475_v53  ;;  %v646_v53 = vld [vmem:[%s10218_s5 + $0x28] sm:$0xff] }
 0x300   :  { %7521 = vpow2.f32 %v485_v54  ;;  %v6715_v54 = vpack.c.bf16 %v646_v53, %v645_v52 }
 0x302   :  { %v8137_v55 = vpop.eup %7515 }
 0x303   :  { %v489_v56 = vsel %vm452_vm5, %v8137_v55, 0.0  ;;  %v8141_v57 = vpop.eup %7517 }
 0x304   :  { %490 = vadd.xlane.f32.xlu0 %v489_v56  ;;  %v492_v59 = vsel %vm452_vm5, %v8141_v57, 0.0  ;;  %v648_v56 = vld [vmem:[%s10218_s5 + $0x38] sm:$0xff] }
 0x306   :  { %v8143_v58 = vpop.eup %7519 }
 0x307   :  { %v495_v60 = vsel %vm452_vm5, %v8143_v58, 0.0 }
 0x308   :  { %493 = vadd.xlane.f32.xlu0 %v492_v59  ;;  %496 = vadd.xlane.f32.xlu1 %v495_v60  ;;  %v650_v59 = vld [vmem:[%s10218_s5 + $0x48] sm:$0xff] }
 0x30a   :  { %v8149_v61 = vpop.eup %7521 }
 0x30b   :  { %v501_v63 = vsel %vm452_vm5, %v8149_v61, 0.0 }
 0x30c   :  { %463 = vmax.xlane.f32.xlu0 %v462_v62  ;;  %502 = vadd.xlane.f32.xlu1 %v501_v63  ;;  %v651_v62 = vld [vmem:[%s10218_s5 + $0x50] sm:$0xff]  ;;  %v652_v63 = vld [vmem:[%s10218_s5 + $0x58] sm:$0xff] }
 0x310   :  { %469 = vmax.xlane.f32.xlu0 %v468_v0  ;;  %v6733_v0 = vpack.c.bf16 %v652_v63, %v651_v62 }
 0x31d   :  { %985 = vrot.lane.b32.xlu1 %v952_v10, %s7911_s25 }
 0x321   :  { %989 = vrot.lane.b32.xlu1 %v957_v12, %s7911_s25 }
 0x391   :  { %v491_v22 = vpop.xlane.xlu0 %490 }
 0x392   :  { %7523 = vrcp.f32 %v491_v22 }
 0x395   :  { %v494_v23 = vpop.xlane.xlu0 %493  ;;  %v497_v25 = vpop.xlane.xlu1 %496 }
 0x396   :  { %7525 = vrcp.f32 %v494_v23 }
 0x397   :  { %7527 = vrcp.f32 %v497_v25 }
 0x399   :  { %v464_v27 = vpop.xlane.xlu0 %463  ;;  %v503_v1 = vpop.xlane.xlu1 %502 }
 0x39a   :  { %v474_v29 = vsub.f32 %v8131_v37, %v464_v27 }
 0x39c   :  { %v7524_v31 = vpop.eup %7523  ;;  %v483_v33 = vmul.f32 1.442695, %v474_v29 }
 0x39d   :  { %v470_v34 = vpop.xlane.xlu0 %469  ;;  %v513_v35 = vmul.f32 %v7524_v31, %v8137_v55  ;;  %v647_v55 = vld [vmem:[%s10218_s5 + $0x30] sm:$0xff]  ;;  %v986_v53 = vpop.permute.xlu1 %985 }
 0x39e   :  { %7529 = vpow2.f32 %v483_v33  ;;  %v476_v36 = vsub.f32 %v8134_v40, %v470_v34 }
 0x39f   :  { %6043 = vmatprep.mubr.msk.f32.mxu1 %vm452_vm5, %v513_v35 }
 0x3a0   :  { %v7526_v38 = vpop.eup %7525  ;;  %v487_v39 = vmul.f32 1.442695, %v476_v36 }
 0x3a1   :  { %v7528_v41 = vpop.eup %7527  ;;  %v514_v42 = vmul.f32 %v7526_v38, %v8141_v57  ;;  %v6721_v57 = vpack.c.bf16 %v648_v56, %v647_v55 }
 0x3a2   :  { %7531 = vpow2.f32 %v487_v39  ;;  %v515_v43 = vmul.f32 %v7528_v41, %v8143_v58  ;;  %v649_v58 = vld [vmem:[%s10218_s5 + $0x40] sm:$0xff] }
 0x3a3   :  { %6044 = vmatmul.mubr.msk.f32.vlgmr.msra.gmra.mrb[6].mxu1 %vm452_vm5, %v514_v42  ;;  %v6727_v60 = vpack.c.bf16 %v650_v59, %v649_v58  ;;  %7533 = vrcp.f32 %v503_v1  ;;  %v990_v59 = vpop.permute.xlu1 %989 }
 0x3a4   :  { %6046 = vmatprep.mubr.msk.f32.mxu1 %vm452_vm5, %v515_v43  ;;  %6708 = vmatpush3.bf16.xpose.msk.msra.mxu1 %vm8010_vm1, %v6703_v49 }
 0x3a5   :  { %6711 = vmatprep.subr.msk.bf16.mxu1 %vm8010_vm1, %v6709_v51 }
 0x3a8   :  { %v7530_v37 = vpop.eup %7529 }
 0x3a9   :  { %v498_v44 = vsel %vm452_vm5, %v7530_v37, 0.0 }
 0x3aa   :  { %499 = vadd.xlane.f32.xlu0 %v498_v44 }
 0x3ac   :  { %v7532_v45 = vpop.eup %7531  ;;  %6714 = vmatpush3.bf16.xpose.msk.msra.mxu1 %vm8010_vm1, %v6709_v51 }
 0x3ad   :  { %v504_v40 = vsel %vm452_vm5, %v7532_v45, 0.0  ;;  %6717 = vmatprep.subr.msk.bf16.mxu1 %vm8010_vm1, %v6715_v54  ;;  %v7534_v17 = vpop.eup %7533 }
 0x3ae   :  { %505 = vadd.xlane.f32.xlu0 %v504_v40  ;;  %v517_v22 = vmul.f32 %v7534_v17, %v8149_v61 }
 0x3b4   :  { %6720 = vmatpush3.bf16.xpose.msk.msra.mxu1 %vm8010_vm1, %v6715_v54 }
 0x3b5   :  { %6723 = vmatprep.subr.msk.bf16.mxu1 %vm8010_vm1, %v6721_v57 }
 0x3bc   :  { %6726 = vmatpush3.bf16.xpose.msk.msra.mxu1 %vm8010_vm1, %v6721_v57 }
 0x3bd   :  { %6729 = vmatprep.subr.msk.bf16.mxu1 %vm8010_vm1, %v6727_v60 }
 0x3c4   :  { %6732 = vmatpush3.bf16.xpose.msk.msra.mxu1 %vm8010_vm1, %v6727_v60  ;;  %987 = vrot.lane.b32.xlu0 %v962_v13, %s7911_s25 }
 0x3c5   :  { %6735 = vmatprep.subr.msk.bf16.mxu1 %vm8010_vm1, %v6733_v0 }
 0x3cc   :  { %6738 = vmatpush3.bf16.xpose.msk.msra.mxu1 %vm8010_vm1, %v6733_v0 }
 0x3cd   :  { %6777 = vmatprep.subr.msk.bf16.mxu1 %vm8010_vm1, %v8167_v6 }
 0x437   :  { %v500_v9 = vpop.xlane.xlu0 %499 }
 0x438   :  { %7535 = vrcp.f32 %v500_v9 }
 0x43b   :  { %v506_v16 = vpop.xlane.xlu0 %505 }
 0x43c   :  { %7537 = vrcp.f32 %v506_v16 }
 0x43f   :  { %v988_v55 = vpop.permute.xlu0 %987 }
 0x442   :  { %v7536_v19 = vpop.eup %7535 }
 0x443   :  { %v516_v20 = vmul.f32 %v7536_v19, %v7530_v37 }
 0x445   :  { %6047 = vmatmul.mubr.msk.f32.gmra.mrb[8].mxu1 %vm452_vm5, %v516_v20 }
 0x446   :  { %v7538_v23 = vpop.eup %7537  ;;  %6049 = vmatprep.mubr.msk.f32.mxu1 %vm452_vm5, %v517_v22 }
 0x447   :  { %v518_v25 = vmul.f32 %v7538_v23, %v7532_v45 }
 0x449   :  { %6050 = vmatmul.mubr.msk.f32.gmra.mrb[10].mxu1 %vm452_vm5, %v518_v25 }
 0x476   :  { %v6045_v27 = vpop.f32.mrb[6].mxu1 }
 0x477   :  { %v606_v29 = vpop.f32.mrb[7].mxu1  ;;  %v8370_v33 = vmul.f32 %v6045_v27, %v8109_v26 }
 0x478   :  { %v8367_v31 = vmul.f32 %v606_v29, %v8091_v15 }
 0x47a   :  { %6076 = vmatprep.mubr.msk.f32.mxu1 %vm83_vm0, %v8367_v31 }
 0x47b   :  { %6077 = vmatmul.mubr.msk.f32.vlgmr.msra.gmra.mrb[12].mxu1 %vm83_vm0, %v8370_v33 }
 0x47c   :  { %6780 = vmatpush3.bf16.xpose.msk.msra.mxu1 %vm8010_vm1, %v8167_v6 }
 0x47d   :  { %6783 = vmatprep.subr.msk.bf16.mxu1 %vm8010_vm1, %v8172_v8 }
 0x484   :  { %6786 = vmatpush3.bf16.xpose.msk.msra.mxu1 %vm8010_vm1, %v8172_v8 }
 0x485   :  { %6789 = vmatprep.subr.msk.bf16.mxu1 %vm8010_vm1, %v8189_v11 }
 0x48c   :  { %6792 = vmatpush3.bf16.xpose.msk.msra.mxu1 %vm8010_vm1, %v8189_v11 }
 0x48d   :  { %6795 = vmatprep.subr.msk.bf16.mxu1 %vm8010_vm1, %v8203_v14 }
 0x494   :  { %6798 = vmatpush3.bf16.xpose.msk.msra.mxu1 %vm8010_vm1, %v8203_v14 }
 0x495   :  { %6801 = vmatprep.subr.msk.bf16.mxu1 %vm8010_vm1, %v8217_v18 }
 0x49c   :  { %6804 = vmatpush3.bf16.xpose.msk.msra.mxu1 %vm8010_vm1, %v8217_v18 }
 0x49d   :  { %6807 = vmatprep.subr.msk.bf16.mxu1 %vm8010_vm1, %v8231_v21 }
 0x4a4   :  { %6810 = vmatpush3.bf16.xpose.msk.msra.mxu1 %vm8010_vm1, %v8231_v21 }
 0x4a5   :  { %6849 = vmatprep.subr.msk.bf16.mxu1 %vm8010_vm1, %v8167_v6 }
 0x518   :  { %v6048_v15 = vpop.f32.mrb[8].mxu1 }
 0x519   :  { %v616_v26 = vpop.f32.mrb[9].mxu1  ;;  %v8416_v34 = vmul.f32 %v6048_v15, %v8113_v28 }
 0x51a   :  { %v8413_v61 = vmul.f32 %v616_v26, %v8107_v24  ;;  %v8435_v24 = vld [vmem:[%s10220_s7] ss:$0 sm:$0xff] }
 0x51c   :  { %v6051_v35 = vpop.f32.mrb[10].mxu1  ;;  %6079 = vmatprep.mubr.msk.f32.mxu1 %vm83_vm0, %v8413_v61 }
 0x51d   :  { %v626_v36 = vpop.f32.mrb[11].mxu1  ;;  %6080 = vmatmul.mubr.msk.f32.gmra.mrb[14].mxu1 %vm83_vm0, %v8416_v34  ;;  %v8426_v39 = vmul.f32 %v6051_v35, %v8123_v32 }
 0x51e   :  { %v8423_v38 = vmul.f32 %v626_v36, %v8119_v30 }
 0x520   :  { %6082 = vmatprep.mubr.msk.f32.mxu1 %vm83_vm0, %v8423_v38 }
 0x521   :  { %6083 = vmatmul.mubr.msk.f32.gmra.mrb[16].mxu1 %vm83_vm0, %v8426_v39 }
 0x54e   :  { %v6078_v28 = vpop.f32.mrb[12].mxu1 }
 0x54f   :  { %v8438_v41 = vadd.f32 %v6078_v28, %v8435_v24  ;;  %v780_v30 = vpop.f32.mrb[13].mxu1 }
 0x550   :  { %v781_v42 = vadd.f32 %v8435_v24, %v780_v30 }
 0x551   :  { %v966_v32 = vadd.f32 %v957_v12, %v8438_v41 }
 0x552   :  { %v815_v43 = vcombine.high %v781_v42, %v781_v42  ;;  %v964_v37 = vadd.f32 %v952_v10, %v781_v42 }
 0x553   :  { %v5237_v44 = vmul.f32 -1.442695, %v966_v32 }
 0x554   :  { %v965_v45 = vadd.f32 %v962_v13, %v815_v43  ;;  %v5235_v40 = vmul.f32 -1.442695, %v964_v37 }
 0x555   :  { %7539 = vpow2.f32 %v5237_v44 }
 0x556   :  { %7541 = vpow2.f32 %v5235_v40  ;;  %v5236_v46 = vmul.f32 -1.442695, %v965_v45 }
 0x558   :  { %7543 = vpow2.f32 %v5236_v46 }
 0x55f   :  { %v7540_v47 = vpop.eup %7539 }
 0x560   :  { %v7542_v48 = vpop.eup %7541  ;;  %v978_v49 = vadd.f32 1.0, %v7540_v47 }
 0x561   :  { %v976_v50 = vadd.f32 1.0, %v7542_v48 }
 0x562   :  { %v7544_v51 = vpop.eup %7543 }
 0x563   :  { %v977_v52 = vadd.f32 1.0, %v7544_v51  ;;  %7545 = vrcp.f32 %v976_v50 }
 0x564   :  { %7547 = vrcp.f32 %v978_v49 }
 0x565   :  { %7549 = vrcp.f32 %v977_v52 }
 0x56d   :  { %v7546_v54 = vpop.eup %7545 }
 0x56e   :  { %v7548_v56 = vpop.eup %7547  ;;  %v994_v57 = vmul.f32 %v7546_v54, %v986_v53  ;;  %v1015_v22 = vsub.f32 1.0, %v7546_v54  ;;  %v1033_v15 = vmul.f32 0.0, %v7546_v54 }
 0x56f   :  { %v7550_v58 = vpop.eup %7549  ;;  %v996_v62 = vmul.f32 %v7548_v56, %v990_v59  ;;  %v1017_v36 = vsub.f32 1.0, %v7548_v56  ;;  %v1035_v32 = vmul.f32 0.0, %v7548_v56 }
 0x570   :  { %v995_v60 = vmul.f32 %v7550_v58, %v988_v55  ;;  %1000 = vrot.lane.b32.xlu1 %v994_v57, %s7911_s25  ;;  %v1016_v27 = vsub.f32 1.0, %v7550_v58  ;;  %v1034_v26 = vmul.f32 0.0, %v7550_v58 }
 0x572   :  { %1002 = vrot.lane.b32.xlu0 %v995_v60, %s7911_s25 }
 0x574   :  { %1004 = vrot.lane.b32.xlu1 %v996_v62, %s7911_s25 }
 0x5e2   :  { %v1001_v63 = vpop.permute.xlu1 %1000 }
 0x5e3   :  { %v1009_v0 = vadd.f32 %v1001_v63, %v781_v42 }
 0x5e4   :  { %v1003_v1 = vpop.permute.xlu0 %1002 }
 0x5e5   :  { %7551 = vtanh.f32 %v1009_v0  ;;  %v1010_v4 = vadd.f32 %v1003_v1, %v815_v43 }
 0x5e6   :  { %v1005_v7 = vpop.permute.xlu1 %1004 }
 0x5e7   :  { %7553 = vtanh.f32 %v1010_v4  ;;  %v1011_v9 = vadd.f32 %v1005_v7, %v8438_v41 }
 0x5e9   :  { %7555 = vtanh.f32 %v1011_v9 }
 0x5ef   :  { %v7552_v10 = vpop.eup %7551 }
 0x5f0   :  { %v8446_v12 = vpop.f32.mrb[14].mxu1  ;;  %1021 = vrot.lane.b32.xlu0 %v7552_v10, %s7908_s2 }
 0x5f1   :  { %v7554_v13 = vpop.eup %7553  ;;  %v790_v16 = vpop.f32.mrb[15].mxu1 }
 0x5f2   :  { %1023 = vrot.lane.b32.xlu1 %v7554_v13, %s7908_s2  ;;  %v791_v47 = vadd.f32 %v8435_v24, %v790_v16 }
 0x5f3   :  { %v7556_v17 = vpop.eup %7555 }
 0x5f4   :  { %v8450_v19 = vpop.f32.mrb[16].mxu1  ;;  %1025 = vrot.lane.b32.xlu0 %v7556_v17, %s7908_s2 }
 0x5f5   :  { %v8453_v20 = vpop.f32.mrb[17].mxu1 }
 0x662   :  { %v1022_v23 = vpop.permute.xlu0 %1021 }
 0x663   :  { %v1030_v25 = vmul.f32 %v1022_v23, %v1015_v22 }
 0x664   :  { %v1024_v29 = vpop.permute.xlu1 %1023 }
 0x665   :  { %v1031_v35 = vmul.f32 %v1024_v29, %v1016_v27  ;;  %v8455_v30 = vadd.f32 %v1033_v15, %v1030_v25  ;;  %v5289_v15 = vld [vmem:[%s10218_s5 + $0x60] sm:$0xff] }
 0x666   :  { %v1026_v28 = vpop.permute.xlu0 %1025 }
 0x667   :  { %v8457_v42 = vadd.f32 %v1034_v26, %v1031_v35  ;;  %v1032_v43 = vmul.f32 %v1026_v28, %v1017_v36  ;;  %v5290_v26 = vld [vmem:[%s10218_s5 + $0x68] sm:$0xff] }
 0x668   :  { %v6883_v28 = vpack.c.bf16 %v5290_v26, %v5289_v15  ;;  %v5299_v15 = vld [vmem:[%s10218_s5 + $0xb0] sm:$0xff]  ;;  %v5300_v26 = vld [vmem:[%s10218_s5 + $0xb8] sm:$0xff] }
 0x669   :  { %v8459_v37 = vadd.f32 %v1035_v32, %v1032_v43  ;;  %v8463_v44 = vcombine.low %v8455_v30, %v8457_v42 }
 0x66a   :  { %6885 = vmatprep.subr.msk.bf16.mxu0 %vm8010_vm1, %v6883_v28 }
 0x66b   :  { %1057 = vrot.lane.b32.xlu0 %v8459_v37, %s7908_s2  ;;  %1055 = vrot.lane.b32.xlu1 %v8463_v44, %s7908_s2  ;;  %v1047_v35 = vsel %vm1046_vm7, %v8459_v37, -inf  ;;  %v1045_v36 = vsel %vm1044_vm6, %v8463_v44, -inf }
 0x66c   :  { %v1048_v32 = vmax.f32 %v1045_v36, %v1047_v35  ;;  %v6913_v35 = vpack.c.bf16 %v5300_v26, %v5299_v15 }
 0x6dd   :  { %v1058_v45 = vpop.permute.xlu0 %1057  ;;  %v1056_v40 = vpop.permute.xlu1 %1055 }
 0x6de   :  { %6136 = vmatprep.mubr.msk.f32.mxu1 %vm83_vm0, %v1056_v40 }
 0x6df   :  { %6137 = vmatmul.mubr.msk.f32.vlgmr.msra.gmra.mrb[18].mxu1 %vm83_vm0, %v1058_v45 }
 0x6e0   :  { %6852 = vmatpush3.bf16.xpose.msk.msra.mxu1 %vm8010_vm1, %v8167_v6 }
 0x6e1   :  { %6855 = vmatprep.subr.msk.bf16.mxu1 %vm8010_vm1, %v8172_v8 }
 0x6e8   :  { %6858 = vmatpush3.bf16.xpose.msk.msra.mxu1 %vm8010_vm1, %v8172_v8 }
 0x6e9   :  { %6861 = vmatprep.subr.msk.bf16.mxu1 %vm8010_vm1, %v8189_v11 }
 0x6f0   :  { %6864 = vmatpush3.bf16.xpose.msk.msra.mxu1 %vm8010_vm1, %v8189_v11 }
 0x6f1   :  { %6867 = vmatprep.subr.msk.bf16.mxu1 %vm8010_vm1, %v8203_v14 }
 0x6f8   :  { %6870 = vmatpush3.bf16.xpose.msk.msra.mxu1 %vm8010_vm1, %v8203_v14 }
 0x6f9   :  { %6873 = vmatprep.subr.msk.bf16.mxu1 %vm8010_vm1, %v8217_v18 }
 0x700   :  { %6876 = vmatpush3.bf16.xpose.msk.msra.mxu1 %vm8010_vm1, %v8217_v18  ;;  %v816_v18 = vcombine.high %v8438_v41, %v8438_v41 }
 0x701   :  { %6879 = vmatprep.subr.msk.bf16.mxu1 %vm8010_vm1, %v8231_v21 }
 0x708   :  { %6882 = vmatpush3.bf16.xpose.msk.msra.mxu1 %vm8010_vm1, %v8231_v21  ;;  %v817_v21 = vcombine.high %v791_v47, %v791_v47 }
 0x7b2   :  { %v6138_v6 = vpop.f32.mrb[18].mxu1 }
 0x7b3   :  { %v1129_v8 = vpop.f32.mrb[19].mxu1  ;;  %v1135_v46 = vadd.f32 %v6138_v6, %v8355_v3 }
 0x7b4   :  { %v1130_v11 = vadd.f32 %v8355_v3, %v1129_v8  ;;  %v1049_v8 = vrot.slane %v1048_v32, 4 }
 0x7b5   :  { %v1144_v50 = vadd.f32 %v1135_v46, %v817_v21 }
 0x7b6   :  { %1163 = vrot.lane.b32.xlu1 %v1130_v11, %s7911_s25  ;;  %v1140_v14 = vcombine.high %v1130_v11, %v1130_v11  ;;  %v1142_v48 = vadd.f32 %v1130_v11, %v816_v18 }
 0x7b7   :  { %v5254_v53 = vmul.f32 -1.442695, %v1144_v50 }
 0x7b8   :  { %1165 = vrot.lane.b32.xlu0 %v1140_v14, %s7911_s25  ;;  %v1143_v49 = vadd.f32 %v1140_v14, %v791_v47  ;;  %v5252_v51 = vmul.f32 -1.442695, %v1142_v48 }
 0x7ba   :  { %1167 = vrot.lane.b32.xlu1 %v1135_v46, %s7911_s25  ;;  %v5253_v52 = vmul.f32 -1.442695, %v1143_v49  ;;  %7557 = vpow2.f32 %v5252_v51  ;;  %v1050_v51 = vmax.f32 %v1048_v32, %v1049_v8 }
 0x7bc   :  { %7559 = vpow2.f32 %v5253_v52 }
 0x7bd   :  { %7561 = vpow2.f32 %v5254_v53 }
 0x7c4   :  { %v7558_v54 = vpop.eup %7557 }
 0x7c5   :  { %v1154_v56 = vadd.f32 1.0, %v7558_v54  ;;  %v1051_v54 = vrot.slane %v1050_v51, 2 }
 0x7c6   :  { %v7560_v55 = vpop.eup %7559 }
 0x7c7   :  { %v7562_v57 = vpop.eup %7561  ;;  %v1155_v58 = vadd.f32 1.0, %v7560_v55  ;;  %7563 = vrcp.f32 %v1154_v56  ;;  %v1052_v56 = vmax.f32 %v1050_v51, %v1051_v54 }
 0x7c8   :  { %v1156_v59 = vadd.f32 1.0, %v7562_v57 }
 0x7c9   :  { %7565 = vrcp.f32 %v1155_v58 }
 0x7ca   :  { %7567 = vrcp.f32 %v1156_v59  ;;  %v1053_v59 = vrot.slane %v1052_v56, 1 }
 0x7d1   :  { %v7564_v41 = vpop.eup %7563 }
 0x7d2   :  { %v1193_v43 = vsub.f32 1.0, %v7564_v41  ;;  %v1211_v14 = vmul.f32 %v7564_v41, %v8455_v30 }
 0x7d3   :  { %v7566_v63 = vpop.eup %7565 }
 0x7d4   :  { %v7568_v4 = vpop.eup %7567  ;;  %v1194_v6 = vsub.f32 1.0, %v7566_v63  ;;  %v1212_v46 = vmul.f32 %v7566_v63, %v8457_v42 }
 0x7d5   :  { %v1213_v49 = vmul.f32 %v7568_v4, %v8459_v37 }
 0x828   :  { %v1164_v60 = vpop.permute.xlu1 %1163 }
 0x829   :  { %v1172_v62 = vmul.f32 %v7564_v41, %v1164_v60 }
 0x82a   :  { %v1166_v0 = vpop.permute.xlu0 %1165 }
 0x82b   :  { %v1173_v1 = vmul.f32 %v7566_v63, %v1166_v0  ;;  %1178 = vrot.lane.b32.xlu0 %v1172_v62, %s7911_s25  ;;  %v1054_v62 = vmax.f32 %v1052_v56, %v1053_v59 }
 0x82c   :  { %v1168_v7 = vpop.permute.xlu1 %1167 }
 0x82d   :  { %v1174_v9 = vmul.f32 %v7568_v4, %v1168_v7  ;;  %1180 = vrot.lane.b32.xlu1 %v1173_v1, %s7911_s25  ;;  %v5291_v1 = vld [vmem:[%s10218_s5 + $0x70] sm:$0xff] }
 0x82f   :  { %1182 = vrot.lane.b32.xlu0 %v1174_v9, %s7911_s25 }
 0x89d   :  { %v1179_v10 = vpop.permute.xlu0 %1178 }
 0x89e   :  { %v1187_v13 = vadd.f32 %v1179_v10, %v816_v18 }
 0x89f   :  { %v1181_v16 = vpop.permute.xlu1 %1180 }
 0x8a0   :  { %7569 = vtanh.f32 %v1187_v13  ;;  %v1188_v17 = vadd.f32 %v1181_v16, %v791_v47  ;;  %v1195_v47 = vsub.f32 1.0, %v7568_v4  ;;  %v5292_v4 = vld [vmem:[%s10218_s5 + $0x78] sm:$0xff]  ;;  %v5293_v13 = vld [vmem:[%s10218_s5 + $0x80] sm:$0xff]  ;;  %v5294_v16 = vld [vmem:[%s10218_s5 + $0x88] sm:$0xff] }
 0x8a1   :  { %v1183_v22 = vpop.permute.xlu0 %1182  ;;  %v6889_v10 = vpack.c.bf16 %v5292_v4, %v5291_v1 }
 0x8a2   :  { %7571 = vtanh.f32 %v1188_v17  ;;  %v1189_v23 = vadd.f32 %v1183_v22, %v817_v21  ;;  %v6895_v17 = vpack.c.bf16 %v5294_v16, %v5293_v13  ;;  %v5296_v22 = vld [vmem:[%s10218_s5 + $0x98] sm:$0xff] }
 0x8a4   :  { %7573 = vtanh.f32 %v1189_v23 }
 0x8aa   :  { %v7570_v25 = vpop.eup %7569 }
 0x8ab   :  { %1199 = vrot.lane.b32.xlu1 %v7570_v25, %s7908_s2  ;;  %v5297_v25 = vld [vmem:[%s10218_s5 + $0xa0] sm:$0xff] }
 0x8ac   :  { %v7572_v27 = vpop.eup %7571 }
 0x8ad   :  { %1201 = vrot.lane.b32.xlu0 %v7572_v27, %s7908_s2  ;;  %v5298_v27 = vld [vmem:[%s10218_s5 + $0xa8] sm:$0xff] }
 0x8ae   :  { %v7574_v29 = vpop.eup %7573 }
 0x8af   :  { %1203 = vrot.lane.b32.xlu1 %v7574_v29, %s7908_s2  ;;  %v6907_v29 = vpack.c.bf16 %v5298_v27, %v5297_v25  ;;  %v5323_v27 = vld [vmem:[%s10217_s6 + $0x70] sm:$0xff] }
 0x91d   :  { %v1200_v45 = vpop.permute.xlu1 %1199 }
 0x91e   :  { %v1208_v40 = vmul.f32 %v1200_v45, %v1193_v43 }
 0x91f   :  { %v1202_v11 = vpop.permute.xlu0 %1201 }
 0x920   :  { %v1209_v18 = vmul.f32 %v1202_v11, %v1194_v6  ;;  %v8532_v21 = vadd.f32 %v1211_v14, %v1208_v40 }
 0x921   :  { %v1204_v48 = vpop.permute.xlu1 %1203 }
 0x922   :  { %v8534_v44 = vadd.f32 %v1212_v46, %v1209_v18  ;;  %v1210_v50 = vmul.f32 %v1204_v48, %v1195_v47  ;;  %v796_v46 = vadd.f32 %v8446_v12, %v8435_v24  ;;  %v8646_v48 = vadd.f32 %v8435_v24, %v8453_v20 }
 0x924   :  { %v8537_v52 = vadd.f32 %v1213_v49, %v1210_v50  ;;  %v1220_v53 = vcombine.low %v8532_v21, %v8534_v44  ;;  %v818_v18 = vcombine.high %v796_v46, %v796_v46 }
 0x926   :  { %1231 = vrot.lane.b32.xlu0 %v1220_v53, %s7908_s2  ;;  %v1222_v30 = vsel %vm1044_vm6, %v1220_v53, -inf  ;;  %v1223_v42 = vsel %vm1046_vm7, %v8537_v52, -inf  ;;  %1233 = vrot.lane.b32.xlu1 %v8537_v52, %s7908_s2 }
 0x927   :  { %v1224_v55 = vmax.f32 %v1222_v30, %v1223_v42 }
 0x929   :  { %v1225_v37 = vrot.slane %v1224_v55, 4 }
 0x92b   :  { %v1226_v57 = vmax.f32 %v1224_v55, %v1225_v37 }
 0x92d   :  { %v1227_v58 = vrot.slane %v1226_v57, 2 }
 0x92f   :  { %v1228_v41 = vmax.f32 %v1226_v57, %v1227_v58 }
 0x931   :  { %v1229_v60 = vrot.slane %v1228_v41, 1 }
 0x933   :  { %v1230_v63 = vmax.f32 %v1228_v41, %v1229_v60 }
 0x935   :  { %v8548_v0 = vsel %vm1582_vm8, %v1054_v62, %v1230_v63 }
 0x998   :  { %v1232_v7 = vpop.permute.xlu0 %1231  ;;  %v1234_v9 = vpop.permute.xlu1 %1233 }
 0x999   :  { %6163 = vmatprep.mubr.msk.f32.mxu0 %vm83_vm0, %v1232_v7 }
 0x99a   :  { %6164 = vmatmul.mubr.msk.f32.vlgmr.msra.gmra.mrb[10].mxu0 %vm83_vm0, %v1234_v9 }
 0x99b   :  { %6888 = vmatpush3.bf16.xpose.msk.msra.mxu0 %vm8010_vm1, %v6883_v28  ;;  %6217 = vmatprep.mubr.msk.f32.mxu0 %vm83_vm0, %v8367_v31  ;;  %v5295_v31 = vld [vmem:[%s10218_s5 + $0x90] sm:$0xff] }
 0x99c   :  { %6891 = vmatprep.subr.msk.bf16.mxu0 %vm8010_vm1, %v6889_v10  ;;  %v6901_v23 = vpack.c.bf16 %v5296_v22, %v5295_v31  ;;  %v5321_v22 = vld [vmem:[%s10217_s6 + $0x60] sm:$0xff] }
 0x9a3   :  { %6894 = vmatpush3.bf16.xpose.msk.msra.mxu0 %vm8010_vm1, %v6889_v10 }
 0x9a4   :  { %6897 = vmatprep.subr.msk.bf16.mxu0 %vm8010_vm1, %v6895_v17 }
 0x9ab   :  { %6900 = vmatpush3.bf16.xpose.msk.msra.mxu0 %vm8010_vm1, %v6895_v17 }
 0x9ac   :  { %6903 = vmatprep.subr.msk.bf16.mxu0 %vm8010_vm1, %v6901_v23 }
 0x9b3   :  { %6906 = vmatpush3.bf16.xpose.msk.msra.mxu0 %vm8010_vm1, %v6901_v23  ;;  %v5322_v23 = vld [vmem:[%s10217_s6 + $0x68] sm:$0xff] }
 0x9b4   :  { %6909 = vmatprep.subr.msk.bf16.mxu0 %vm8010_vm1, %v6907_v29  ;;  %v8662_v25 = vpack.c.bf16 %v5322_v23, %v5321_v22 }
 0x9b6   :  { %6921 = vmatprep.subr.msk.bf16.mxu1 %vm8010_vm1, %v8662_v25 }
 0x9bb   :  { %6912 = vmatpush3.bf16.xpose.msk.msra.mxu0 %vm8010_vm1, %v6907_v29  ;;  %v5324_v29 = vld [vmem:[%s10217_s6 + $0x78] sm:$0xff] }
 0x9bc   :  { %6915 = vmatprep.subr.msk.bf16.mxu0 %vm8010_vm1, %v6913_v35  ;;  %v8679_v26 = vpack.c.bf16 %v5324_v29, %v5323_v27 }
 0x9c3   :  { %6918 = vmatpush3.bf16.xpose.msk.msra.mxu0 %vm8010_vm1, %v6913_v35 }
 0x9c4   :  { %6957 = vmatprep.subr.msk.bf16.mxu0 %vm8010_vm1, %v8662_v25 }
 0x9ca   :  { %6218 = vmatmul.mubr.msk.f32.vlgmr.msra.gmra.mrb[12].mxu0 %vm83_vm0, %v8370_v33 }
 0x9cb   :  { %6220 = vmatprep.mubr.msk.f32.mxu0 %vm83_vm0, %v8413_v61  ;;  %v8624_v61 = vld [vmem:[%s10220_s7 + $0x1] ss:$0 sm:$0xff]  ;;  %6960 = vmatpush3.bf16.xpose.msk.msra.mxu0 %vm8010_vm1, %v8662_v25 }
 0x9cc   :  { %6963 = vmatprep.subr.msk.bf16.mxu0 %vm8010_vm1, %v8679_v26 }
 0x9ce   :  { %6221 = vmatmul.mubr.msk.f32.gmra.mrb[14].mxu0 %vm83_vm0, %v8416_v34 }
 0x9cf   :  { %6223 = vmatprep.mubr.msk.f32.mxu0 %vm83_vm0, %v8423_v38 }
 0x9d2   :  { %6224 = vmatmul.mubr.msk.f32.gmra.mrb[16].mxu0 %vm83_vm0, %v8426_v39 }
 0x9d3   :  { %6966 = vmatpush3.bf16.xpose.msk.msra.mxu0 %vm8010_vm1, %v8679_v26 }
 0xa6d   :  { %v6165_v36 = vpop.f32.mrb[10].mxu0 }
 0xa6e   :  { %v1305_v28 = vpop.f32.mrb[11].mxu0  ;;  %v1311_v33 = vadd.f32 %v6165_v36, %v8355_v3 }
 0xa6f   :  { %v1306_v32 = vadd.f32 %v8355_v3, %v1305_v28 }
 0xa70   :  { %v1320_v50 = vadd.f32 %v1311_v33, %v8646_v48 }
 0xa71   :  { %1339 = vrot.lane.b32.xlu0 %v1306_v32, %s7911_s25  ;;  %v1316_v43 = vcombine.high %v1306_v32, %v1306_v32  ;;  %v1318_v47 = vadd.f32 %v1306_v32, %v796_v46 }
 0xa72   :  { %v5271_v30 = vmul.f32 -1.442695, %v1320_v50 }
 0xa73   :  { %1341 = vrot.lane.b32.xlu1 %v1316_v43, %s7911_s25  ;;  %v1319_v49 = vadd.f32 %v1316_v43, %v818_v18  ;;  %v5269_v51 = vmul.f32 -1.442695, %v1318_v47 }
 0xa75   :  { %1343 = vrot.lane.b32.xlu0 %v1311_v33, %s7911_s25  ;;  %v5270_v53 = vmul.f32 -1.442695, %v1319_v49  ;;  %7575 = vpow2.f32 %v5269_v51  ;;  %v5325_v49 = vld [vmem:[%s10217_s6 + $0x80] sm:$0xff] }
 0xa77   :  { %7577 = vpow2.f32 %v5270_v53 }
 0xa78   :  { %7579 = vpow2.f32 %v5271_v30 }
 0xa7f   :  { %v7576_v42 = vpop.eup %7575 }
 0xa80   :  { %v1330_v55 = vadd.f32 1.0, %v7576_v42 }
 0xa81   :  { %v7578_v54 = vpop.eup %7577 }
 0xa82   :  { %v7580_v37 = vpop.eup %7579  ;;  %v1331_v12 = vadd.f32 1.0, %v7578_v54  ;;  %7581 = vrcp.f32 %v1330_v55  ;;  %v5327_v55 = vld [vmem:[%s10217_s6 + $0x90] sm:$0xff] }
 0xa83   :  { %v1332_v56 = vadd.f32 1.0, %v7580_v37  ;;  %v5328_v37 = vld [vmem:[%s10217_s6 + $0x98] sm:$0xff] }
 0xa84   :  { %7583 = vrcp.f32 %v1331_v12  ;;  %v8724_v12 = vpack.c.bf16 %v5328_v37, %v5327_v55 }
 0xa85   :  { %7585 = vrcp.f32 %v1332_v56 }
 0xa8c   :  { %v7582_v24 = vpop.eup %7581 }
 0xa8d   :  { %v1369_v15 = vsub.f32 1.0, %v7582_v24  ;;  %v1387_v43 = vmul.f32 %v7582_v24, %v8532_v21  ;;  %v5326_v21 = vld [vmem:[%s10217_s6 + $0x88] sm:$0xff] }
 0xa8e   :  { %v7584_v58 = vpop.eup %7583  ;;  %v8704_v51 = vpack.c.bf16 %v5326_v21, %v5325_v49 }
 0xa8f   :  { %v7586_v60 = vpop.eup %7585  ;;  %v1370_v28 = vsub.f32 1.0, %v7584_v58  ;;  %v1388_v33 = vmul.f32 %v7584_v58, %v8534_v44 }
 0xa90   :  { %6969 = vmatprep.subr.msk.bf16.mxu0 %vm8010_vm1, %v8704_v51 }
 0xa91   :  { %6972 = vmatpush3.bf16.xpose.msk.msra.mxu0 %vm8010_vm1, %v8704_v51 }
 0xa92   :  { %6975 = vmatprep.subr.msk.bf16.mxu0 %vm8010_vm1, %v8724_v12 }
 0xa99   :  { %6978 = vmatpush3.bf16.xpose.msk.msra.mxu0 %vm8010_vm1, %v8724_v12 }
 0xa9d   :  { %v6219_v34 = vpop.f32.mrb[12].mxu0 }
 0xa9e   :  { %v8627_v38 = vadd.f32 %v6219_v34, %v8624_v61  ;;  %v1710_v39 = vpop.f32.mrb[13].mxu0 }
 0xa9f   :  { %v8630_v45 = vadd.f32 %v8624_v61, %v1710_v39  ;;  %v1371_v39 = vsub.f32 1.0, %v7586_v60 }
 0xaa1   :  { %v6222_v40 = vpop.f32.mrb[14].mxu0 }
 0xaa2   :  { %v8633_v3 = vadd.f32 %v6222_v40, %v8624_v61  ;;  %v1720_v6 = vpop.f32.mrb[15].mxu0 }
 0xaa3   :  { %v8636_v8 = vadd.f32 %v8624_v61, %v1720_v6 }
 0xaa5   :  { %v8638_v11 = vpop.f32.mrb[16].mxu0 }
 0xaa6   :  { %v8640_v14 = vpop.f32.mrb[17].mxu0  ;;  %v1736_v27 = vadd.f32 %v8638_v11, %v8624_v61 }
 0xaa7   :  { %v8856_v23 = vadd.f32 %v8624_v61, %v8640_v14 }
 0xaa9   :  { %v1749_v29 = vcombine.high %v8856_v23, %v8856_v23 }
 0xae3   :  { %v1340_v20 = vpop.permute.xlu0 %1339 }
 0xae4   :  { %v1348_v57 = vmul.f32 %v7582_v24, %v1340_v20 }
 0xae5   :  { %v1342_v59 = vpop.permute.xlu1 %1341 }
 0xae6   :  { %v1349_v41 = vmul.f32 %v7584_v58, %v1342_v59  ;;  %1354 = vrot.lane.b32.xlu1 %v1348_v57, %s7911_s25  ;;  %v5329_v57 = vld [vmem:[%s10217_s6 + $0xa0] sm:$0xff]  ;;  %v5330_v58 = vld [vmem:[%s10217_s6 + $0xa8] sm:$0xff] }
 0xae7   :  { %v1344_v62 = vpop.permute.xlu0 %1343 }
 0xae8   :  { %v1350_v63 = vmul.f32 %v7586_v60, %v1344_v62  ;;  %1356 = vrot.lane.b32.xlu0 %v1349_v41, %s7911_s25  ;;  %v8738_v41 = vpack.c.bf16 %v5330_v58, %v5329_v57  ;;  %v5331_v62 = vld [vmem:[%s10217_s6 + $0xb0] sm:$0xff] }
 0xaea   :  { %1358 = vrot.lane.b32.xlu1 %v1350_v63, %s7911_s25  ;;  %6981 = vmatprep.subr.msk.bf16.mxu0 %vm8010_vm1, %v8738_v41  ;;  %v5332_v63 = vld [vmem:[%s10217_s6 + $0xb8] sm:$0xff] }
 0xaeb   :  { %6984 = vmatpush3.bf16.xpose.msk.msra.mxu0 %vm8010_vm1, %v8738_v41 }
 0xb58   :  { %v1355_v1 = vpop.permute.xlu1 %1354 }
 0xb59   :  { %v1363_v4 = vadd.f32 %v1355_v1, %v796_v46  ;;  %v8756_v1 = vpack.c.bf16 %v5332_v63, %v5331_v62 }
 0xb5a   :  { %v1357_v7 = vpop.permute.xlu0 %1356 }
 0xb5b   :  { %7587 = vtanh.f32 %v1363_v4  ;;  %v1364_v9 = vadd.f32 %v1357_v7, %v818_v18  ;;  %v1389_v18 = vmul.f32 %v7586_v60, %v8537_v52  ;;  %6987 = vmatprep.subr.msk.bf16.mxu0 %vm8010_vm1, %v8756_v1 }
 0xb5c   :  { %v1359_v10 = vpop.permute.xlu1 %1358  ;;  %6990 = vmatpush3.bf16.xpose.msk.msra.mxu0 %vm8010_vm1, %v8756_v1 }
 0xb5d   :  { %7589 = vtanh.f32 %v1364_v9  ;;  %v1365_v13 = vadd.f32 %v1359_v10, %v8646_v48  ;;  %7029 = vmatprep.subr.msk.bf16.mxu0 %vm8010_vm1, %v8662_v25  ;;  %v8847_v10 = vld [vmem:[%s10219_s8 + $0x1] ss:$0 sm:$0xff] }
 0xb5f   :  { %7591 = vtanh.f32 %v1365_v13 }
 0xb65   :  { %v7588_v16 = vpop.eup %7587 }
 0xb66   :  { %1375 = vrot.lane.b32.xlu0 %v7588_v16, %s7908_s2 }
 0xb67   :  { %v7590_v17 = vpop.eup %7589 }
 0xb68   :  { %1377 = vrot.lane.b32.xlu1 %v7590_v17, %s7908_s2 }
 0xb69   :  { %v7592_v31 = vpop.eup %7591 }
 0xb6a   :  { %1379 = vrot.lane.b32.xlu0 %v7592_v31, %s7908_s2 }
 0xbd8   :  { %v1376_v35 = vpop.permute.xlu0 %1375 }
 0xbd9   :  { %v1384_v36 = vmul.f32 %v1376_v35, %v1369_v15  ;;  %v1750_v35 = vcombine.high %v1736_v27, %v1736_v27 }
 0xbda   :  { %v1378_v32 = vpop.permute.xlu1 %1377 }
 0xbdb   :  { %v1385_v34 = vmul.f32 %v1378_v32, %v1370_v28  ;;  %v8686_v6 = vadd.f32 %v1387_v43, %v1384_v36 }
 0xbdc   :  { %v1380_v40 = vpop.permute.xlu0 %1379 }
 0xbdd   :  { %v8688_v46 = vadd.f32 %v1388_v33, %v1385_v34  ;;  %v1386_v47 = vmul.f32 %v1380_v40, %v1371_v39 }
 0xbdf   :  { %v8700_v44 = vadd.f32 %v1389_v18, %v1386_v47  ;;  %v1396_v50 = vcombine.low %v8686_v6, %v8688_v46 }
 0xbe1   :  { %1407 = vrot.lane.b32.xlu1 %v1396_v50, %s7908_s2  ;;  %v1398_v52 = vsel %vm1044_vm6, %v1396_v50, -inf  ;;  %v1399_v53 = vsel %vm1046_vm7, %v8700_v44, -inf  ;;  %1409 = vrot.lane.b32.xlu0 %v8700_v44, %s7908_s2 }
 0xbe2   :  { %v1400_v30 = vmax.f32 %v1398_v52, %v1399_v53 }
 0xbe4   :  { %v1401_v42 = vrot.slane %v1400_v30, 4 }
 0xbe6   :  { %v1402_v54 = vmax.f32 %v1400_v30, %v1401_v42 }
 0xbe8   :  { %v1403_v56 = vrot.slane %v1402_v54, 2 }
 0xbea   :  { %v1404_v24 = vmax.f32 %v1402_v54, %v1403_v56 }
 0xbec   :  { %v1405_v20 = vrot.slane %v1404_v24, 1 }
 0xbee   :  { %v1406_v59 = vmax.f32 %v1404_v24, %v1405_v20 }
 0xbf0   :  { %v8742_v60 = vsel %vm537_vm2, %v8548_v0, %v1406_v59 }
 0xc53   :  { %v1408_v0 = vpop.permute.xlu1 %1407  ;;  %v1410_v4 = vpop.permute.xlu0 %1409 }
 0xc54   :  { %6190 = vmatprep.mubr.msk.f32.mxu1 %vm83_vm0, %v1408_v0 }
 0xc55   :  { %6191 = vmatmul.mubr.msk.f32.vlgmr.msra.gmra.mrb[20].mxu1 %vm83_vm0, %v1410_v4 }
 0xc56   :  { %6924 = vmatpush3.bf16.xpose.msk.msra.mxu1 %vm8010_vm1, %v8662_v25  ;;  %6250 = vmatprep.mubr.f32.mxu1 %v7910_v5 }
 0xc57   :  { %6927 = vmatprep.subr.msk.bf16.mxu1 %vm8010_vm1, %v8679_v26 }
 0xc5e   :  { %6930 = vmatpush3.bf16.xpose.msk.msra.mxu1 %vm8010_vm1, %v8679_v26 }
 0xc5f   :  { %6933 = vmatprep.subr.msk.bf16.mxu1 %vm8010_vm1, %v8704_v51 }
 0xc66   :  { %6936 = vmatpush3.bf16.xpose.msk.msra.mxu1 %vm8010_vm1, %v8704_v51 }
 0xc67   :  { %6939 = vmatprep.subr.msk.bf16.mxu1 %vm8010_vm1, %v8724_v12 }
 0xc6e   :  { %6942 = vmatpush3.bf16.xpose.msk.msra.mxu1 %vm8010_vm1, %v8724_v12 }
 0xc6f   :  { %6945 = vmatprep.subr.msk.bf16.mxu1 %vm8010_vm1, %v8738_v41 }
 0xc76   :  { %6948 = vmatpush3.bf16.xpose.msk.msra.mxu1 %vm8010_vm1, %v8738_v41 }
 0xc77   :  { %6951 = vmatprep.subr.msk.bf16.mxu1 %vm8010_vm1, %v8756_v1 }
 0xc7e   :  { %6954 = vmatpush3.bf16.xpose.msk.msra.mxu1 %vm8010_vm1, %v8756_v1 }
 0xc7f   :  { %6993 = vmatprep.subr.msk.bf16.mxu1 %vm8010_vm1, %v8662_v25 }
 0xc85   :  { %6251 = vmatmul.mubr.f32.vlgmr.msra.gmra.mrb[22].mxu1 %v7910_v5 }
 0xc86   :  { %6996 = vmatpush3.bf16.xpose.msk.msra.mxu1 %vm8010_vm1, %v8662_v25 }
 0xc87   :  { %6999 = vmatprep.subr.msk.bf16.mxu1 %vm8010_vm1, %v8679_v26 }
 0xc8e   :  { %7002 = vmatpush3.bf16.xpose.msk.msra.mxu1 %vm8010_vm1, %v8679_v26 }
 0xc8f   :  { %7005 = vmatprep.subr.msk.bf16.mxu1 %vm8010_vm1, %v8704_v51 }
 0xc96   :  { %7008 = vmatpush3.bf16.xpose.msk.msra.mxu1 %vm8010_vm1, %v8704_v51 }
 0xc97   :  { %7011 = vmatprep.subr.msk.bf16.mxu1 %vm8010_vm1, %v8724_v12 }
 0xc9e   :  { %7014 = vmatpush3.bf16.xpose.msk.msra.mxu1 %vm8010_vm1, %v8724_v12 }
 0xc9f   :  { %7017 = vmatprep.subr.msk.bf16.mxu1 %vm8010_vm1, %v8738_v41 }
 0xca6   :  { %7020 = vmatpush3.bf16.xpose.msk.msra.mxu1 %vm8010_vm1, %v8738_v41 }
 0xca7   :  { %7023 = vmatprep.subr.msk.bf16.mxu1 %vm8010_vm1, %v8756_v1 }
 0xcae   :  { %7026 = vmatpush3.bf16.xpose.msk.msra.mxu1 %vm8010_vm1, %v8756_v1 }
 0xd28   :  { %v8840_v7 = vpop.f32.mrb[20].mxu1 }
 0xd29   :  { %v8842_v9 = vpop.f32.mrb[21].mxu1 }
 0xd58   :  { %v6252_v13 = vpop.f32.mrb[22].mxu1 }
 0xd59   :  { %v1880_v16 = vpop.f32.mrb[23].mxu1  ;;  %v1886_v22 = vadd.f32 %v6252_v13, %v8847_v10 }
 0xd5a   :  { %v1881_v17 = vadd.f32 %v8847_v10, %v1880_v16 }
 0xd5b   :  { %v1895_v28 = vadd.f32 %v1886_v22, %v1750_v35 }
 0xd5c   :  { %1914 = vrot.lane.b32.xlu1 %v1881_v17, %s7911_s25  ;;  %v1891_v31 = vcombine.high %v1881_v17, %v1881_v17  ;;  %v1893_v15 = vadd.f32 %v1881_v17, %v1749_v29 }
 0xd5d   :  { %v5349_v33 = vmul.f32 -1.442695, %v1895_v28 }
 0xd5e   :  { %1916 = vrot.lane.b32.xlu0 %v1891_v31, %s7911_s25  ;;  %v1894_v36 = vadd.f32 %v1891_v31, %v1736_v27  ;;  %v5347_v32 = vmul.f32 -1.442695, %v1893_v15 }
 0xd60   :  { %1918 = vrot.lane.b32.xlu1 %v1886_v22, %s7911_s25  ;;  %v5348_v43 = vmul.f32 -1.442695, %v1894_v36  ;;  %7593 = vpow2.f32 %v5347_v32 }
 0xd62   :  { %7595 = vpow2.f32 %v5348_v43 }
 0xd63   :  { %7597 = vpow2.f32 %v5349_v33 }
 0xd6a   :  { %v7594_v34 = vpop.eup %7593 }
 0xd6b   :  { %v1905_v14 = vadd.f32 1.0, %v7594_v34 }
 0xd6c   :  { %v7596_v39 = vpop.eup %7595 }
 0xd6d   :  { %v7598_v40 = vpop.eup %7597  ;;  %v1906_v18 = vadd.f32 1.0, %v7596_v39  ;;  %7599 = vrcp.f32 %v1905_v14 }
 0xd6e   :  { %v1907_v47 = vadd.f32 1.0, %v7598_v40 }
 0xd6f   :  { %7601 = vrcp.f32 %v1906_v18 }
 0xd70   :  { %7603 = vrcp.f32 %v1907_v47 }
 0xd77   :  { %v7600_v61 = vpop.eup %7599 }
 0xd78   :  { %v1944_v62 = vsub.f32 1.0, %v7600_v61  ;;  %v1962_v16 = vmul.f32 0.0, %v7600_v61 }
 0xd79   :  { %v7602_v21 = vpop.eup %7601 }
 0xd7a   :  { %v7604_v53 = vpop.eup %7603  ;;  %v1945_v4 = vsub.f32 1.0, %v7602_v21  ;;  %v1963_v17 = vmul.f32 0.0, %v7602_v21 }
 0xd7b   :  { %v1946_v22 = vsub.f32 1.0, %v7604_v53 }
 0xdce   :  { %v1915_v11 = vpop.permute.xlu1 %1914 }
 0xdcf   :  { %v1923_v49 = vmul.f32 %v7600_v61, %v1915_v11 }
 0xdd0   :  { %v1917_v50 = vpop.permute.xlu0 %1916 }
 0xdd1   :  { %v1924_v52 = vmul.f32 %v7602_v21, %v1917_v50  ;;  %1929 = vrot.lane.b32.xlu0 %v1923_v49, %s7911_s25 }
 0xdd2   :  { %v1919_v30 = vpop.permute.xlu1 %1918 }
 0xdd3   :  { %v1925_v42 = vmul.f32 %v7604_v53, %v1919_v30  ;;  %1931 = vrot.lane.b32.xlu1 %v1924_v52, %s7911_s25 }
 0xdd5   :  { %1933 = vrot.lane.b32.xlu0 %v1925_v42, %s7911_s25 }
 0xe43   :  { %v1930_v54 = vpop.permute.xlu0 %1929 }
 0xe44   :  { %v1938_v55 = vadd.f32 %v1930_v54, %v1749_v29 }
 0xe45   :  { %v1932_v37 = vpop.permute.xlu1 %1931 }
 0xe46   :  { %7605 = vtanh.f32 %v1938_v55  ;;  %v1939_v56 = vadd.f32 %v1932_v37, %v1736_v27 }
 0xe47   :  { %v1934_v24 = vpop.permute.xlu0 %1933 }
 0xe48   :  { %7607 = vtanh.f32 %v1939_v56  ;;  %v1940_v20 = vadd.f32 %v1934_v24, %v1750_v35  ;;  %v1964_v35 = vmul.f32 0.0, %v7604_v53 }
 0xe4a   :  { %7609 = vtanh.f32 %v1940_v20 }
 0xe50   :  { %v7606_v57 = vpop.eup %7605 }
 0xe51   :  { %1950 = vrot.lane.b32.xlu1 %v7606_v57, %s7908_s2 }
 0xe52   :  { %v7608_v58 = vpop.eup %7607 }
 0xe53   :  { %1952 = vrot.lane.b32.xlu0 %v7608_v58, %s7908_s2 }
 0xe54   :  { %v7610_v59 = vpop.eup %7609 }
 0xe55   :  { %1954 = vrot.lane.b32.xlu1 %v7610_v59, %s7908_s2 }
 0xec3   :  { %v1951_v63 = vpop.permute.xlu1 %1950 }
 0xec4   :  { %v1959_v0 = vmul.f32 %v1951_v63, %v1944_v62 }
 0xec5   :  { %v1953_v13 = vpop.permute.xlu0 %1952 }
 0xec6   :  { %v1960_v31 = vmul.f32 %v1953_v13, %v1945_v4  ;;  %v8868_v29 = vadd.f32 %v1962_v16, %v1959_v0 }
 0xec7   :  { %v1955_v27 = vpop.permute.xlu1 %1954 }
 0xec8   :  { %v8870_v15 = vadd.f32 %v1963_v17, %v1960_v31  ;;  %v1961_v36 = vmul.f32 %v1955_v27, %v1946_v22 }
 0xeca   :  { %v8872_v28 = vadd.f32 %v1964_v35, %v1961_v36  ;;  %v8876_v32 = vcombine.low %v8868_v29, %v8870_v15 }
 0xecc   :  { %1982 = vrot.lane.b32.xlu0 %v8876_v32, %s7908_s2  ;;  %1984 = vrot.lane.b32.xlu1 %v8872_v28, %s7908_s2 }
 0xf3e   :  { %v1983_v43 = vpop.permute.xlu0 %1982  ;;  %v1985_v33 = vpop.permute.xlu1 %1984 }
 0xf3f   :  { %6277 = vmatprep.mubr.msk.f32.mxu0 %vm83_vm0, %v1983_v43 }
 0xf40   :  { %6278 = vmatmul.mubr.msk.f32.vlgmr.msra.gmra.mrb[18].mxu0 %vm83_vm0, %v1985_v33 }
 0xf41   :  { %7032 = vmatpush3.bf16.xpose.msk.msra.mxu0 %vm8010_vm1, %v8662_v25 }
 0xf42   :  { %7035 = vmatprep.subr.msk.bf16.mxu0 %vm8010_vm1, %v8679_v26 }
 0xf49   :  { %7038 = vmatpush3.bf16.xpose.msk.msra.mxu0 %vm8010_vm1, %v8679_v26 }
 0xf4a   :  { %7041 = vmatprep.subr.msk.bf16.mxu0 %vm8010_vm1, %v8704_v51 }
 0xf51   :  { %7044 = vmatpush3.bf16.xpose.msk.msra.mxu0 %vm8010_vm1, %v8704_v51 }
 0xf52   :  { %7047 = vmatprep.subr.msk.bf16.mxu0 %vm8010_vm1, %v8724_v12 }
 0xf59   :  { %7050 = vmatpush3.bf16.xpose.msk.msra.mxu0 %vm8010_vm1, %v8724_v12 }
 0xf5a   :  { %7053 = vmatprep.subr.msk.bf16.mxu0 %vm8010_vm1, %v8738_v41 }
 0xf61   :  { %7056 = vmatpush3.bf16.xpose.msk.msra.mxu0 %vm8010_vm1, %v8738_v41  ;;  %v1748_v41 = vcombine.high %v8633_v3, %v8633_v3 }
 0xf62   :  { %7059 = vmatprep.subr.msk.bf16.mxu0 %vm8010_vm1, %v8756_v1 }
 0xf69   :  { %7062 = vmatpush3.bf16.xpose.msk.msra.mxu0 %vm8010_vm1, %v8756_v1 }
0x1013   :  { %v6279_v25 = vpop.f32.mrb[18].mxu0 }
0x1014   :  { %v2056_v26 = vpop.f32.mrb[19].mxu0  ;;  %v2062_v34 = vadd.f32 %v6279_v25, %v8847_v10 }
0x1015   :  { %v2057_v51 = vadd.f32 %v8847_v10, %v2056_v26 }
0x1016   :  { %v2071_v1 = vadd.f32 %v2062_v34, %v8856_v23 }
0x1017   :  { %2090 = vrot.lane.b32.xlu0 %v2057_v51, %s7911_s25  ;;  %v2067_v12 = vcombine.high %v2057_v51, %v2057_v51  ;;  %v2069_v39 = vadd.f32 %v2057_v51, %v8633_v3 }
0x1018   :  { %v5366_v47 = vmul.f32 -1.442695, %v2071_v1 }
0x1019   :  { %2092 = vrot.lane.b32.xlu1 %v2067_v12, %s7911_s25  ;;  %v2070_v14 = vadd.f32 %v2067_v12, %v1748_v41  ;;  %v5364_v40 = vmul.f32 -1.442695, %v2069_v39  ;;  %v7899_v39 = vld [vmem:[%s10239_s20 + $0x10] sm:$0xff] }
0x101b   :  { %2094 = vrot.lane.b32.xlu0 %v2062_v34, %s7911_s25  ;;  %v5365_v18 = vmul.f32 -1.442695, %v2070_v14  ;;  %7611 = vpow2.f32 %v5364_v40 }
0x101d   :  { %7613 = vpow2.f32 %v5365_v18 }
0x101e   :  { %7615 = vpow2.f32 %v5366_v47 }
0x1025   :  { %v7612_v61 = vpop.eup %7611 }
0x1026   :  { %v2081_v49 = vadd.f32 1.0, %v7612_v61  ;;  %v1746_v61 = vcombine.high %v8627_v38, %v8627_v38 }
0x1027   :  { %v7614_v11 = vpop.eup %7613 }
0x1028   :  { %v7616_v21 = vpop.eup %7615  ;;  %v2082_v50 = vadd.f32 1.0, %v7614_v11  ;;  %7617 = vrcp.f32 %v2081_v49  ;;  %v1747_v49 = vcombine.high %v8636_v8, %v8636_v8 }
0x1029   :  { %v2083_v52 = vadd.f32 1.0, %v7616_v21 }
0x102a   :  { %7619 = vrcp.f32 %v2082_v50 }
0x102b   :  { %7621 = vrcp.f32 %v2083_v52 }
0x1032   :  { %v7618_v53 = vpop.eup %7617 }
0x1033   :  { %v2120_v17 = vsub.f32 1.0, %v7618_v53  ;;  %v2138_v35 = vmul.f32 %v7618_v53, %v8868_v29 }
0x1034   :  { %v7620_v54 = vpop.eup %7619 }
0x1035   :  { %v7622_v56 = vpop.eup %7621  ;;  %v2121_v22 = vsub.f32 1.0, %v7620_v54  ;;  %v2139_v36 = vmul.f32 %v7620_v54, %v8870_v15 }
0x1036   :  { %v2122_v43 = vsub.f32 1.0, %v7622_v56  ;;  %v2140_v51 = vmul.f32 %v7622_v56, %v8872_v28 }
0x1089   :  { %v2091_v30 = vpop.permute.xlu0 %2090 }
0x108a   :  { %v2099_v42 = vmul.f32 %v7618_v53, %v2091_v30 }
0x108b   :  { %v2093_v55 = vpop.permute.xlu1 %2092 }
0x108c   :  { %v2100_v37 = vmul.f32 %v7620_v54, %v2093_v55  ;;  %2105 = vrot.lane.b32.xlu1 %v2099_v42, %s7911_s25 }
0x108d   :  { %v2095_v24 = vpop.permute.xlu0 %2094 }
0x108e   :  { %v2101_v20 = vmul.f32 %v7622_v56, %v2095_v24  ;;  %2107 = vrot.lane.b32.xlu0 %v2100_v37, %s7911_s25 }
0x1090   :  { %2109 = vrot.lane.b32.xlu1 %v2101_v20, %s7911_s25 }
0x10fe   :  { %v2106_v57 = vpop.permute.xlu1 %2105 }
0x10ff   :  { %v2114_v58 = vadd.f32 %v2106_v57, %v8633_v3 }
0x1100   :  { %v2108_v59 = vpop.permute.xlu0 %2107 }
0x1101   :  { %7623 = vtanh.f32 %v2114_v58  ;;  %v2115_v62 = vadd.f32 %v2108_v59, %v1748_v41 }
0x1102   :  { %v2110_v63 = vpop.permute.xlu1 %2109 }
0x1103   :  { %7625 = vtanh.f32 %v2115_v62  ;;  %v2116_v0 = vadd.f32 %v2110_v63, %v8856_v23 }
0x1105   :  { %7627 = vtanh.f32 %v2116_v0 }
0x110b   :  { %v7624_v4 = vpop.eup %7623 }
0x110c   :  { %2126 = vrot.lane.b32.xlu0 %v7624_v4, %s7908_s2 }
0x110d   :  { %v7626_v13 = vpop.eup %7625 }
0x110e   :  { %2128 = vrot.lane.b32.xlu1 %v7626_v13, %s7908_s2 }
0x110f   :  { %v7628_v16 = vpop.eup %7627 }
0x1110   :  { %2130 = vrot.lane.b32.xlu0 %v7628_v16, %s7908_s2 }
0x117e   :  { %v2127_v31 = vpop.permute.xlu0 %2126 }
0x117f   :  { %v2135_v3 = vmul.f32 %v2127_v31, %v2120_v17 }
0x1180   :  { %v2129_v27 = vpop.permute.xlu1 %2128 }
0x1181   :  { %v2136_v23 = vmul.f32 %v2129_v27, %v2121_v22  ;;  %v8936_v25 = vadd.f32 %v2138_v35, %v2135_v3 }
0x1182   :  { %v2131_v33 = vpop.permute.xlu0 %2130 }
0x1183   :  { %v8938_v26 = vadd.f32 %v2139_v36, %v2136_v23  ;;  %v2137_v12 = vmul.f32 %v2131_v33, %v2122_v43 }
0x1185   :  { %v8941_v34 = vadd.f32 %v2140_v51, %v2137_v12  ;;  %v8945_v41 = vcombine.low %v8936_v25, %v8938_v26 }
0x1187   :  { %2158 = vrot.lane.b32.xlu1 %v8945_v41, %s7908_s2  ;;  %2160 = vrot.lane.b32.xlu0 %v8941_v34, %s7908_s2 }
0x11f9   :  { %v2159_v29 = vpop.permute.xlu1 %2158  ;;  %v2161_v15 = vpop.permute.xlu0 %2160 }
0x11fa   :  { %6304 = vmatprep.mubr.msk.f32.mxu1 %vm83_vm0, %v2159_v29 }
0x11fb   :  { %6305 = vmatmul.mubr.msk.f32.vlgmr.msra.gmra.mrb[24].mxu1 %vm83_vm0, %v2161_v15 }
0x11fc   :  { %6350 = vmatprep.mubr.msk.f32.mxu1 %vm83_vm0, %v7899_v39 }
0x12ce   :  { %v6306_v14 = vpop.f32.mrb[24].mxu1 }
0x12cf   :  { %v2232_v1 = vpop.f32.mrb[25].mxu1  ;;  %v2238_v47 = vadd.f32 %v6306_v14, %v8847_v10 }
0x12d0   :  { %v2233_v40 = vadd.f32 %v8847_v10, %v2232_v1 }
0x12d1   :  { %v2247_v50 = vadd.f32 %v2238_v47, %v1747_v49 }
0x12d2   :  { %2266 = vrot.lane.b32.xlu1 %v2233_v40, %s7911_s25  ;;  %v2243_v18 = vcombine.high %v2233_v40, %v2233_v40  ;;  %v2245_v11 = vadd.f32 %v2233_v40, %v1746_v61 }
0x12d3   :  { %v5383_v30 = vmul.f32 -1.442695, %v2247_v50 }
0x12d4   :  { %2268 = vrot.lane.b32.xlu0 %v2243_v18, %s7911_s25  ;;  %v2246_v21 = vadd.f32 %v2243_v18, %v8636_v8  ;;  %v5381_v52 = vmul.f32 -1.442695, %v2245_v11  ;;  %v7900_v11 = vld [vmem:[%s10219_s8] ss:$0 sm:$0xff] }
0x12d5   :  { %v1487_v50 = vadd.f32 %v7900_v11, %v8840_v7 }
0x12d6   :  { %2270 = vrot.lane.b32.xlu1 %v2238_v47, %s7911_s25  ;;  %v5382_v53 = vmul.f32 -1.442695, %v2246_v21  ;;  %7629 = vpow2.f32 %v5381_v52 }
0x12d8   :  { %7631 = vpow2.f32 %v5382_v53  ;;  %v7901_v53 = vld [vmem:[%s10220_s7] ss:$0 sm:$0xff] }
0x12d9   :  { %7633 = vpow2.f32 %v5383_v30  ;;  %v9005_v30 = vadd.f32 %v7901_v53, %v8450_v19 }
0x12e0   :  { %v7630_v42 = vpop.eup %7629 }
0x12e1   :  { %v2257_v55 = vadd.f32 1.0, %v7630_v42  ;;  %v9009_v42 = vcombine.high %v8646_v48, %v8646_v48 }
0x12e2   :  { %v7632_v54 = vpop.eup %7631 }
0x12e3   :  { %v7634_v37 = vpop.eup %7633  ;;  %v2258_v56 = vadd.f32 1.0, %v7632_v54  ;;  %7635 = vrcp.f32 %v2257_v55  ;;  %v9015_v55 = vcombine.high %v9005_v30, %v9005_v30 }
0x12e4   :  { %v2259_v24 = vadd.f32 1.0, %v7634_v37 }
0x12e5   :  { %7637 = vrcp.f32 %v2258_v56  ;;  %v1496_v37 = vadd.f32 %v1487_v50, %v9015_v55 }
0x12e6   :  { %7639 = vrcp.f32 %v2259_v24 }
0x12ed   :  { %v7636_v20 = vpop.eup %7635 }
0x12ee   :  { %v2296_v43 = vsub.f32 1.0, %v7636_v20 }
0x12ef   :  { %v7638_v59 = vpop.eup %7637 }
0x12f0   :  { %v7640_v0 = vpop.eup %7639  ;;  %v2297_v12 = vsub.f32 1.0, %v7638_v59  ;;  %v2315_v15 = vmul.f32 %v7638_v59, %v8938_v26 }
0x12f1   :  { %v2298_v14 = vsub.f32 1.0, %v7640_v0  ;;  %v2316_v47 = vmul.f32 %v7640_v0, %v8941_v34 }
0x1344   :  { %v2267_v57 = vpop.permute.xlu1 %2266 }
0x1345   :  { %v2275_v58 = vmul.f32 %v7636_v20, %v2267_v57 }
0x1346   :  { %v2269_v62 = vpop.permute.xlu0 %2268 }
0x1347   :  { %v2276_v63 = vmul.f32 %v7638_v59, %v2269_v62  ;;  %2281 = vrot.lane.b32.xlu0 %v2275_v58, %s7911_s25 }
0x1348   :  { %v2271_v4 = vpop.permute.xlu1 %2270 }
0x1349   :  { %v2277_v13 = vmul.f32 %v7640_v0, %v2271_v4  ;;  %2283 = vrot.lane.b32.xlu1 %v2276_v63, %s7911_s25 }
0x134b   :  { %2285 = vrot.lane.b32.xlu0 %v2277_v13, %s7911_s25 }
0x13b9   :  { %v2282_v16 = vpop.permute.xlu0 %2281 }
0x13ba   :  { %v2290_v17 = vadd.f32 %v2282_v16, %v1746_v61 }
0x13bb   :  { %v2284_v31 = vpop.permute.xlu1 %2283 }
0x13bc   :  { %7641 = vtanh.f32 %v2290_v17  ;;  %v2291_v3 = vadd.f32 %v2284_v31, %v8636_v8  ;;  %v2314_v8 = vmul.f32 %v7636_v20, %v8936_v25  ;;  %v5288_v20 = vmul.f32 -1.442695, %v1496_v37 }
0x13bd   :  { %v2286_v22 = vpop.permute.xlu0 %2285 }
0x13be   :  { %7643 = vtanh.f32 %v2291_v3  ;;  %v2292_v27 = vadd.f32 %v2286_v22, %v1747_v49  ;;  %v1482_v49 = vadd.f32 %v7900_v11, %v8842_v9 }
0x13c0   :  { %7645 = vtanh.f32 %v2292_v27  ;;  %v1492_v26 = vcombine.high %v1482_v49, %v1482_v49  ;;  %v1494_v7 = vadd.f32 %v1482_v49, %v9009_v42 }
0x13c2   :  { %v1495_v54 = vadd.f32 %v1492_v26, %v9005_v30  ;;  %v5286_v56 = vmul.f32 -1.442695, %v1494_v7 }
0x13c4   :  { %v5287_v24 = vmul.f32 -1.442695, %v1495_v54  ;;  %7647 = vpow2.f32 %v5286_v56 }
0x13c6   :  { %v7642_v35 = vpop.eup %7641  ;;  %7649 = vpow2.f32 %v5287_v24 }
0x13c7   :  { %2302 = vrot.lane.b32.xlu1 %v7642_v35, %s7908_s2  ;;  %7651 = vpow2.f32 %v5288_v20 }
0x13c8   :  { %v7644_v36 = vpop.eup %7643 }
0x13c9   :  { %2304 = vrot.lane.b32.xlu0 %v7644_v36, %s7908_s2 }
0x13ca   :  { %v7646_v23 = vpop.eup %7645 }
0x13cb   :  { %2306 = vrot.lane.b32.xlu1 %v7646_v23, %s7908_s2 }
0x13ce   :  { %v7648_v19 = vpop.eup %7647 }
0x13cf   :  { %v1506_v48 = vadd.f32 1.0, %v7648_v19 }
0x13d0   :  { %v7650_v57 = vpop.eup %7649 }
0x13d1   :  { %v7652_v58 = vpop.eup %7651  ;;  %v1507_v59 = vadd.f32 1.0, %v7650_v57  ;;  %7653 = vrcp.f32 %v1506_v48 }
0x13d2   :  { %v1508_v62 = vadd.f32 1.0, %v7652_v58 }
0x13d3   :  { %7655 = vrcp.f32 %v1507_v59 }
0x13d4   :  { %7657 = vrcp.f32 %v1508_v62 }
0x13db   :  { %v9022_v3 = vpop.eup %7653 }
0x13dd   :  { %v9025_v22 = vpop.eup %7655 }
0x1439   :  { %v2303_v33 = vpop.permute.xlu1 %2302 }
0x143a   :  { %v2311_v51 = vmul.f32 %v2303_v33, %v2296_v43  ;;  %v1745_v43 = vcombine.high %v8630_v45, %v8630_v45 }
0x143b   :  { %v2305_v29 = vpop.permute.xlu0 %2304 }
0x143c   :  { %v2312_v39 = vmul.f32 %v2305_v29, %v2297_v12  ;;  %v8976_v40 = vadd.f32 %v2314_v8, %v2311_v51 }
0x143d   :  { %v2307_v1 = vpop.permute.xlu1 %2306 }
0x143e   :  { %v8978_v18 = vadd.f32 %v2315_v15, %v2312_v39  ;;  %v2313_v61 = vmul.f32 %v2307_v1, %v2298_v14 }
0x1440   :  { %v8985_v21 = vadd.f32 %v2316_v47, %v2313_v61  ;;  %v8989_v25 = vcombine.low %v8976_v40, %v8978_v18 }
0x1442   :  { %2334 = vrot.lane.b32.xlu0 %v8989_v25, %s7908_s2  ;;  %2336 = vrot.lane.b32.xlu1 %v8985_v21, %s7908_s2 }
0x1446   :  { %1515 = vrot.lane.b32.xlu0 %v1482_v49, %s7911_s25  ;;  %1517 = vrot.lane.b32.xlu1 %v1492_v26, %s7911_s25 }
0x144a   :  { %1519 = vrot.lane.b32.xlu0 %v1487_v50, %s7911_s25 }
0x14b4   :  { %v2335_v9 = vpop.permute.xlu0 %2334  ;;  %v2337_v52 = vpop.permute.xlu1 %2336 }
0x14b5   :  { %6331 = vmatprep.mubr.msk.f32.mxu0 %vm83_vm0, %v2335_v9 }
0x14b6   :  { %6332 = vmatmul.mubr.msk.f32.vlgmr.msra.gmra.mrb[20].mxu0 %vm83_vm0, %v2337_v52 }
0x14b8   :  { %v1516_v16 = vpop.permute.xlu0 %1515  ;;  %v1518_v31 = vpop.permute.xlu1 %1517 }
0x14b9   :  { %v1524_v27 = vmul.f32 %v9022_v3, %v1516_v16  ;;  %v1525_v35 = vmul.f32 %v9025_v22, %v1518_v31 }
0x14bc   :  { %v1520_v36 = vpop.permute.xlu0 %1519 }
0x1589   :  { %v6333_v63 = vpop.f32.mrb[20].mxu0 }
0x158a   :  { %v2414_v0 = vadd.f32 %v6333_v63, %v8847_v10  ;;  %v2408_v4 = vpop.f32.mrb[21].mxu0 }
0x158b   :  { %v2409_v13 = vadd.f32 %v8847_v10, %v2408_v4  ;;  %v9030_v10 = vpop.eup %7657 }
0x158c   :  { %2446 = vrot.lane.b32.xlu1 %v2414_v0, %s7911_s25  ;;  %v1526_v23 = vmul.f32 %v9030_v10, %v1520_v36  ;;  %v2423_v29 = vadd.f32 %v2414_v0, %v8627_v38 }
0x158d   :  { %v2419_v17 = vcombine.high %v2409_v13, %v2409_v13  ;;  %v2421_v51 = vadd.f32 %v2409_v13, %v8630_v45 }
0x158e   :  { %v5400_v15 = vmul.f32 -1.442695, %v2423_v29 }
0x158f   :  { %2444 = vrot.lane.b32.xlu0 %v2419_v17, %s7911_s25  ;;  %v2422_v33 = vadd.f32 %v2419_v17, %v1745_v43  ;;  %v5398_v8 = vmul.f32 -1.442695, %v2421_v51  ;;  %v1545_v17 = vsub.f32 1.0, %v9022_v3  ;;  %v1547_v51 = vsub.f32 1.0, %v9030_v10 }
0x1590   :  { %2442 = vrot.lane.b32.xlu1 %v2409_v13, %s7911_s25 }
0x1591   :  { %v5399_v12 = vmul.f32 -1.442695, %v2422_v33 }
0x1593   :  { %1530 = vrot.lane.b32.xlu0 %v1524_v27, %s7911_s25  ;;  %7659 = vpow2.f32 %v5399_v12  ;;  %v1546_v27 = vsub.f32 1.0, %v9025_v22 }
0x1594   :  { %1532 = vrot.lane.b32.xlu1 %v1525_v35, %s7911_s25  ;;  %7661 = vpow2.f32 %v5398_v8  ;;  %v1565_v8 = vmul.f32 %v9030_v10, %v8700_v44  ;;  %v22_v44 = vstv %s10221_s14  ;;  %v2325_v10 = vsel %vm1044_vm6, %v8989_v25, -inf }
0x1595   :  { %7663 = vpow2.f32 %v5400_v15  ;;  %23 = vst [vmem:[#allocation2] sm:$0x1] %v22_v44  ;;  %v2579_v44 = vld [vmem:[%s10223_s3] sm:$0xff] }
0x1597   :  { %1534 = vrot.lane.b32.xlu0 %v1526_v23, %s7911_s25 }
0x159d   :  { %v7660_v39 = vpop.eup %7659 }
0x159e   :  { %v7662_v14 = vpop.eup %7661  ;;  %v2434_v1 = vadd.f32 1.0, %v7660_v39 }
0x159f   :  { %v2433_v47 = vadd.f32 1.0, %v7662_v14  ;;  %v7664_v61 = vpop.eup %7663 }
0x15a0   :  { %7665 = vrcp.f32 %v2434_v1  ;;  %v2435_v11 = vadd.f32 1.0, %v7664_v61 }
0x15a1   :  { %7667 = vrcp.f32 %v2433_v47 }
0x15a2   :  { %7669 = vrcp.f32 %v2435_v11 }
0x15aa   :  { %v9039_v26 = vpop.eup %7665 }
0x15ab   :  { %v9041_v9 = vpop.eup %7667 }
0x15ac   :  { %v9047_v37 = vpop.eup %7669 }
0x15fe   :  { %v2447_v49 = vpop.permute.xlu1 %2446 }
0x15ff   :  { %v2453_v20 = vmul.f32 %v9047_v37, %v2447_v49 }
0x1601   :  { %v2445_v50 = vpop.permute.xlu0 %2444 }
0x1602   :  { %v2452_v52 = vmul.f32 %v9039_v26, %v2445_v50  ;;  %v2443_v53 = vpop.permute.xlu1 %2442 }
0x1603   :  { %v2451_v7 = vmul.f32 %v9041_v9, %v2443_v53  ;;  %v2149_v53 = vsel %vm1044_vm6, %v8945_v41, -inf  ;;  %v2491_v41 = vmul.f32 %v9039_v26, %v8978_v18 }
0x1604   :  { %2459 = vrot.lane.b32.xlu0 %v2452_v52, %s7911_s25  ;;  %v2326_v52 = vsel %vm1046_vm7, %v8985_v21, -inf }
0x1605   :  { %v1531_v54 = vpop.permute.xlu0 %1530  ;;  %2457 = vrot.lane.b32.xlu1 %v2451_v7, %s7911_s25  ;;  %v2150_v7 = vsel %vm1046_vm7, %v8941_v34, -inf  ;;  %v2490_v34 = vmul.f32 %v9041_v9, %v8976_v40 }
0x1606   :  { %v1539_v56 = vadd.f32 %v1531_v54, %v9009_v42  ;;  %v1533_v24 = vpop.permute.xlu1 %1532  ;;  %v1974_v54 = vsel %vm1046_vm7, %v8872_v28, -inf }
0x1607   :  { %v1540_v19 = vadd.f32 %v1533_v24, %v9005_v30  ;;  %v2473_v24 = vsub.f32 1.0, %v9039_v26 }
0x1608   :  { %7671 = vtanh.f32 %v1539_v56  ;;  %v2327_v56 = vmax.f32 %v2325_v10, %v2326_v52  ;;  %v2580_v10 = vld [vmem:[%s10223_s3 + $0x8] sm:$0xff]  ;;  %v2581_v52 = vld [vmem:[%s10223_s3 + $0x10] sm:$0xff] }
0x1609   :  { %7673 = vtanh.f32 %v1540_v19  ;;  %v1535_v57 = vpop.permute.xlu0 %1534  ;;  %2461 = vrot.lane.b32.xlu1 %v2453_v20, %s7911_s25  ;;  %v2151_v20 = vmax.f32 %v2149_v53, %v2150_v7  ;;  %v2472_v19 = vsub.f32 1.0, %v9041_v9  ;;  %v7063_v53 = vpack.c.bf16 %v2580_v10, %v2579_v44  ;;  %v2582_v7 = vld [vmem:[%s10223_s3 + $0x18] sm:$0xff] }
0x160a   :  { %v1541_v48 = vadd.f32 %v1535_v57, %v9015_v55 }
0x160b   :  { %v2152_v28 = vrot.slane %v2151_v20, 4  ;;  %7065 = vmatprep.subr.msk.bf16.mxu1 %vm8010_vm1, %v7063_v53 }
0x160c   :  { %7675 = vtanh.f32 %v1541_v48  ;;  %7068 = vmatpush3.bf16.xpose.msk.msra.mxu1 %vm8010_vm1, %v7063_v53 }
0x160d   :  { %v2153_v26 = vmax.f32 %v2151_v20, %v2152_v28  ;;  %v2585_v20 = vld [vmem:[%s10223_s3 + $0x30] sm:$0xff] }
0x1612   :  { %v7672_v58 = vpop.eup %7671 }
0x1613   :  { %v7674_v59 = vpop.eup %7673  ;;  %1551 = vrot.lane.b32.xlu0 %v7672_v58, %s7908_s2 }
0x1614   :  { %1553 = vrot.lane.b32.xlu1 %v7674_v59, %s7908_s2  ;;  %v2328_v59 = vrot.slane %v2327_v56, 4 }
0x1616   :  { %v7676_v42 = vpop.eup %7675  ;;  %v2329_v18 = vmax.f32 %v2327_v56, %v2328_v59  ;;  %v2584_v56 = vld [vmem:[%s10223_s3 + $0x28] sm:$0xff] }
0x1617   :  { %1555 = vrot.lane.b32.xlu0 %v7676_v42, %s7908_s2 }
0x1676   :  { %v2460_v62 = vpop.permute.xlu0 %2459 }
0x1677   :  { %v2467_v63 = vadd.f32 %v2460_v62, %v1745_v43  ;;  %v2458_v30 = vpop.permute.xlu1 %2457 }
0x1678   :  { %v2466_v0 = vadd.f32 %v2458_v30, %v8630_v45  ;;  %v1563_v45 = vmul.f32 %v9022_v3, %v8686_v6 }
0x1679   :  { %7677 = vtanh.f32 %v2467_v63  ;;  %v2474_v63 = vsub.f32 1.0, %v9047_v37 }
0x167a   :  { %7679 = vtanh.f32 %v2466_v0 }
0x167b   :  { %v2462_v4 = vpop.permute.xlu1 %2461 }
0x167c   :  { %v2468_v55 = vadd.f32 %v2462_v4, %v8627_v38  ;;  %v1564_v38 = vmul.f32 %v9025_v22, %v8688_v46 }
0x167e   :  { %7681 = vtanh.f32 %v2468_v55  ;;  %v2492_v55 = vmul.f32 %v9047_v37, %v8985_v21 }
0x1683   :  { %v7678_v13 = vpop.eup %7677 }
0x1684   :  { %v7680_v16 = vpop.eup %7679  ;;  %2480 = vrot.lane.b32.xlu0 %v7678_v13, %s7908_s2 }
0x1685   :  { %v1552_v31 = vpop.permute.xlu0 %1551  ;;  %2478 = vrot.lane.b32.xlu1 %v7680_v16, %s7908_s2 }
0x1686   :  { %v1560_v35 = vmul.f32 %v1552_v31, %v1545_v17  ;;  %v1554_v36 = vpop.permute.xlu1 %1553  ;;  %v2330_v31 = vrot.slane %v2329_v18, 2 }
0x1687   :  { %v1561_v23 = vmul.f32 %v1554_v36, %v1546_v27 }
0x1688   :  { %v7682_v43 = vpop.eup %7681  ;;  %v1566_v33 = vadd.f32 %v1563_v45, %v1560_v35  ;;  %v2154_v45 = vrot.slane %v2153_v26, 2 }
0x1689   :  { %v1567_v12 = vadd.f32 %v1564_v38, %v1561_v23  ;;  %v1556_v29 = vpop.permute.xlu0 %1555  ;;  %2482 = vrot.lane.b32.xlu1 %v7682_v43, %s7908_s2  ;;  %v2331_v38 = vmax.f32 %v2329_v18, %v2330_v31 }
0x168a   :  { %v1562_v15 = vmul.f32 %v1556_v29, %v1547_v51  ;;  %v2155_v43 = vmax.f32 %v2153_v26, %v2154_v45 }
0x168b   :  { %v1571_v39 = vcombine.low %v1566_v33, %v1567_v12  ;;  %v2332_v21 = vrot.slane %v2331_v38, 1 }
0x168c   :  { %v1568_v6 = vadd.f32 %v1565_v8, %v1562_v15  ;;  %v2156_v12 = vrot.slane %v2155_v43, 1 }
0x168d   :  { %v1573_v3 = vsel %vm1044_vm6, %v1571_v39, -inf  ;;  %v2333_v39 = vmax.f32 %v2331_v38, %v2332_v21 }
0x168e   :  { %v1574_v14 = vsel %vm1046_vm7, %v1568_v6, -inf  ;;  %v2157_v6 = vmax.f32 %v2155_v43, %v2156_v12 }
0x168f   :  { %v1575_v46 = vmax.f32 %v1573_v3, %v1574_v14 }
0x1691   :  { %v1576_v22 = vrot.slane %v1575_v46, 4 }
0x1693   :  { %v1577_v1 = vmax.f32 %v1575_v46, %v1576_v22 }
0x1695   :  { %v1578_v47 = vrot.slane %v1577_v1, 2 }
0x1697   :  { %v1579_v61 = vmax.f32 %v1577_v1, %v1578_v47 }
0x1699   :  { %v1580_v11 = vrot.slane %v1579_v61, 1 }
0x169b   :  { %v1581_v49 = vmax.f32 %v1579_v61, %v1580_v11  ;;  %v5401_v61 = vld [vmem:[%s10222_s13] ss:$0 sm:$0xff] }
0x169d   :  { %v1586_v50 = vsel %vm1585_vm9, %v8742_v60, %v1581_v49  ;;  %v1973_v60 = vsel %vm1044_vm6, %v8876_v32, -inf }
0x169e   :  { %2513 = vrot.lane.b32.xlu0 %v1586_v50, %s7908_s2  ;;  %v1975_v57 = vmax.f32 %v1973_v60, %v1974_v54  ;;  %v7069_v60 = vpack.c.bf16 %v2582_v7, %v2581_v52  ;;  %v2583_v54 = vld [vmem:[%s10223_s3 + $0x20] sm:$0xff] }
0x16a0   :  { %v1976_v30 = vrot.slane %v1975_v57, 4  ;;  %7071 = vmatprep.subr.msk.bf16.mxu1 %vm8010_vm1, %v7069_v60 }
0x16a1   :  { %7074 = vmatpush3.bf16.xpose.msk.msra.mxu1 %vm8010_vm1, %v7069_v60 }
0x16a2   :  { %v1977_v17 = vmax.f32 %v1975_v57, %v1976_v30  ;;  %v7902_v57 = vld [vmem:[%s10239_s20 + $0x18] sm:$0xff] }
0x16a4   :  { %v1978_v35 = vrot.slane %v1977_v17, 2 }
0x16a6   :  { %v1979_v51 = vmax.f32 %v1977_v17, %v1978_v35 }
0x16a8   :  { %v1980_v8 = vrot.slane %v1979_v51, 1 }
0x16aa   :  { %v1981_v3 = vmax.f32 %v1979_v51, %v1980_v8 }
0x16f6   :  { %v2481_v25 = vpop.permute.xlu0 %2480 }
0x16f7   :  { %v2488_v48 = vmul.f32 %v2481_v25, %v2473_v24  ;;  %v2479_v58 = vpop.permute.xlu1 %2478  ;;  %v7075_v24 = vpack.c.bf16 %v2584_v56, %v2583_v54  ;;  %v2586_v25 = vld [vmem:[%s10223_s3 + $0x38] sm:$0xff] }
0x16f8   :  { %v2487_v32 = vmul.f32 %v2479_v58, %v2472_v19  ;;  %v7081_v19 = vpack.c.bf16 %v2586_v25, %v2585_v20  ;;  %v7905_v58 = vld [vmem:[%s10239_s20 + $0x30] sm:$0xff] }
0x16f9   :  { %v2494_v42 = vadd.f32 %v2491_v41, %v2488_v48  ;;  %7077 = vmatprep.subr.msk.bf16.mxu1 %vm8010_vm1, %v7075_v24  ;;  %v7903_v41 = vld [vmem:[%s10239_s20 + $0x20] sm:$0xff]  ;;  %v7904_v48 = vld [vmem:[%s10239_s20 + $0x28] sm:$0xff] }
0x16fa   :  { %v2493_v62 = vadd.f32 %v2490_v34, %v2487_v32  ;;  %7080 = vmatpush3.bf16.xpose.msk.msra.mxu1 %vm8010_vm1, %v7075_v24  ;;  %v7906_v34 = vld [vmem:[%s10239_s20 + $0x38] sm:$0xff]  ;;  %v5402_v32 = vld [vmem:[#allocation2] ss:$0 sm:$0xff] }
0x16fb   :  { %v2483_v0 = vpop.permute.xlu1 %2482  ;;  %7083 = vmatprep.subr.msk.bf16.mxu1 %vm8010_vm1, %v7081_v19 }
0x16fc   :  { %v2498_v4 = vcombine.low %v2493_v62, %v2494_v42  ;;  %v2489_v13 = vmul.f32 %v2483_v0, %v2474_v63 }
0x16fe   :  { %v2495_v16 = vadd.f32 %v2492_v55, %v2489_v13  ;;  %v2500_v40 = vsel %vm1044_vm6, %v2498_v4, -inf }
0x1700   :  { %v2501_v9 = vsel %vm1046_vm7, %v2495_v16, -inf }
0x1701   :  { %v2502_v27 = vmax.f32 %v2500_v40, %v2501_v9  ;;  %v2538_v9 = vlaneseq }
0x1702   :  { %7086 = vmatpush3.bf16.xpose.msk.msra.mxu1 %vm8010_vm1, %v7081_v19 }
0x1703   :  { %v2503_v36 = vrot.slane %v2502_v27, 4  ;;  %v9174_v31 = vshrl.u32 %v2538_v9, 7 }
0x1705   :  { %v2504_v23 = vmax.f32 %v2502_v27, %v2503_v36 }
0x1707   :  { %v2505_v33 = vrot.slane %v2504_v23, 2 }
0x1709   :  { %v2506_v37 = vmax.f32 %v2504_v23, %v2505_v33  ;;  %6351 = vmatmul.mubr.msk.f32.vlgmr.msra.gmra.mrb[26].mxu1 %vm83_vm0, %v7902_v57  ;;  %v5403_v23 = vld [vmem:[%s10224_s4] ss:$0 sm:$0xff] }
0x170a   :  { %6353 = vmatprep.mubr.msk.f32.mxu1 %vm83_vm0, %v7903_v41 }
0x170b   :  { %v2507_v29 = vrot.slane %v2506_v37, 1 }
0x170d   :  { %v2508_v15 = vmax.f32 %v2506_v37, %v2507_v29  ;;  %6354 = vmatmul.mubr.msk.f32.gmra.mrb[28].mxu1 %vm83_vm0, %v7904_v48 }
0x170e   :  { %6356 = vmatprep.mubr.msk.f32.mxu1 %vm83_vm0, %v7905_v58 }
0x170f   :  { %v2509_v14 = vsel %vm1582_vm8, %v2508_v15, %v2333_v39 }
0x1710   :  { %v2510_v46 = vsel %vm537_vm2, %v2509_v14, %v2157_v6  ;;  %v2514_v22 = vpop.permute.xlu0 %2513 }
0x1711   :  { %v2511_v1 = vsel %vm1585_vm9, %v2510_v46, %v1981_v3  ;;  %6357 = vmatmul.mubr.msk.f32.gmra.mrb[30].mxu1 %vm83_vm0, %v7906_v34 }
0x1712   :  { %v2516_v47 = vsel %vm83_vm0, %v2514_v22, %v2511_v1  ;;  %6442 = vmatprep.mubr.f32.mxu1 %v7910_v5 }
0x1713   :  { %7683 = vtanh.f32 %v2516_v47 }
0x171d   :  { %v9109_v11 = vpop.eup %7683 }
0x171e   :  { %v2525_v49 = vmul.f32 %v9109_v11, %v5401_v61 }
0x1720   :  { %v2527_v50 = vsel %vm2526_vm10, %v2525_v49, 0.0  ;;  %vm2863_vm10 = vcmask 257024  }
0x1721   :  { %2528 = vadd.xlane.f32.xlu1 %v2527_v50 }
0x17ae   :  { %v2529_v59 = vpop.xlane.xlu1 %2528 }
0x17af   :  { %v2537_v42 = vadd.f32 %v5402_v32, %v2529_v59 }
0x17b1   :  { %v2541_v28 = vsel %vm2540_vm11, %v2537_v42, -inf }
0x17b2   :  { %2542 = vmax.xlane.f32.xlu0 %v2541_v28 }
0x17dc   :  { %v6352_v62 = vpop.f32.mrb[26].mxu1 }
0x17dd   :  { %v2684_v63 = vpop.f32.mrb[27].mxu1  ;;  %v2690_v1 = vadd.f32 %v6352_v62, %v5403_v23 }
0x17de   :  { %v2685_v43 = vadd.f32 %v5403_v23, %v2684_v63 }
0x17df   :  { %v5419_v48 = vmul.f32 -1.442695, %v2690_v1 }
0x17e0   :  { %v6355_v30 = vpop.f32.mrb[28].mxu1  ;;  %7685 = vtanh.f32 %v2685_v43  ;;  %v5418_v8 = vmul.f32 -1.442695, %v2685_v43  ;;  %v2810_v43 = vsub.s32 0, %v9174_v31 }
0x17e1   :  { %v2694_v0 = vpop.f32.mrb[29].mxu1  ;;  %v2700_v33 = vadd.f32 %v6355_v30, %v5403_v23 }
0x17e2   :  { %v2695_v49 = vadd.f32 %v5403_v23, %v2694_v0 }
0x17e3   :  { %7687 = vtanh.f32 %v2700_v33  ;;  %v5421_v58 = vmul.f32 -1.442695, %v2700_v33  ;;  %v2814_v33 = vsub.s32 1, %v9174_v31 }
0x17e4   :  { %v6358_v4 = vpop.f32.mrb[30].mxu1  ;;  %v5420_v34 = vmul.f32 -1.442695, %v2695_v49 }
0x17e5   :  { %v2710_v51 = vadd.f32 %v6358_v4, %v5403_v23  ;;  %v2704_v21 = vpop.f32.mrb[31].mxu1 }
0x17e6   :  { %v2705_v50 = vadd.f32 %v5403_v23, %v2704_v21  ;;  %v2822_v21 = vsub.s32 3, %v9174_v31 }
0x17e7   :  { %7689 = vtanh.f32 %v2710_v51  ;;  %v5423_v32 = vmul.f32 -1.442695, %v2710_v51  ;;  %v2818_v51 = vsub.s32 2, %v9174_v31 }
0x17e8   :  { %7691 = vpow2.f32 %v5418_v8  ;;  %v5422_v59 = vmul.f32 -1.442695, %v2705_v50 }
0x17ea   :  { %v7686_v37 = vpop.eup %7685 }
0x17ed   :  { %v7688_v12 = vpop.eup %7687 }
0x17f1   :  { %v7690_v29 = vpop.eup %7689 }
0x17f2   :  { %v7692_v15 = vpop.eup %7691 }
0x17f3   :  { %v2731_v39 = vadd.f32 1.0, %v7692_v15 }
0x17f5   :  { %7693 = vrcp.f32 %v2731_v39 }
0x17f6   :  { %7695 = vtanh.f32 %v2690_v1 }
0x17f7   :  { %7697 = vtanh.f32 %v2695_v49 }
0x17f8   :  { %7699 = vtanh.f32 %v2705_v50 }
0x17f9   :  { %7701 = vpow2.f32 %v5419_v48 }
0x17fa   :  { %7703 = vpow2.f32 %v5421_v58 }
0x17fb   :  { %7705 = vpow2.f32 %v5420_v34 }
0x17fc   :  { %7707 = vpow2.f32 %v5423_v32 }
0x17fd   :  { %7709 = vpow2.f32 %v5422_v59 }
0x17ff   :  { %v7694_v46 = vpop.eup %7693 }
0x1800   :  { %v7696_v44 = vpop.eup %7695 }
0x1801   :  { %v7698_v10 = vpop.eup %7697 }
0x1802   :  { %v7700_v52 = vpop.eup %7699 }
0x183f   :  { %v2543_v55 = vpop.xlane.xlu0 %2542 }
0x1840   :  { %v2544_v13 = vrot.slane %v2543_v55, 4 }
0x1842   :  { %v2545_v18 = vmax.f32 %v2543_v55, %v2544_v13 }
0x1844   :  { %v2546_v26 = vrot.slane %v2545_v18, 2 }
0x1846   :  { %v2547_v16 = vmax.f32 %v2545_v18, %v2546_v26 }
0x1848   :  { %v2548_v17 = vrot.slane %v2547_v16, 1 }
0x184a   :  { %v2549_v40 = vmax.f32 %v2547_v16, %v2548_v17 }
0x184c   :  { %7459 = vpush %v2549_v40 }
0x187d   :  { %s7460_s20 = spop %7459 }
0x187e   :  { %v2551_v27 = vstv %s7460_s20 }
0x187f   :  { %vm2552_vm12 = vcmp.ge.f32.partialorder %v2537_v42, %v2551_v27  ;;  %v7702_v42 = vpop.eup %7701 }
0x1880   :  { %v2553_v45 = vsel %vm2552_vm12, %v9174_v31, 4  ;;  %v7704_v28 = vpop.eup %7703  ;;  %v2732_v30 = vadd.f32 1.0, %v7702_v42  ;;  %vm3138_vm12 = vcmask 1043456  }
0x1881   :  { %v2554_v35 = vsel %vm2540_vm11, %v2553_v45, 2147483647  ;;  %v7706_v62 = vpop.eup %7705  ;;  %v2734_v4 = vadd.f32 1.0, %v7704_v28 }
0x1882   :  { %v2556_v36 = vshra.s32 %v2554_v35, 16  ;;  %v2555_v6 = vand.u32 65535, %v2554_v35  ;;  %v7708_v63 = vpop.eup %7707  ;;  %v2733_v55 = vadd.f32 1.0, %v7706_v62  ;;  %7711 = vrcp.f32 %v2732_v30 }
0x1883   :  { %v7710_v0 = vpop.eup %7709  ;;  %v2736_v13 = vadd.f32 1.0, %v7708_v63  ;;  %7713 = vrcp.f32 %v2734_v4 }
0x1884   :  { %v2558_v38 = vcvt.s32.f32 %v2556_v36  ;;  %v2557_v14 = vcvt.s32.f32 %v2555_v6  ;;  %v2735_v18 = vadd.f32 1.0, %v7710_v0  ;;  %7715 = vrcp.f32 %v2733_v55 }
0x1885   :  { %7717 = vrcp.f32 %v2736_v13 }
0x1886   :  { %2559 = vmin.xlane.f32.xlu0 %v2558_v38  ;;  %7719 = vrcp.f32 %v2735_v18 }
0x188c   :  { %v7712_v40 = vpop.eup %7711 }
0x188d   :  { %v7714_v9 = vpop.eup %7713 }
0x188e   :  { %v7716_v27 = vpop.eup %7715 }
0x188f   :  { %v7718_v35 = vpop.eup %7717 }
0x189c   :  { %2761 = vrot.lane.b32.xlu0 %v7686_v37, %s7908_s2 }
0x18a0   :  { %2767 = vrot.lane.b32.xlu0 %v7688_v12, %s7908_s2 }
0x18a4   :  { %2771 = vrot.lane.b32.xlu0 %v7690_v29, %s7908_s2 }
0x1913   :  { %v2560_v3 = vpop.xlane.xlu0 %2559 }
0x1914   :  { %vm2561_vm13 = vcmp.eq.f32.partialorder %v2558_v38, %v2560_v3  ;;  %v2566_v53 = vcvt.f32.s32 %v2560_v3  ;;  %v7720_v38 = vpop.eup %7719 }
0x1915   :  { %v2562_v22 = vsel %vm2561_vm13, %v2557_v14, inf  ;;  %vm7094_vm13 = vmpackc.low %vm3138_vm12, %vm7909_vm3  ;;  %vm3002_vm3 = vcmask 93184  }
0x1916   :  { %2563 = vmin.xlane.f32.xlu1 %v2562_v22  ;;  %v2567_v60 = vshll.u32 %v2566_v53, 16 }
0x1917   :  { %v2762_v47 = vpop.permute.xlu0 %2761 }
0x1918   :  { %v9184_v61 = vmul.f32 %v7694_v46, %v2762_v47 }
0x191a   :  { %6363 = vmatprep.mubr.msk.f32.mxu0 %vm83_vm0, %v9184_v61  ;;  %v2791_v15 = vcombine.high %v9184_v61, %v9184_v61 }
0x191b   :  { %v2768_v17 = vpop.permute.xlu0 %2767 }
0x191c   :  { %v9197_v37 = vmul.f32 %v7714_v9, %v2768_v17  ;;  %v3428_v17 = vld [vmem:[%s10225_s10] sm:$0xff]  ;;  %v3430_v9 = vld [vmem:[%s10225_s10 + $0x10] sm:$0xff] }
0x191e   :  { %v2794_v47 = vcombine.high %v9197_v37, %v9197_v37 }
0x191f   :  { %v2772_v23 = vpop.permute.xlu0 %2771 }
0x1920   :  { %v9206_v39 = vmul.f32 %v7718_v35, %v2772_v23  ;;  %v3243_v23 = vld [vmem:[%s10226_s9 + $0x8] sm:$0xff] }
0x1927   :  { %2763 = vrot.lane.b32.xlu1 %v7696_v44, %s7908_s2 }
0x192b   :  { %2765 = vrot.lane.b32.xlu1 %v7698_v10, %s7908_s2 }
0x192f   :  { %2769 = vrot.lane.b32.xlu1 %v7700_v52, %s7908_s2 }
0x19a3   :  { %v2564_v7 = vpop.xlane.xlu1 %2563 }
0x19a4   :  { %v2565_v54 = vcvt.f32.s32 %v2564_v7 }
0x19a6   :  { %v2568_v56 = vadd.s32 %v2567_v60, %v2565_v54 }
0x19a7   :  { %v2764_v26 = vpop.permute.xlu1 %2763 }
0x19a8   :  { %v2569_v24 = vrot.slane %v2568_v56, 4  ;;  %v9191_v36 = vmul.f32 %v7712_v40, %v2764_v26  ;;  %v3429_v40 = vld [vmem:[%s10225_s10 + $0x8] sm:$0xff] }
0x19aa   :  { %vm2570_vm14 = vcmp.lt.s32.totalorder %v2568_v56, %v2569_v24  ;;  %v2792_v6 = vcombine.high %v9191_v36, %v9191_v36 }
0x19ab   :  { %v2571_v20 = vsel %vm2570_vm14, %v2568_v56, %v2569_v24  ;;  %v2766_v16 = vpop.permute.xlu1 %2765  ;;  %v2796_v56 = vcombine.high %v9206_v39, %v9206_v39  ;;  %vm3076_vm14 = vcmask 97280  }
0x19ac   :  { %v2572_v25 = vrot.slane %v2571_v20, 2  ;;  %v9199_v12 = vmul.f32 %v7716_v27, %v2766_v16  ;;  %v9258_v27 = vpack.c.bf16 %v3429_v40, %v3428_v17 }
0x19ae   :  { %vm2573_vm15 = vcmp.lt.s32.totalorder %v2571_v20, %v2572_v25  ;;  %7137 = vmatprep.subr.msk.bf16.mxu1 %vm8010_vm1, %v9258_v27 }
0x19af   :  { %v2574_v19 = vsel %vm2573_vm15, %v2571_v20, %v2572_v25  ;;  %v2770_v45 = vpop.permute.xlu1 %2769  ;;  %7140 = vmatpush3.bf16.xpose.msk.msra.mxu1 %vm8010_vm1, %v9258_v27 }
0x19b0   :  { %v2575_v57 = vrot.slane %v2574_v19, 1  ;;  %v9201_v29 = vmul.f32 %v7720_v38, %v2770_v45  ;;  %v3431_v45 = vld [vmem:[%s10225_s10 + $0x18] sm:$0xff]  ;;  %v3242_v38 = vld [vmem:[%s10226_s9] sm:$0xff] }
0x19b1   :  { %v9263_v35 = vpack.c.bf16 %v3431_v45, %v3430_v9 }
0x19b2   :  { %vm2576_vm4 = vcmp.lt.s32.totalorder %v2574_v19, %v2575_v57  ;;  %v2795_v49 = vcombine.high %v9201_v29, %v9201_v29 }
0x19b3   :  { %v2577_v41 = vsel %vm2576_vm4, %v2574_v19, %v2575_v57  ;;  %7143 = vmatprep.subr.msk.bf16.mxu1 %vm8010_vm1, %v9263_v35 }
0x19b4   :  { %7461 = vpush %v2577_v41 }
0x19b7   :  { %7146 = vmatpush3.bf16.xpose.msk.msra.mxu1 %vm8010_vm1, %v9263_v35 }
0x19e5   :  { %s7462_s4 = spop %7461 }
0x19e6   :  { %v2803_v8 = vstv %s7462_s4 }
0x19e7   :  { %vm2804_vm5 = vcmp.eq.s32.totalorder %v9174_v31, %v2803_v8  ;;  %v2793_v31 = vcombine.high %v9199_v12, %v9199_v12  ;;  %v3434_v8 = vld [vmem:[%s10225_s10 + $0x30] sm:$0xff] }
0x19e8   :  { %v5424_v3 = vsel %vm2804_vm5, 1.0, %v7910_v5 }
0x19e9   :  { %v2811_v14 = vrot.slane %v5424_v3, %v2810_v43  ;;  %v2815_v46 = vrot.slane %v5424_v3, %v2814_v33  ;;  %v2819_v22 = vrot.slane %v5424_v3, %v2818_v51  ;;  %v2823_v1 = vrot.slane %v5424_v3, %v2822_v21  ;;  %v3432_v33 = vld [vmem:[%s10225_s10 + $0x20] sm:$0xff]  ;;  %v3433_v51 = vld [vmem:[%s10225_s10 + $0x28] sm:$0xff] }
0x19ea   :  { %v9280_v43 = vpack.c.bf16 %v3243_v23, %v3242_v38  ;;  %v9291_v21 = vpack.c.bf16 %v3433_v51, %v3432_v33  ;;  %v3436_v3 = vld [vmem:[%s10225_s10 + $0x40] sm:$0xff] }
0x19eb   :  { %v2828_v50 = vmul.f32 %v2811_v14, %v9184_v61  ;;  %v2829_v44 = vmul.f32 %v2811_v14, %v2791_v15  ;;  %v2830_v10 = vmul.f32 %v2811_v14, %v9191_v36  ;;  %v2831_v52 = vmul.f32 %v2815_v46, %v2792_v6  ;;  %v3435_v15 = vld [vmem:[%s10225_s10 + $0x38] sm:$0xff]  ;;  %v3437_v14 = vld [vmem:[%s10225_s10 + $0x48] sm:$0xff] }
0x19ec   :  { %v2832_v53 = vmul.f32 %v2815_v46, %v9199_v12  ;;  %v2833_v7 = vmul.f32 %v2815_v46, %v2793_v31  ;;  %v2834_v60 = vmul.f32 %v2819_v22, %v9197_v37  ;;  %v2835_v54 = vmul.f32 %v2819_v22, %v2794_v47  ;;  %7149 = vmatprep.subr.msk.bf16.mxu1 %vm8010_vm1, %v9291_v21 }
0x19ed   :  { %v2836_v24 = vmul.f32 %v2819_v22, %v9201_v29  ;;  %v2837_v20 = vmul.f32 %v2823_v1, %v2795_v49  ;;  %v2838_v25 = vmul.f32 %v2823_v1, %v9206_v39  ;;  %v2848_v19 = vcombine.low %v2828_v50, %v2829_v44  ;;  %7152 = vmatpush3.bf16.xpose.msk.msra.mxu1 %vm8010_vm1, %v9291_v21  ;;  %v3438_v22 = vld [vmem:[%s10225_s10 + $0x50] sm:$0xff] }
0x19ee   :  { %v2849_v57 = vcombine.low %v2831_v52, %v2832_v53  ;;  %v2850_v41 = vcombine.low %v2834_v60, %v2835_v54  ;;  %v2864_v48 = vsel %vm2863_vm10, %v2830_v10, 0.0  ;;  %v2839_v58 = vmul.f32 %v2823_v1, %v2796_v56  ;;  %v3439_v1 = vld [vmem:[%s10225_s10 + $0x58] sm:$0xff] }
0x19ef   :  { %v2865_v34 = vsel %vm2863_vm10, %v2833_v7, 0.0  ;;  %v2851_v32 = vcombine.low %v2837_v20, %v2838_v25  ;;  %v2856_v59 = vsel %vm83_vm0, %v2848_v19, 0.0  ;;  %v2867_v62 = vsel %vm2863_vm10, %v2836_v24, 0.0 }
0x19f0   :  { %v2857_v42 = vsel %vm83_vm0, %v2849_v57, 0.0  ;;  %v2866_v28 = vadd.f32 %v2865_v34, %v2864_v48  ;;  %v2859_v30 = vsel %vm83_vm0, %v2850_v41, 0.0  ;;  %v2869_v13 = vsel %vm2863_vm10, %v2839_v58, 0.0 }
0x19f1   :  { %v2858_v63 = vadd.f32 %v2857_v42, %v2856_v59  ;;  %v2861_v55 = vsel %vm83_vm0, %v2851_v32, 0.0  ;;  %v9305_v6 = vpack.c.bf16 %v3435_v15, %v3434_v8  ;;  %v9319_v46 = vpack.c.bf16 %v3437_v14, %v3436_v3 }
0x19f2   :  { %v2868_v0 = vadd.f32 %v2867_v62, %v2866_v28  ;;  %v9333_v47 = vpack.c.bf16 %v3439_v1, %v3438_v22 }
0x19f3   :  { %v2860_v4 = vadd.f32 %v2859_v30, %v2858_v63  ;;  %7155 = vmatprep.subr.msk.bf16.mxu1 %vm8010_vm1, %v9305_v6 }
0x19f4   :  { %v2870_v26 = vadd.f32 %v2869_v13, %v2868_v0 }
0x19f5   :  { %v2862_v18 = vadd.f32 %v2861_v55, %v2860_v4  ;;  %7158 = vmatpush3.bf16.xpose.msk.msra.mxu1 %vm8010_vm1, %v9305_v6 }
0x19f6   :  { %7161 = vmatprep.subr.msk.bf16.mxu1 %vm8010_vm1, %v9319_v46 }
0x19f7   :  { %v7087_v16 = vpack.c.bf16 %v2870_v26, %v2862_v18 }
0x19f9   :  { %7089 = vmatprep.subr.msk.bf16.mxu0 %vm8010_vm1, %v7087_v16 }
0x19fa   :  { %7092 = vmatpush3.bf16.xpose.msk.msra.mxu0 %vm8010_vm1, %v7087_v16 }
0x19fb   :  { %7095 = vmatprep.subr.msk.bf16.mxu0 %vm7094_vm13, %v7087_v16 }
0x19fd   :  { %7164 = vmatpush3.bf16.xpose.msk.msra.mxu1 %vm8010_vm1, %v9319_v46 }
0x19fe   :  { %7167 = vmatprep.subr.msk.bf16.mxu1 %vm8010_vm1, %v9333_v47 }
0x1a01   :  { %6364 = vmatmul.mubr.msk.f32.vlgmr.msra.gmra.mrb[22].mxu0 %vm83_vm0, %v9191_v36 }
0x1a02   :  { %6366 = vmatprep.mubr.msk.f32.mxu0 %vm83_vm0, %v9199_v12  ;;  %7098 = vmatpush3.bf16.msk.msra.mxu0 %vm7094_vm13, %v7087_v16 }
0x1a03   :  { %7101 = vmatprep.subr.msk.bf16.mxu0 %vm8010_vm1, %v9280_v43 }
0x1a05   :  { %6367 = vmatmul.mubr.msk.f32.gmra.mrb[24].mxu0 %vm83_vm0, %v9197_v37  ;;  %7170 = vmatpush3.bf16.xpose.msk.msra.mxu1 %vm8010_vm1, %v9333_v47 }
0x1a06   :  { %6369 = vmatprep.mubr.msk.f32.mxu0 %vm83_vm0, %v9201_v29  ;;  %7209 = vmatprep.subr.msk.bf16.mxu1 %vm8010_vm1, %v9258_v27 }
0x1a09   :  { %6370 = vmatmul.mubr.msk.f32.gmra.mrb[26].mxu0 %vm83_vm0, %v9206_v39 }
0x1a0c   :  { %6443 = vmatmul.mubr.f32.vlgmr.msra.gmra.mrb[32].mxu1 %v7910_v5 }
0x1a0d   :  { %7212 = vmatpush3.bf16.xpose.msk.msra.mxu1 %vm8010_vm1, %v9258_v27 }
0x1a0e   :  { %7215 = vmatprep.subr.msk.bf16.mxu1 %vm8010_vm1, %v9263_v35 }
0x1a15   :  { %7218 = vmatpush3.bf16.xpose.msk.msra.mxu1 %vm8010_vm1, %v9263_v35 }
0x1a16   :  { %7221 = vmatprep.subr.msk.bf16.mxu1 %vm8010_vm1, %v9291_v21 }
0x1a1d   :  { %7224 = vmatpush3.bf16.xpose.msk.msra.mxu1 %vm8010_vm1, %v9291_v21 }
0x1a1e   :  { %7227 = vmatprep.subr.msk.bf16.mxu1 %vm8010_vm1, %v9305_v6 }
0x1a25   :  { %7230 = vmatpush3.bf16.xpose.msk.msra.mxu1 %vm8010_vm1, %v9305_v6 }
0x1a26   :  { %7233 = vmatprep.subr.msk.bf16.mxu1 %vm8010_vm1, %v9319_v46 }
0x1a2d   :  { %7236 = vmatpush3.bf16.xpose.msk.msra.mxu1 %vm8010_vm1, %v9319_v46 }
0x1a2e   :  { %7239 = vmatprep.subr.msk.bf16.mxu1 %vm8010_vm1, %v9333_v47 }
0x1a35   :  { %7242 = vmatpush3.bf16.xpose.msk.msra.mxu1 %vm8010_vm1, %v9333_v47 }
0x1ad4   :  { %v6365_v31 = vpop.f32.mrb[22].mxu0 }
0x1ad5   :  { %v2955_v49 = vpop.f32.mrb[23].mxu0  ;;  %v2991_v20 = vcombine.high %v6365_v31, %v6365_v31  ;;  %v3017_v34 = vsel %vm3002_vm3, %v6365_v31, -inf }
0x1ad6   :  { %v2990_v50 = vcombine.high %v2955_v49, %v2955_v49  ;;  %v3003_v10 = vsel %vm3002_vm3, %v2955_v49, -inf }
0x1ad7   :  { %v3004_v30 = vsel %vm3002_vm3, %v2991_v20, -inf }
0x1ad8   :  { %v6368_v44 = vpop.f32.mrb[24].mxu0  ;;  %v3010_v54 = vsel %vm3002_vm3, %v2990_v50, -inf }
0x1ad9   :  { %v2993_v52 = vcombine.high %v6368_v44, %v6368_v44  ;;  %v3005_v53 = vsel %vm3002_vm3, %v6368_v44, -inf  ;;  %v2965_v7 = vpop.f32.mrb[25].mxu0 }
0x1ada   :  { %v3006_v60 = vmax.f32 %v3003_v10, %v3005_v53  ;;  %v2992_v24 = vcombine.high %v2965_v7, %v2965_v7  ;;  %v3011_v57 = vsel %vm3002_vm3, %v2965_v7, -inf }
0x1adb   :  { %v3012_v56 = vsel %vm3002_vm3, %v2993_v52, -inf }
0x1adc   :  { %v3013_v25 = vmax.f32 %v3010_v54, %v3012_v56  ;;  %v6371_v19 = vpop.f32.mrb[26].mxu0  ;;  %v3018_v28 = vsel %vm3002_vm3, %v2992_v24, -inf }
0x1add   :  { %v2995_v41 = vcombine.high %v6371_v19, %v6371_v19  ;;  %v3014_v48 = vsel %vm3002_vm3, %v6371_v19, -inf  ;;  %v2975_v58 = vpop.f32.mrb[27].mxu0 }
0x1ade   :  { %v3015_v32 = vmax.f32 %v3011_v57, %v3014_v48  ;;  %v2994_v59 = vcombine.high %v2975_v58, %v2975_v58  ;;  %v3019_v42 = vsel %vm3002_vm3, %v2975_v58, -inf }
0x1adf   :  { %v3021_v62 = vsel %vm3002_vm3, %v2995_v41, -inf  ;;  %v3020_v63 = vmax.f32 %v3017_v34, %v3019_v42 }
0x1ae0   :  { %v3016_v0 = vmax.f32 %v3013_v25, %v3015_v32  ;;  %v3022_v4 = vmax.f32 %v3018_v28, %v3021_v62  ;;  %v3007_v55 = vsel %vm3002_vm3, %v2994_v59, -inf }
0x1ae1   :  { %v3008_v13 = vmax.f32 %v3004_v30, %v3007_v55 }
0x1ae2   :  { %v3025_v18 = vsub.f32 %v2990_v50, %v3016_v0  ;;  %v3028_v26 = vsub.f32 %v2965_v7, %v3016_v0  ;;  %v3031_v16 = vsub.f32 %v2993_v52, %v3016_v0  ;;  %v3034_v17 = vsub.f32 %v6371_v19, %v3016_v0 }
0x1ae3   :  { %v3009_v40 = vmax.f32 %v3006_v60, %v3008_v13  ;;  %v3023_v9 = vmax.f32 %v3020_v63, %v3022_v4 }
0x1ae4   :  { %v3038_v45 = vmul.f32 1.442695, %v3025_v18  ;;  %v3044_v38 = vmul.f32 1.442695, %v3028_v26  ;;  %v3050_v23 = vmul.f32 1.442695, %v3031_v16 }
0x1ae5   :  { %v3056_v33 = vmul.f32 1.442695, %v3034_v17  ;;  %v3024_v51 = vsub.f32 %v2955_v49, %v3009_v40  ;;  %v3026_v8 = vsub.f32 %v6365_v31, %v3023_v9  ;;  %v3027_v15 = vsub.f32 %v2991_v20, %v3009_v40 }
0x1ae6   :  { %7721 = vpow2.f32 %v3038_v45  ;;  %v3029_v3 = vsub.f32 %v2992_v24, %v3023_v9  ;;  %v3030_v14 = vsub.f32 %v6368_v44, %v3009_v40  ;;  %v3032_v22 = vsub.f32 %v2975_v58, %v3023_v9 }
0x1ae7   :  { %7723 = vpow2.f32 %v3044_v38  ;;  %v3033_v1 = vsub.f32 %v2994_v59, %v3009_v40  ;;  %v3035_v10 = vsub.f32 %v2995_v41, %v3023_v9  ;;  %v3036_v50 = vmul.f32 1.442695, %v3024_v51 }
0x1ae8   :  { %7725 = vpow2.f32 %v3050_v23  ;;  %v3040_v52 = vmul.f32 1.442695, %v3026_v8  ;;  %v3042_v53 = vmul.f32 1.442695, %v3027_v15  ;;  %v3046_v31 = vmul.f32 1.442695, %v3029_v3 }
0x1ae9   :  { %7727 = vpow2.f32 %v3056_v33  ;;  %v3048_v49 = vmul.f32 1.442695, %v3030_v14  ;;  %v3052_v44 = vmul.f32 1.442695, %v3032_v22  ;;  %v3054_v7 = vmul.f32 1.442695, %v3033_v1 }
0x1aea   :  { %7729 = vpow2.f32 %v3036_v50  ;;  %v3058_v60 = vmul.f32 1.442695, %v3035_v10 }
0x1aeb   :  { %7731 = vpow2.f32 %v3040_v52 }
0x1aec   :  { %7733 = vpow2.f32 %v3042_v53 }
0x1aed   :  { %7735 = vpow2.f32 %v3046_v31 }
0x1aee   :  { %7737 = vpow2.f32 %v3048_v49 }
0x1aef   :  { %7739 = vpow2.f32 %v3052_v44  ;;  %v3244_v44 = vld [vmem:[%s10226_s9 + $0x10] sm:$0xff] }
0x1af0   :  { %v7722_v54 = vpop.eup %7721  ;;  %7741 = vpow2.f32 %v3054_v7  ;;  %v3245_v7 = vld [vmem:[%s10226_s9 + $0x18] sm:$0xff] }
0x1af1   :  { %v7724_v56 = vpop.eup %7723  ;;  %7743 = vpow2.f32 %v3058_v60 }
0x1af2   :  { %v7726_v24 = vpop.eup %7725 }
0x1af3   :  { %v7728_v20 = vpop.eup %7727 }
0x1af4   :  { %v7730_v25 = vpop.eup %7729 }
0x1af5   :  { %v7732_v19 = vpop.eup %7731  ;;  %v3068_v57 = vcombine.low %v7730_v25, %v7722_v54 }
0x1af6   :  { %v7734_v41 = vpop.eup %7733  ;;  %v3084_v48 = vsel %vm3002_vm3, %v7732_v19, 0.0 }
0x1af7   :  { %v7736_v58 = vpop.eup %7735  ;;  %v3069_v34 = vcombine.low %v7734_v41, %v7724_v56  ;;  %v3077_v32 = vsel %vm3076_vm14, %v3068_v57, 0.0 }
0x1af8   :  { %v7738_v59 = vpop.eup %7737  ;;  %v3085_v42 = vsel %vm3002_vm3, %v7736_v58, 0.0 }
0x1af9   :  { %v7740_v28 = vpop.eup %7739  ;;  %v3070_v62 = vcombine.low %v7738_v59, %v7726_v24  ;;  %v3078_v63 = vsel %vm3076_vm14, %v3069_v34, 0.0  ;;  %v3086_v30 = vadd.f32 %v3085_v42, %v3084_v48 }
0x1afa   :  { %v7742_v0 = vpop.eup %7741  ;;  %v3079_v4 = vadd.f32 %v3078_v63, %v3077_v32  ;;  %v3087_v55 = vsel %vm3002_vm3, %v7740_v28, 0.0  ;;  %v3250_v32 = vld [vmem:[%s10226_s9 + $0x40] sm:$0xff] }
0x1afb   :  { %v7744_v13 = vpop.eup %7743  ;;  %v3071_v18 = vcombine.low %v7742_v0, %v7728_v20  ;;  %v3080_v26 = vsel %vm3076_vm14, %v3070_v62, 0.0  ;;  %v3088_v16 = vadd.f32 %v3087_v55, %v3086_v30  ;;  %v3253_v62 = vld [vmem:[%s10226_s9 + $0x58] sm:$0xff]  ;;  %v9466_v30 = vld [vmem:[%s10227_s12] ss:$0 sm:$0xff] }
0x1afc   :  { %v3081_v17 = vadd.f32 %v3080_v26, %v3079_v4  ;;  %v3089_v40 = vsel %vm3002_vm3, %v7744_v13, 0.0 }
0x1afd   :  { %v3082_v9 = vsel %vm3076_vm14, %v3071_v18, 0.0  ;;  %v3090_v45 = vadd.f32 %v3089_v40, %v3088_v16 }
0x1afe   :  { %v3083_v38 = vadd.f32 %v3082_v9, %v3081_v17 }
0x1aff   :  { %7745 = vrcp.f32 %v3090_v45 }
0x1b00   :  { %7747 = vrcp.f32 %v3083_v38 }
0x1b09   :  { %v7746_v23 = vpop.eup %7745 }
0x1b0a   :  { %v7748_v33 = vpop.eup %7747  ;;  %v3098_v51 = vmul.f32 %v7746_v23, %v7732_v19  ;;  %v3101_v8 = vmul.f32 %v7746_v23, %v7736_v58  ;;  %v3104_v15 = vmul.f32 %v7746_v23, %v7740_v28  ;;  %v3107_v3 = vmul.f32 %v7746_v23, %v7744_v13  ;;  %v3252_v28 = vld [vmem:[%s10226_s9 + $0x50] sm:$0xff] }
0x1b0b   :  { %v3094_v14 = vcombine.high %v7748_v33, %v7748_v33  ;;  %v3096_v22 = vmul.f32 %v7748_v33, %v7730_v25  ;;  %v3099_v1 = vmul.f32 %v7748_v33, %v7734_v41  ;;  %v3102_v10 = vmul.f32 %v7748_v33, %v7738_v59  ;;  %v3251_v59 = vld [vmem:[%s10226_s9 + $0x48] sm:$0xff] }
0x1b0c   :  { %v3105_v50 = vmul.f32 %v7748_v33, %v7742_v0  ;;  %v7105_v58 = vpack.c.bf16 %v3245_v7, %v3244_v44  ;;  %v7123_v42 = vpack.c.bf16 %v3251_v59, %v3250_v32  ;;  %v7129_v63 = vpack.c.bf16 %v3253_v62, %v3252_v28  ;;  %v6444_v0 = vpop.f32.mrb[32].mxu1 }
0x1b0d   :  { %v3097_v52 = vmul.f32 %v7722_v54, %v3094_v14  ;;  %v3121_v53 = vcombine.low %v3098_v51, %v3099_v1  ;;  %v3100_v31 = vmul.f32 %v7724_v56, %v3094_v14  ;;  %v3103_v49 = vmul.f32 %v7726_v24, %v3094_v14  ;;  %v3246_v54 = vld [vmem:[%s10226_s9 + $0x20] sm:$0xff]  ;;  %v3247_v56 = vld [vmem:[%s10226_s9 + $0x28] sm:$0xff]  ;;  %v3549_v4 = vpop.f32.mrb[33].mxu1 }
0x1b0e   :  { %v3124_v60 = vcombine.low %v3104_v15, %v3105_v50  ;;  %v3106_v19 = vmul.f32 %v7728_v20, %v3094_v14  ;;  %v7111_v24 = vpack.c.bf16 %v3247_v56, %v3246_v54  ;;  %v3249_v20 = vld [vmem:[%s10226_s9 + $0x38] sm:$0xff]  ;;  %v3550_v55 = vadd.f32 %v9466_v30, %v3549_v4 }
0x1b0f   :  { %v3120_v57 = vcombine.low %v3096_v22, %v3097_v52  ;;  %v3122_v48 = vcombine.low %v3100_v31, %v3101_v8  ;;  %v3123_v25 = vcombine.low %v3102_v10, %v3103_v49  ;;  %v3555_v13 = vadd.f32 %v6444_v0, %v9466_v30 }
0x1b10   :  { %v3125_v41 = vcombine.low %v3106_v19, %v3107_v3  ;;  %v3560_v18 = vcombine.high %v3550_v55, %v3550_v55  ;;  %3583 = vrot.lane.b32.xlu1 %v3550_v55, %s7911_s25 }
0x1b11   :  { %6376 = vmatprep.mubr.msk.f32.mxu0 %vm3076_vm14, %v3120_v57 }
0x1b12   :  { %6377 = vmatmul.mubr.msk.f32.vlgmr.msra.gmra.mrb[28].mxu0 %vm3076_vm14, %v3121_v53  ;;  %3585 = vrot.lane.b32.xlu0 %v3560_v18, %s7911_s25 }
0x1b13   :  { %6379 = vmatprep.mubr.msk.f32.mxu0 %vm3076_vm14, %v3122_v48  ;;  %7104 = vmatpush3.bf16.xpose.msk.msra.mxu0 %vm8010_vm1, %v9280_v43  ;;  %v3248_v43 = vld [vmem:[%s10226_s9 + $0x30] sm:$0xff] }
0x1b14   :  { %7107 = vmatprep.subr.msk.bf16.mxu0 %vm8010_vm1, %v7105_v58  ;;  %v7117_v34 = vpack.c.bf16 %v3249_v20, %v3248_v43  ;;  %3587 = vrot.lane.b32.xlu1 %v3555_v13, %s7911_s25 }
0x1b16   :  { %6380 = vmatmul.mubr.msk.f32.gmra.mrb[30].mxu0 %vm3076_vm14, %v3123_v25 }
0x1b17   :  { %6382 = vmatprep.mubr.msk.f32.mxu0 %vm3076_vm14, %v3124_v60 }
0x1b1a   :  { %6383 = vmatmul.mubr.msk.f32.gmra.mrb[32].mxu0 %vm3076_vm14, %v3125_v41 }
0x1b1b   :  { %7110 = vmatpush3.bf16.xpose.msk.msra.mxu0 %vm8010_vm1, %v7105_v58 }
0x1b1c   :  { %7113 = vmatprep.subr.msk.bf16.mxu0 %vm8010_vm1, %v7111_v24 }
0x1b23   :  { %7116 = vmatpush3.bf16.xpose.msk.msra.mxu0 %vm8010_vm1, %v7111_v24 }
0x1b24   :  { %7119 = vmatprep.subr.msk.bf16.mxu0 %vm8010_vm1, %v7117_v34 }
0x1b2b   :  { %7122 = vmatpush3.bf16.xpose.msk.msra.mxu0 %vm8010_vm1, %v7117_v34 }
0x1b2c   :  { %7125 = vmatprep.subr.msk.bf16.mxu0 %vm8010_vm1, %v7123_v42 }
0x1b33   :  { %7128 = vmatpush3.bf16.xpose.msk.msra.mxu0 %vm8010_vm1, %v7123_v42 }
0x1b34   :  { %7131 = vmatprep.subr.msk.bf16.mxu0 %vm8010_vm1, %v7129_v63 }
0x1b3b   :  { %7134 = vmatpush3.bf16.xpose.msk.msra.mxu0 %vm8010_vm1, %v7129_v63 }
0x1b3c   :  { %7173 = vmatprep.subr.msk.bf16.mxu0 %vm8010_vm1, %v9258_v27 }
0x1b82   :  { %v3584_v56 = vpop.permute.xlu1 %3583 }
0x1b84   :  { %v3586_v43 = vpop.permute.xlu0 %3585 }
0x1b86   :  { %v3588_v59 = vpop.permute.xlu1 %3587 }
0x1be5   :  { %v6378_v26 = vpop.f32.mrb[28].mxu0 }
0x1be6   :  { %v3207_v16 = vpop.f32.mrb[29].mxu0  ;;  %v9477_v40 = vmul.f32 %v6378_v26, %v9191_v36 }
0x1be7   :  { %v9474_v17 = vmul.f32 %v3207_v16, %v9184_v61 }
0x1be9   :  { %v6381_v9 = vpop.f32.mrb[30].mxu0  ;;  %6409 = vmatprep.mubr.msk.f32.mxu0 %vm83_vm0, %v9474_v17 }
0x1bea   :  { %v3217_v45 = vpop.f32.mrb[31].mxu0  ;;  %6410 = vmatmul.mubr.msk.f32.vlgmr.msra.gmra.mrb[34].mxu0 %vm83_vm0, %v9477_v40  ;;  %v9490_v61 = vmul.f32 %v6381_v9, %v9197_v37  ;;  %v5440_v37 = vld [vmem:[%s10228_s11] ss:$0 sm:$0xff] }
0x1beb   :  { %v9484_v38 = vmul.f32 %v3217_v45, %v9199_v12  ;;  %7176 = vmatpush3.bf16.xpose.msk.msra.mxu0 %vm8010_vm1, %v9258_v27 }
0x1bec   :  { %7179 = vmatprep.subr.msk.bf16.mxu0 %vm8010_vm1, %v9263_v35 }
0x1bed   :  { %v6384_v36 = vpop.f32.mrb[32].mxu0  ;;  %6412 = vmatprep.mubr.msk.f32.mxu0 %vm83_vm0, %v9484_v38 }
0x1bee   :  { %v3227_v23 = vpop.f32.mrb[33].mxu0  ;;  %6413 = vmatmul.mubr.msk.f32.gmra.mrb[36].mxu0 %vm83_vm0, %v9490_v61  ;;  %v9503_v33 = vmul.f32 %v6384_v36, %v9206_v39 }
0x1bef   :  { %v9500_v12 = vmul.f32 %v3227_v23, %v9201_v29 }
0x1bf1   :  { %6415 = vmatprep.mubr.msk.f32.mxu0 %vm83_vm0, %v9500_v12 }
0x1bf2   :  { %6416 = vmatmul.mubr.msk.f32.gmra.mrb[38].mxu0 %vm83_vm0, %v9503_v33 }
0x1bf3   :  { %7182 = vmatpush3.bf16.xpose.msk.msra.mxu0 %vm8010_vm1, %v9263_v35 }
0x1bf4   :  { %7185 = vmatprep.subr.msk.bf16.mxu0 %vm8010_vm1, %v9291_v21 }
0x1bfb   :  { %7188 = vmatpush3.bf16.xpose.msk.msra.mxu0 %vm8010_vm1, %v9291_v21 }
0x1bfc   :  { %7191 = vmatprep.subr.msk.bf16.mxu0 %vm8010_vm1, %v9305_v6 }
0x1c03   :  { %7194 = vmatpush3.bf16.xpose.msk.msra.mxu0 %vm8010_vm1, %v9305_v6 }
0x1c04   :  { %7197 = vmatprep.subr.msk.bf16.mxu0 %vm8010_vm1, %v9319_v46 }
0x1c0b   :  { %7200 = vmatpush3.bf16.xpose.msk.msra.mxu0 %vm8010_vm1, %v9319_v46 }
0x1c0c   :  { %7203 = vmatprep.subr.msk.bf16.mxu0 %vm8010_vm1, %v9333_v47 }
0x1c13   :  { %7206 = vmatpush3.bf16.xpose.msk.msra.mxu0 %vm8010_vm1, %v9333_v47 }
0x1c14   :  { %7245 = vmatprep.subr.msk.bf16.mxu0 %vm8010_vm1, %v9258_v27 }
0x1cbd   :  { %v6411_v29 = vpop.f32.mrb[34].mxu0 }
0x1cbe   :  { %v9542_v39 = vadd.f32 %v6411_v29, %v5440_v37  ;;  %v3381_v51 = vpop.f32.mrb[35].mxu0 }
0x1cbf   :  { %v3382_v8 = vadd.f32 %v5440_v37, %v3381_v51 }
0x1cc0   :  { %v3564_v15 = vadd.f32 %v3555_v13, %v9542_v39 }
0x1cc1   :  { %v3416_v3 = vcombine.high %v3382_v8, %v3382_v8  ;;  %v3562_v14 = vadd.f32 %v3550_v55, %v3382_v8  ;;  %v6414_v22 = vpop.f32.mrb[36].mxu0 }
0x1cc2   :  { %v5474_v1 = vmul.f32 -1.442695, %v3564_v15  ;;  %v9545_v10 = vadd.f32 %v6414_v22, %v5440_v37  ;;  %v3391_v50 = vpop.f32.mrb[37].mxu0 }
0x1cc3   :  { %v3563_v52 = vadd.f32 %v3560_v18, %v3416_v3  ;;  %v5472_v53 = vmul.f32 -1.442695, %v3562_v14  ;;  %v9547_v31 = vadd.f32 %v5440_v37, %v3391_v50 }
0x1cc4   :  { %7749 = vpow2.f32 %v5474_v1 }
0x1cc5   :  { %7751 = vpow2.f32 %v5472_v53  ;;  %v5473_v49 = vmul.f32 -1.442695, %v3563_v52  ;;  %v6417_v44 = vpop.f32.mrb[38].mxu0 }
0x1cc6   :  { %v9549_v7 = vadd.f32 %v6417_v44, %v5440_v37  ;;  %v3401_v60 = vpop.f32.mrb[39].mxu0 }
0x1cc7   :  { %7753 = vpow2.f32 %v5473_v49  ;;  %v9551_v19 = vadd.f32 %v5440_v37, %v3401_v60 }
0x1cce   :  { %v7750_v57 = vpop.eup %7749 }
0x1ccf   :  { %v7752_v48 = vpop.eup %7751  ;;  %v3576_v25 = vadd.f32 1.0, %v7750_v57 }
0x1cd0   :  { %v3574_v41 = vadd.f32 1.0, %v7752_v48 }
0x1cd1   :  { %v7754_v58 = vpop.eup %7753 }
0x1cd2   :  { %v3575_v54 = vadd.f32 1.0, %v7754_v58  ;;  %7755 = vrcp.f32 %v3574_v41 }
0x1cd3   :  { %7757 = vrcp.f32 %v3576_v25 }
0x1cd4   :  { %7759 = vrcp.f32 %v3575_v54 }
0x1cdc   :  { %v7756_v24 = vpop.eup %7755 }
0x1cdd   :  { %v7758_v20 = vpop.eup %7757  ;;  %v3592_v34 = vmul.f32 %v7756_v24, %v3584_v56  ;;  %v3613_v9 = vsub.f32 1.0, %v7756_v24  ;;  %v3631_v29 = vmul.f32 0.0, %v7756_v24 }
0x1cde   :  { %v7760_v32 = vpop.eup %7759  ;;  %v3594_v28 = vmul.f32 %v7758_v20, %v3588_v59  ;;  %v3615_v15 = vsub.f32 1.0, %v7758_v20  ;;  %v3633_v1 = vmul.f32 0.0, %v7758_v20 }
0x1cdf   :  { %v3593_v42 = vmul.f32 %v7760_v32, %v3586_v43  ;;  %3598 = vrot.lane.b32.xlu0 %v3592_v34, %s7911_s25  ;;  %v3614_v23 = vsub.f32 1.0, %v7760_v32  ;;  %v3632_v51 = vmul.f32 0.0, %v7760_v32 }
0x1ce1   :  { %3600 = vrot.lane.b32.xlu1 %v3593_v42, %s7911_s25 }
0x1ce3   :  { %3602 = vrot.lane.b32.xlu0 %v3594_v28, %s7911_s25 }
0x1d51   :  { %v3599_v62 = vpop.permute.xlu0 %3598 }
0x1d52   :  { %v3607_v63 = vadd.f32 %v3599_v62, %v3382_v8 }
0x1d53   :  { %v3601_v0 = vpop.permute.xlu1 %3600 }
0x1d54   :  { %7761 = vtanh.f32 %v3607_v63  ;;  %v3608_v4 = vadd.f32 %v3601_v0, %v3416_v3 }
0x1d55   :  { %v3603_v55 = vpop.permute.xlu0 %3602 }
0x1d56   :  { %7763 = vtanh.f32 %v3608_v4  ;;  %v3609_v13 = vadd.f32 %v3603_v55, %v9542_v39 }
0x1d58   :  { %7765 = vtanh.f32 %v3609_v13 }
0x1d5e   :  { %v7762_v18 = vpop.eup %7761 }
0x1d5f   :  { %3619 = vrot.lane.b32.xlu1 %v7762_v18, %s7908_s2 }
0x1d60   :  { %v7764_v26 = vpop.eup %7763 }
0x1d61   :  { %3621 = vrot.lane.b32.xlu0 %v7764_v26, %s7908_s2 }
0x1d62   :  { %v7766_v16 = vpop.eup %7765 }
0x1d63   :  { %3623 = vrot.lane.b32.xlu1 %v7766_v16, %s7908_s2 }
0x1dd1   :  { %v3620_v45 = vpop.permute.xlu1 %3619 }
0x1dd2   :  { %v3628_v36 = vmul.f32 %v3620_v45, %v3613_v9 }
0x1dd3   :  { %v3622_v37 = vpop.permute.xlu0 %3621 }
0x1dd4   :  { %v3629_v8 = vmul.f32 %v3622_v37, %v3614_v23  ;;  %v9560_v14 = vadd.f32 %v3631_v29, %v3628_v36 }
0x1dd5   :  { %v3624_v3 = vpop.permute.xlu1 %3623 }
0x1dd6   :  { %v9562_v22 = vadd.f32 %v3632_v51, %v3629_v8  ;;  %v3630_v50 = vmul.f32 %v3624_v3, %v3615_v15  ;;  %v5527_v8 = vld [vmem:[%s10226_s9 + $0x68] sm:$0xff] }
0x1dd8   :  { %v9566_v52 = vcombine.low %v9560_v14, %v9562_v22  ;;  %v9568_v53 = vadd.f32 %v3633_v1, %v3630_v50 }
0x1dda   :  { %3651 = vrot.lane.b32.xlu0 %v9566_v52, %s7908_s2  ;;  %3653 = vrot.lane.b32.xlu1 %v9568_v53, %s7908_s2  ;;  %v3642_v29 = vsel %vm1044_vm6, %v9566_v52, -inf  ;;  %v3643_v51 = vsel %vm1046_vm7, %v9568_v53, -inf }
0x1ddb   :  { %v3644_v3 = vmax.f32 %v3642_v29, %v3643_v51  ;;  %v5536_v29 = vld [vmem:[%s10226_s9 + $0xb0] sm:$0xff]  ;;  %v5537_v51 = vld [vmem:[%s10226_s9 + $0xb8] sm:$0xff] }
0x1e4c   :  { %v3652_v49 = vpop.permute.xlu0 %3651  ;;  %v3654_v44 = vpop.permute.xlu1 %3653 }
0x1e4d   :  { %6469 = vmatprep.mubr.msk.f32.mxu0 %vm83_vm0, %v3652_v49 }
0x1e4e   :  { %6470 = vmatmul.mubr.msk.f32.vlgmr.msra.gmra.mrb[40].mxu0 %vm83_vm0, %v3654_v44  ;;  %v3645_v44 = vrot.slane %v3644_v3, 4 }
0x1e4f   :  { %7248 = vmatpush3.bf16.xpose.msk.msra.mxu0 %vm8010_vm1, %v9258_v27 }
0x1e50   :  { %7251 = vmatprep.subr.msk.bf16.mxu0 %vm8010_vm1, %v9263_v35 }
0x1e57   :  { %7254 = vmatpush3.bf16.xpose.msk.msra.mxu0 %vm8010_vm1, %v9263_v35 }
0x1e58   :  { %7257 = vmatprep.subr.msk.bf16.mxu0 %vm8010_vm1, %v9291_v21 }
0x1e5f   :  { %7260 = vmatpush3.bf16.xpose.msk.msra.mxu0 %vm8010_vm1, %v9291_v21 }
0x1e60   :  { %7263 = vmatprep.subr.msk.bf16.mxu0 %vm8010_vm1, %v9305_v6 }
0x1e67   :  { %7266 = vmatpush3.bf16.xpose.msk.msra.mxu0 %vm8010_vm1, %v9305_v6 }
0x1e68   :  { %7269 = vmatprep.subr.msk.bf16.mxu0 %vm8010_vm1, %v9319_v46 }
0x1e6f   :  { %7272 = vmatpush3.bf16.xpose.msk.msra.mxu0 %vm8010_vm1, %v9319_v46  ;;  %v3417_v46 = vcombine.high %v9542_v39, %v9542_v39 }
0x1e70   :  { %7275 = vmatprep.subr.msk.bf16.mxu0 %vm8010_vm1, %v9333_v47 }
0x1e77   :  { %7278 = vmatpush3.bf16.xpose.msk.msra.mxu0 %vm8010_vm1, %v9333_v47  ;;  %v3418_v47 = vcombine.high %v9547_v31, %v9547_v31 }
0x1f21   :  { %v6471_v27 = vpop.f32.mrb[40].mxu0 }
0x1f22   :  { %v3725_v35 = vpop.f32.mrb[41].mxu0  ;;  %v3731_v60 = vadd.f32 %v6471_v27, %v9466_v30 }
0x1f23   :  { %v3726_v21 = vadd.f32 %v9466_v30, %v3725_v35 }
0x1f24   :  { %v3740_v25 = vadd.f32 %v3731_v60, %v3418_v47 }
0x1f25   :  { %v3736_v6 = vcombine.high %v3726_v21, %v3726_v21  ;;  %3759 = vrot.lane.b32.xlu0 %v3726_v21, %s7911_s25  ;;  %v3738_v57 = vadd.f32 %v3726_v21, %v3417_v46 }
0x1f26   :  { %v5491_v54 = vmul.f32 -1.442695, %v3740_v25 }
0x1f27   :  { %3761 = vrot.lane.b32.xlu1 %v3736_v6, %s7911_s25  ;;  %v3739_v48 = vadd.f32 %v3736_v6, %v9547_v31  ;;  %v5489_v41 = vmul.f32 -1.442695, %v3738_v57 }
0x1f29   :  { %3763 = vrot.lane.b32.xlu0 %v3731_v60, %s7911_s25  ;;  %v5490_v58 = vmul.f32 -1.442695, %v3739_v48  ;;  %7767 = vpow2.f32 %v5489_v41  ;;  %v3646_v41 = vmax.f32 %v3644_v3, %v3645_v44 }
0x1f2b   :  { %7769 = vpow2.f32 %v5490_v58 }
0x1f2c   :  { %7771 = vpow2.f32 %v5491_v54 }
0x1f33   :  { %v7768_v56 = vpop.eup %7767 }
0x1f34   :  { %v3750_v43 = vadd.f32 1.0, %v7768_v56  ;;  %v3647_v56 = vrot.slane %v3646_v41, 2 }
0x1f35   :  { %v7770_v24 = vpop.eup %7769 }
0x1f36   :  { %v7772_v20 = vpop.eup %7771  ;;  %v3751_v34 = vadd.f32 1.0, %v7770_v24  ;;  %7773 = vrcp.f32 %v3750_v43  ;;  %v3648_v43 = vmax.f32 %v3646_v41, %v3647_v56 }
0x1f37   :  { %v3752_v32 = vadd.f32 1.0, %v7772_v20 }
0x1f38   :  { %7775 = vrcp.f32 %v3751_v34 }
0x1f39   :  { %7777 = vrcp.f32 %v3752_v32  ;;  %v3649_v32 = vrot.slane %v3648_v43, 1 }
0x1f40   :  { %v7774_v39 = vpop.eup %7773 }
0x1f41   :  { %v3789_v1 = vsub.f32 1.0, %v7774_v39  ;;  %v3807_v35 = vmul.f32 %v7774_v39, %v9560_v14 }
0x1f42   :  { %v7776_v28 = vpop.eup %7775 }
0x1f43   :  { %v7778_v0 = vpop.eup %7777  ;;  %v3790_v52 = vsub.f32 1.0, %v7776_v28  ;;  %v3808_v21 = vmul.f32 %v7776_v28, %v9562_v22 }
0x1f44   :  { %v3791_v60 = vsub.f32 1.0, %v7778_v0  ;;  %v3809_v48 = vmul.f32 %v7778_v0, %v9568_v53 }
0x1f97   :  { %v3760_v59 = vpop.permute.xlu0 %3759 }
0x1f98   :  { %v3768_v42 = vmul.f32 %v7774_v39, %v3760_v59 }
0x1f99   :  { %v3762_v62 = vpop.permute.xlu1 %3761 }
0x1f9a   :  { %v3769_v63 = vmul.f32 %v7776_v28, %v3762_v62  ;;  %3774 = vrot.lane.b32.xlu1 %v3768_v42, %s7911_s25  ;;  %v3650_v42 = vmax.f32 %v3648_v43, %v3649_v32 }
0x1f9b   :  { %v3764_v4 = vpop.permute.xlu0 %3763 }
0x1f9c   :  { %v3770_v55 = vmul.f32 %v7778_v0, %v3764_v4  ;;  %3776 = vrot.lane.b32.xlu0 %v3769_v63, %s7911_s25  ;;  %v5528_v63 = vld [vmem:[%s10226_s9 + $0x70] sm:$0xff]  ;;  %v5529_v0 = vld [vmem:[%s10226_s9 + $0x78] sm:$0xff] }
0x1f9e   :  { %3778 = vrot.lane.b32.xlu1 %v3770_v55, %s7911_s25 }
0x200c   :  { %v3775_v13 = vpop.permute.xlu1 %3774 }
0x200d   :  { %v3783_v18 = vadd.f32 %v3775_v13, %v3417_v46  ;;  %v7285_v13 = vpack.c.bf16 %v5529_v0, %v5528_v63 }
0x200e   :  { %v3777_v26 = vpop.permute.xlu0 %3776 }
0x200f   :  { %7779 = vtanh.f32 %v3783_v18  ;;  %v3784_v16 = vadd.f32 %v3777_v26, %v9547_v31  ;;  %v5526_v31 = vld [vmem:[%s10226_s9 + $0x60] sm:$0xff]  ;;  %v5531_v26 = vld [vmem:[%s10226_s9 + $0x88] sm:$0xff] }
0x2010   :  { %v3779_v9 = vpop.permute.xlu1 %3778  ;;  %v7279_v15 = vpack.c.bf16 %v5527_v8, %v5526_v31  ;;  %v5530_v18 = vld [vmem:[%s10226_s9 + $0x80] sm:$0xff]  ;;  %v7309_v31 = vpack.c.bf16 %v5537_v51, %v5536_v29 }
0x2011   :  { %7781 = vtanh.f32 %v3784_v16  ;;  %v3785_v45 = vadd.f32 %v3779_v9, %v3418_v47  ;;  %v7291_v16 = vpack.c.bf16 %v5531_v26, %v5530_v18  ;;  %v5533_v9 = vld [vmem:[%s10226_s9 + $0x98] sm:$0xff] }
0x2012   :  { %7281 = vmatprep.subr.msk.bf16.mxu1 %vm8010_vm1, %v7279_v15 }
0x2013   :  { %7783 = vtanh.f32 %v3785_v45 }
0x2019   :  { %v7780_v36 = vpop.eup %7779 }
0x201a   :  { %3795 = vrot.lane.b32.xlu0 %v7780_v36, %s7908_s2  ;;  %v5534_v36 = vld [vmem:[%s10226_s9 + $0xa0] sm:$0xff] }
0x201b   :  { %v7782_v23 = vpop.eup %7781 }
0x201c   :  { %3797 = vrot.lane.b32.xlu1 %v7782_v23, %s7908_s2  ;;  %v5535_v23 = vld [vmem:[%s10226_s9 + $0xa8] sm:$0xff] }
0x201d   :  { %v7784_v37 = vpop.eup %7783 }
0x201e   :  { %3799 = vrot.lane.b32.xlu0 %v7784_v37, %s7908_s2  ;;  %v7303_v37 = vpack.c.bf16 %v5535_v23, %v5534_v36  ;;  %v5560_v23 = vld [vmem:[%s10225_s10 + $0x70] sm:$0xff] }
0x208c   :  { %v3796_v50 = vpop.permute.xlu0 %3795 }
0x208d   :  { %v3804_v49 = vmul.f32 %v3796_v50, %v3789_v1 }
0x208e   :  { %v3798_v27 = vpop.permute.xlu1 %3797 }
0x208f   :  { %v3805_v6 = vmul.f32 %v3798_v27, %v3790_v52  ;;  %v9640_v57 = vadd.f32 %v3807_v35, %v3804_v49 }
0x2090   :  { %v3800_v46 = vpop.permute.xlu0 %3799 }
0x2091   :  { %v9642_v47 = vadd.f32 %v3808_v21, %v3805_v6  ;;  %v3806_v25 = vmul.f32 %v3800_v46, %v3791_v60  ;;  %v3419_v21 = vcombine.high %v9545_v10, %v9545_v10 }
0x2093   :  { %v3816_v58 = vcombine.low %v9640_v57, %v9642_v47  ;;  %v9647_v54 = vadd.f32 %v3809_v48, %v3806_v25 }
0x2095   :  { %v3818_v14 = vsel %vm1044_vm6, %v3816_v58, -inf  ;;  %v3819_v22 = vsel %vm1046_vm7, %v9647_v54, -inf  ;;  %3827 = vrot.lane.b32.xlu1 %v3816_v58, %s7908_s2  ;;  %3829 = vrot.lane.b32.xlu0 %v9647_v54, %s7908_s2 }
0x2096   :  { %v3820_v24 = vmax.f32 %v3818_v14, %v3819_v22 }
0x2098   :  { %v3821_v53 = vrot.slane %v3820_v24, 4 }
0x209a   :  { %v3822_v20 = vmax.f32 %v3820_v24, %v3821_v53 }
0x209c   :  { %v3823_v34 = vrot.slane %v3822_v20, 2 }
0x209e   :  { %v3824_v39 = vmax.f32 %v3822_v20, %v3823_v34 }
0x20a0   :  { %v3825_v59 = vrot.slane %v3824_v39, 1 }
0x20a2   :  { %v3826_v28 = vmax.f32 %v3824_v39, %v3825_v59 }
0x20a4   :  { %v9656_v62 = vsel %vm1582_vm8, %v3650_v42, %v3826_v28 }
0x2107   :  { %v3828_v4 = vpop.permute.xlu1 %3827  ;;  %v3830_v55 = vpop.permute.xlu0 %3829 }
0x2108   :  { %6496 = vmatprep.mubr.msk.f32.mxu1 %vm83_vm0, %v3828_v4 }
0x2109   :  { %6497 = vmatmul.mubr.msk.f32.vlgmr.msra.gmra.mrb[34].mxu1 %vm83_vm0, %v3830_v55 }
0x210a   :  { %7284 = vmatpush3.bf16.xpose.msk.msra.mxu1 %vm8010_vm1, %v7279_v15  ;;  %6550 = vmatprep.mubr.msk.f32.mxu1 %vm83_vm0, %v9474_v17  ;;  %v5532_v17 = vld [vmem:[%s10226_s9 + $0x90] sm:$0xff] }
0x210b   :  { %7287 = vmatprep.subr.msk.bf16.mxu1 %vm8010_vm1, %v7285_v13  ;;  %v7297_v45 = vpack.c.bf16 %v5533_v9, %v5532_v17 }
0x2112   :  { %7290 = vmatpush3.bf16.xpose.msk.msra.mxu1 %vm8010_vm1, %v7285_v13 }
0x2113   :  { %7293 = vmatprep.subr.msk.bf16.mxu1 %vm8010_vm1, %v7291_v16 }
0x211a   :  { %7296 = vmatpush3.bf16.xpose.msk.msra.mxu1 %vm8010_vm1, %v7291_v16 }
0x211b   :  { %7299 = vmatprep.subr.msk.bf16.mxu1 %vm8010_vm1, %v7297_v45 }
0x2122   :  { %7302 = vmatpush3.bf16.xpose.msk.msra.mxu1 %vm8010_vm1, %v7297_v45  ;;  %v5559_v45 = vld [vmem:[%s10225_s10 + $0x68] sm:$0xff] }
0x2123   :  { %7305 = vmatprep.subr.msk.bf16.mxu1 %vm8010_vm1, %v7303_v37 }
0x212a   :  { %7308 = vmatpush3.bf16.xpose.msk.msra.mxu1 %vm8010_vm1, %v7303_v37  ;;  %v5561_v37 = vld [vmem:[%s10225_s10 + $0x78] sm:$0xff] }
0x212b   :  { %7311 = vmatprep.subr.msk.bf16.mxu1 %vm8010_vm1, %v7309_v31  ;;  %v9779_v51 = vpack.c.bf16 %v5561_v37, %v5560_v23 }
0x2132   :  { %7314 = vmatpush3.bf16.xpose.msk.msra.mxu1 %vm8010_vm1, %v7309_v31 }
0x2139   :  { %6551 = vmatmul.mubr.msk.f32.vlgmr.msra.gmra.mrb[36].mxu1 %vm83_vm0, %v9477_v40 }
0x213a   :  { %6553 = vmatprep.mubr.msk.f32.mxu1 %vm83_vm0, %v9484_v38  ;;  %v9732_v38 = vld [vmem:[%s10228_s11 + $0x1] ss:$0 sm:$0xff] }
0x213d   :  { %6554 = vmatmul.mubr.msk.f32.gmra.mrb[38].mxu1 %vm83_vm0, %v9490_v61 }
0x213e   :  { %6556 = vmatprep.mubr.msk.f32.mxu1 %vm83_vm0, %v9500_v12 }
0x2141   :  { %6557 = vmatmul.mubr.msk.f32.gmra.mrb[40].mxu1 %vm83_vm0, %v9503_v33 }
0x21dc   :  { %v6498_v8 = vpop.f32.mrb[34].mxu1 }
0x21dd   :  { %v3901_v15 = vpop.f32.mrb[35].mxu1  ;;  %v3907_v40 = vadd.f32 %v6498_v8, %v9466_v30 }
0x21de   :  { %v3902_v3 = vadd.f32 %v9466_v30, %v3901_v15 }
0x21df   :  { %v3916_v46 = vadd.f32 %v3907_v40, %v9551_v19 }
0x21e0   :  { %v3912_v1 = vcombine.high %v3902_v3, %v3902_v3  ;;  %3935 = vrot.lane.b32.xlu1 %v3902_v3, %s7911_s25  ;;  %v3914_v6 = vadd.f32 %v3902_v3, %v9545_v10 }
0x21e1   :  { %v5508_v41 = vmul.f32 -1.442695, %v3916_v46  ;;  %v5562_v46 = vld [vmem:[%s10225_s10 + $0x80] sm:$0xff] }
0x21e2   :  { %3937 = vrot.lane.b32.xlu0 %v3912_v1, %s7911_s25  ;;  %v3915_v60 = vadd.f32 %v3912_v1, %v3419_v21  ;;  %v5506_v48 = vmul.f32 -1.442695, %v3914_v6 }
0x21e4   :  { %3939 = vrot.lane.b32.xlu1 %v3907_v40, %s7911_s25  ;;  %v5507_v25 = vmul.f32 -1.442695, %v3915_v60  ;;  %7785 = vpow2.f32 %v5506_v48 }
0x21e6   :  { %7787 = vpow2.f32 %v5507_v25 }
0x21e7   :  { %7789 = vpow2.f32 %v5508_v41 }
0x21ee   :  { %v7786_v58 = vpop.eup %7785 }
0x21ef   :  { %v3926_v22 = vadd.f32 1.0, %v7786_v58 }
0x21f0   :  { %v7788_v14 = vpop.eup %7787 }
0x21f1   :  { %v7790_v56 = vpop.eup %7789  ;;  %v3927_v24 = vadd.f32 1.0, %v7788_v14  ;;  %7791 = vrcp.f32 %v3926_v22 }
0x21f2   :  { %v3928_v53 = vadd.f32 1.0, %v7790_v56  ;;  %v5564_v56 = vld [vmem:[%s10225_s10 + $0x90] sm:$0xff] }
0x21f3   :  { %7793 = vrcp.f32 %v3927_v24  ;;  %v5565_v24 = vld [vmem:[%s10225_s10 + $0x98] sm:$0xff] }
0x21f4   :  { %7795 = vrcp.f32 %v3928_v53  ;;  %v9827_v53 = vpack.c.bf16 %v5565_v24, %v5564_v56 }
0x21fb   :  { %v7792_v43 = vpop.eup %7791 }
0x21fc   :  { %v3965_v29 = vsub.f32 1.0, %v7792_v43  ;;  %v3983_v1 = vmul.f32 %v7792_v43, %v9640_v57  ;;  %v5563_v57 = vld [vmem:[%s10225_s10 + $0x88] sm:$0xff] }
0x21fd   :  { %v7794_v32 = vpop.eup %7793  ;;  %v9807_v25 = vpack.c.bf16 %v5563_v57, %v5562_v46 }
0x21fe   :  { %v7796_v42 = vpop.eup %7795  ;;  %v3966_v15 = vsub.f32 1.0, %v7794_v32  ;;  %v3984_v40 = vmul.f32 %v7794_v32, %v9642_v47 }
0x21ff   :  { %v3985_v6 = vmul.f32 %v7796_v42, %v9647_v54 }
0x220c   :  { %v6552_v61 = vpop.f32.mrb[36].mxu1 }
0x220d   :  { %v9735_v12 = vadd.f32 %v6552_v61, %v9732_v38  ;;  %v4304_v33 = vpop.f32.mrb[37].mxu1 }
0x220e   :  { %v9738_v50 = vadd.f32 %v9732_v38, %v4304_v33  ;;  %v3967_v33 = vsub.f32 1.0, %v7796_v42 }
0x2210   :  { %v6555_v49 = vpop.f32.mrb[38].mxu1 }
0x2211   :  { %v9741_v30 = vadd.f32 %v6555_v49, %v9732_v38  ;;  %v4314_v52 = vpop.f32.mrb[39].mxu1 }
0x2212   :  { %v9744_v44 = vadd.f32 %v9732_v38, %v4314_v52 }
0x2214   :  { %v9746_v27 = vpop.f32.mrb[40].mxu1 }
0x2215   :  { %v9748_v35 = vpop.f32.mrb[41].mxu1  ;;  %v4330_v23 = vadd.f32 %v9746_v27, %v9732_v38 }
0x2252   :  { %v3936_v20 = vpop.permute.xlu1 %3935 }
0x2253   :  { %v3944_v34 = vmul.f32 %v7792_v43, %v3936_v20 }
0x2254   :  { %v3938_v39 = vpop.permute.xlu0 %3937 }
0x2255   :  { %v3945_v59 = vmul.f32 %v7794_v32, %v3938_v39  ;;  %3950 = vrot.lane.b32.xlu0 %v3944_v34, %s7911_s25  ;;  %v5566_v32 = vld [vmem:[%s10225_s10 + $0xa0] sm:$0xff]  ;;  %v5567_v39 = vld [vmem:[%s10225_s10 + $0xa8] sm:$0xff] }
0x2256   :  { %v3940_v28 = vpop.permute.xlu1 %3939 }
0x2257   :  { %v3946_v63 = vmul.f32 %v7796_v42, %v3940_v28  ;;  %3952 = vrot.lane.b32.xlu1 %v3945_v59, %s7911_s25  ;;  %v9841_v42 = vpack.c.bf16 %v5567_v39, %v5566_v32 }
0x2259   :  { %3954 = vrot.lane.b32.xlu0 %v3946_v63, %s7911_s25  ;;  %v5568_v63 = vld [vmem:[%s10225_s10 + $0xb0] sm:$0xff] }
0x22c7   :  { %v3951_v0 = vpop.permute.xlu0 %3950 }
0x22c8   :  { %v3959_v4 = vadd.f32 %v3951_v0, %v9545_v10  ;;  %v5558_v10 = vld [vmem:[%s10225_s10 + $0x60] sm:$0xff]  ;;  %v5569_v0 = vld [vmem:[%s10225_s10 + $0xb8] sm:$0xff] }
0x22c9   :  { %v3953_v55 = vpop.permute.xlu1 %3952  ;;  %v9768_v36 = vpack.c.bf16 %v5559_v45, %v5558_v10  ;;  %v9962_v45 = vadd.f32 %v9732_v38, %v9748_v35 }
0x22ca   :  { %7797 = vtanh.f32 %v3959_v4  ;;  %v3960_v13 = vadd.f32 %v3953_v55, %v3419_v21  ;;  %v9859_v4 = vpack.c.bf16 %v5569_v0, %v5568_v63 }
0x22cb   :  { %v3955_v18 = vpop.permute.xlu0 %3954  ;;  %7317 = vmatprep.subr.msk.bf16.mxu0 %vm8010_vm1, %v9768_v36  ;;  %7353 = vmatprep.subr.msk.bf16.mxu1 %vm8010_vm1, %v9768_v36  ;;  %v4343_v37 = vcombine.high %v9962_v45, %v9962_v45 }
0x22cc   :  { %7799 = vtanh.f32 %v3960_v13  ;;  %v3961_v26 = vadd.f32 %v3955_v18, %v9551_v19  ;;  %7356 = vmatpush3.bf16.xpose.msk.msra.mxu1 %vm8010_vm1, %v9768_v36  ;;  %v9953_v18 = vld [vmem:[%s10227_s12 + $0x1] ss:$0 sm:$0xff] }
0x22cd   :  { %7359 = vmatprep.subr.msk.bf16.mxu1 %vm8010_vm1, %v9779_v51 }
0x22ce   :  { %7801 = vtanh.f32 %v3961_v26 }
0x22d4   :  { %v7798_v16 = vpop.eup %7797  ;;  %7362 = vmatpush3.bf16.xpose.msk.msra.mxu1 %vm8010_vm1, %v9779_v51 }
0x22d5   :  { %3971 = vrot.lane.b32.xlu1 %v7798_v16, %s7908_s2  ;;  %7365 = vmatprep.subr.msk.bf16.mxu1 %vm8010_vm1, %v9807_v25 }
0x22d6   :  { %v7800_v17 = vpop.eup %7799 }
0x22d7   :  { %3973 = vrot.lane.b32.xlu0 %v7800_v17, %s7908_s2 }
0x22d8   :  { %v7802_v9 = vpop.eup %7801 }
0x22d9   :  { %3975 = vrot.lane.b32.xlu1 %v7802_v9, %s7908_s2 }
0x22dc   :  { %7368 = vmatpush3.bf16.xpose.msk.msra.mxu1 %vm8010_vm1, %v9807_v25 }
0x22dd   :  { %7371 = vmatprep.subr.msk.bf16.mxu1 %vm8010_vm1, %v9827_v53 }
0x22e4   :  { %7374 = vmatpush3.bf16.xpose.msk.msra.mxu1 %vm8010_vm1, %v9827_v53 }
0x22e5   :  { %7377 = vmatprep.subr.msk.bf16.mxu1 %vm8010_vm1, %v9841_v42 }
0x22ec   :  { %7380 = vmatpush3.bf16.xpose.msk.msra.mxu1 %vm8010_vm1, %v9841_v42 }
0x22ed   :  { %7383 = vmatprep.subr.msk.bf16.mxu1 %vm8010_vm1, %v9859_v4 }
0x22f4   :  { %7386 = vmatpush3.bf16.xpose.msk.msra.mxu1 %vm8010_vm1, %v9859_v4 }
0x22f5   :  { %7425 = vmatprep.subr.msk.bf16.mxu1 %vm8010_vm1, %v9768_v36 }
0x2347   :  { %v3972_v31 = vpop.permute.xlu1 %3971 }
0x2348   :  { %v3980_v8 = vmul.f32 %v3972_v31, %v3965_v29  ;;  %v4344_v31 = vcombine.high %v4330_v23, %v4330_v23 }
0x2349   :  { %v3974_v3 = vpop.permute.xlu0 %3973 }
0x234a   :  { %v3981_v61 = vmul.f32 %v3974_v3, %v3966_v15  ;;  %v9792_v52 = vadd.f32 %v3983_v1, %v3980_v8 }
0x234b   :  { %v3976_v49 = vpop.permute.xlu1 %3975 }
0x234c   :  { %v9794_v21 = vadd.f32 %v3984_v40, %v3981_v61  ;;  %v3982_v60 = vmul.f32 %v3976_v49, %v3967_v33 }
0x234e   :  { %v3992_v47 = vcombine.low %v9792_v52, %v9794_v21  ;;  %v9805_v48 = vadd.f32 %v3985_v6, %v3982_v60 }
0x2350   :  { %v3994_v54 = vsel %vm1044_vm6, %v3992_v47, -inf  ;;  %v3995_v41 = vsel %vm1046_vm7, %v9805_v48, -inf  ;;  %4003 = vrot.lane.b32.xlu0 %v3992_v47, %s7908_s2  ;;  %4005 = vrot.lane.b32.xlu1 %v9805_v48, %s7908_s2 }
0x2351   :  { %v3996_v58 = vmax.f32 %v3994_v54, %v3995_v41 }
0x2353   :  { %v3997_v14 = vrot.slane %v3996_v58, 4 }
0x2355   :  { %v3998_v22 = vmax.f32 %v3996_v58, %v3997_v14 }
0x2357   :  { %v3999_v43 = vrot.slane %v3998_v22, 2 }
0x2359   :  { %v4000_v20 = vmax.f32 %v3998_v22, %v3999_v43 }
0x235b   :  { %v4001_v34 = vrot.slane %v4000_v20, 1 }
0x235d   :  { %v4002_v59 = vmax.f32 %v4000_v20, %v4001_v34 }
0x235f   :  { %v9848_v28 = vsel %vm537_vm2, %v9656_v62, %v4002_v59 }
0x23c2   :  { %v4004_v62 = vpop.permute.xlu0 %4003  ;;  %v4006_v55 = vpop.permute.xlu1 %4005 }
0x23c3   :  { %6523 = vmatprep.mubr.msk.f32.mxu0 %vm83_vm0, %v4004_v62 }
0x23c4   :  { %6524 = vmatmul.mubr.msk.f32.vlgmr.msra.gmra.mrb[42].mxu0 %vm83_vm0, %v4006_v55 }
0x23c5   :  { %7320 = vmatpush3.bf16.xpose.msk.msra.mxu0 %vm8010_vm1, %v9768_v36  ;;  %6583 = vmatprep.mubr.f32.mxu0 %v7910_v5 }
0x23c6   :  { %7323 = vmatprep.subr.msk.bf16.mxu0 %vm8010_vm1, %v9779_v51 }
0x23cd   :  { %7326 = vmatpush3.bf16.xpose.msk.msra.mxu0 %vm8010_vm1, %v9779_v51 }
0x23ce   :  { %7329 = vmatprep.subr.msk.bf16.mxu0 %vm8010_vm1, %v9807_v25 }
0x23d5   :  { %7332 = vmatpush3.bf16.xpose.msk.msra.mxu0 %vm8010_vm1, %v9807_v25 }
0x23d6   :  { %7335 = vmatprep.subr.msk.bf16.mxu0 %vm8010_vm1, %v9827_v53 }
0x23dd   :  { %7338 = vmatpush3.bf16.xpose.msk.msra.mxu0 %vm8010_vm1, %v9827_v53 }
0x23de   :  { %7341 = vmatprep.subr.msk.bf16.mxu0 %vm8010_vm1, %v9841_v42 }
0x23e5   :  { %7344 = vmatpush3.bf16.xpose.msk.msra.mxu0 %vm8010_vm1, %v9841_v42 }
0x23e6   :  { %7347 = vmatprep.subr.msk.bf16.mxu0 %vm8010_vm1, %v9859_v4 }
0x23ed   :  { %7350 = vmatpush3.bf16.xpose.msk.msra.mxu0 %vm8010_vm1, %v9859_v4 }
0x23ee   :  { %7389 = vmatprep.subr.msk.bf16.mxu0 %vm8010_vm1, %v9768_v36 }
0x23f4   :  { %6584 = vmatmul.mubr.f32.vlgmr.msra.gmra.mrb[44].mxu0 %v7910_v5 }
0x23f5   :  { %7392 = vmatpush3.bf16.xpose.msk.msra.mxu0 %vm8010_vm1, %v9768_v36 }
0x23f6   :  { %7395 = vmatprep.subr.msk.bf16.mxu0 %vm8010_vm1, %v9779_v51 }
0x23fd   :  { %7398 = vmatpush3.bf16.xpose.msk.msra.mxu0 %vm8010_vm1, %v9779_v51 }
0x23fe   :  { %7401 = vmatprep.subr.msk.bf16.mxu0 %vm8010_vm1, %v9807_v25 }
0x2405   :  { %7404 = vmatpush3.bf16.xpose.msk.msra.mxu0 %vm8010_vm1, %v9807_v25 }
0x2406   :  { %7407 = vmatprep.subr.msk.bf16.mxu0 %vm8010_vm1, %v9827_v53 }
0x240d   :  { %7410 = vmatpush3.bf16.xpose.msk.msra.mxu0 %vm8010_vm1, %v9827_v53 }
0x240e   :  { %7413 = vmatprep.subr.msk.bf16.mxu0 %vm8010_vm1, %v9841_v42 }
0x2415   :  { %7416 = vmatpush3.bf16.xpose.msk.msra.mxu0 %vm8010_vm1, %v9841_v42 }
0x2416   :  { %7419 = vmatprep.subr.msk.bf16.mxu0 %vm8010_vm1, %v9859_v4 }
0x241d   :  { %7422 = vmatpush3.bf16.xpose.msk.msra.mxu0 %vm8010_vm1, %v9859_v4 }
0x2497   :  { %v9946_v5 = vpop.f32.mrb[42].mxu0 }
0x2498   :  { %v9948_v13 = vpop.f32.mrb[43].mxu0 }
0x24c7   :  { %v6585_v26 = vpop.f32.mrb[44].mxu0 }
0x24c8   :  { %v4474_v16 = vpop.f32.mrb[45].mxu0  ;;  %v4480_v10 = vadd.f32 %v6585_v26, %v9953_v18 }
0x24c9   :  { %v4475_v17 = vadd.f32 %v9953_v18, %v4474_v16 }
0x24ca   :  { %v4489_v15 = vadd.f32 %v4480_v10, %v4344_v31 }
0x24cb   :  { %v4485_v9 = vcombine.high %v4475_v17, %v4475_v17  ;;  %4508 = vrot.lane.b32.xlu0 %v4475_v17, %s7911_s25  ;;  %v4487_v29 = vadd.f32 %v4475_v17, %v4343_v37 }
0x24cc   :  { %v5586_v40 = vmul.f32 -1.442695, %v4489_v15 }
0x24cd   :  { %4510 = vrot.lane.b32.xlu1 %v4485_v9, %s7911_s25  ;;  %v4488_v8 = vadd.f32 %v4485_v9, %v4330_v23  ;;  %v5584_v3 = vmul.f32 -1.442695, %v4487_v29 }
0x24cf   :  { %4512 = vrot.lane.b32.xlu0 %v4480_v10, %s7911_s25  ;;  %v5585_v1 = vmul.f32 -1.442695, %v4488_v8  ;;  %7803 = vpow2.f32 %v5584_v3 }
0x24d1   :  { %7805 = vpow2.f32 %v5585_v1 }
0x24d2   :  { %7807 = vpow2.f32 %v5586_v40 }
0x24d9   :  { %v7804_v61 = vpop.eup %7803 }
0x24da   :  { %v4499_v35 = vadd.f32 1.0, %v7804_v61 }
0x24db   :  { %v7806_v33 = vpop.eup %7805 }
0x24dc   :  { %v7808_v49 = vpop.eup %7807  ;;  %v4500_v6 = vadd.f32 1.0, %v7806_v33  ;;  %7809 = vrcp.f32 %v4499_v35 }
0x24dd   :  { %v4501_v60 = vadd.f32 1.0, %v7808_v49 }
0x24de   :  { %7811 = vrcp.f32 %v4500_v6 }
0x24df   :  { %7813 = vrcp.f32 %v4501_v60 }
0x24e6   :  { %v7810_v38 = vpop.eup %7809 }
0x24e7   :  { %v4538_v63 = vsub.f32 1.0, %v7810_v38  ;;  %v4556_v16 = vmul.f32 0.0, %v7810_v38 }
0x24e8   :  { %v7812_v57 = vpop.eup %7811 }
0x24e9   :  { %v7814_v41 = vpop.eup %7813  ;;  %v4539_v55 = vsub.f32 1.0, %v7812_v57  ;;  %v4557_v17 = vmul.f32 0.0, %v7812_v57 }
0x24ea   :  { %v4540_v10 = vsub.f32 1.0, %v7814_v41 }
0x253d   :  { %v4509_v27 = vpop.permute.xlu0 %4508 }
0x253e   :  { %v4517_v46 = vmul.f32 %v7810_v38, %v4509_v27 }
0x253f   :  { %v4511_v47 = vpop.permute.xlu1 %4510 }
0x2540   :  { %v4518_v54 = vmul.f32 %v7812_v57, %v4511_v47  ;;  %4523 = vrot.lane.b32.xlu1 %v4517_v46, %s7911_s25 }
0x2541   :  { %v4513_v58 = vpop.permute.xlu0 %4512 }
0x2542   :  { %v4519_v14 = vmul.f32 %v7814_v41, %v4513_v58  ;;  %4525 = vrot.lane.b32.xlu0 %v4518_v54, %s7911_s25 }
0x2544   :  { %4527 = vrot.lane.b32.xlu1 %v4519_v14, %s7911_s25 }
0x25b2   :  { %v4524_v22 = vpop.permute.xlu1 %4523 }
0x25b3   :  { %v4532_v56 = vadd.f32 %v4524_v22, %v4343_v37 }
0x25b4   :  { %v4526_v24 = vpop.permute.xlu0 %4525 }
0x25b5   :  { %7815 = vtanh.f32 %v4532_v56  ;;  %v4533_v43 = vadd.f32 %v4526_v24, %v4330_v23 }
0x25b6   :  { %v4528_v20 = vpop.permute.xlu1 %4527 }
0x25b7   :  { %7817 = vtanh.f32 %v4533_v43  ;;  %v4534_v34 = vadd.f32 %v4528_v20, %v4344_v31  ;;  %v4558_v31 = vmul.f32 0.0, %v7814_v41 }
0x25b9   :  { %7819 = vtanh.f32 %v4534_v34 }
0x25bf   :  { %v7816_v32 = vpop.eup %7815 }
0x25c0   :  { %4544 = vrot.lane.b32.xlu0 %v7816_v32, %s7908_s2 }
0x25c1   :  { %v7818_v39 = vpop.eup %7817 }
0x25c2   :  { %4546 = vrot.lane.b32.xlu1 %v7818_v39, %s7908_s2 }
0x25c3   :  { %v7820_v59 = vpop.eup %7819 }
0x25c4   :  { %4548 = vrot.lane.b32.xlu0 %v7820_v59, %s7908_s2 }
0x2632   :  { %v4545_v0 = vpop.permute.xlu0 %4544 }
0x2633   :  { %v4553_v62 = vmul.f32 %v4545_v0, %v4538_v63 }
0x2634   :  { %v4547_v26 = vpop.permute.xlu1 %4546 }
0x2635   :  { %v4554_v9 = vmul.f32 %v4547_v26, %v4539_v55  ;;  %v9974_v37 = vadd.f32 %v4556_v16, %v4553_v62 }
0x2636   :  { %v4549_v23 = vpop.permute.xlu0 %4548 }
0x2637   :  { %v9976_v29 = vadd.f32 %v4557_v17, %v4554_v9  ;;  %v4555_v8 = vmul.f32 %v4549_v23, %v4540_v10 }
0x2639   :  { %v9980_v15 = vcombine.low %v9974_v37, %v9976_v29  ;;  %v9982_v3 = vadd.f32 %v4558_v31, %v4555_v8 }
0x263b   :  { %4576 = vrot.lane.b32.xlu1 %v9980_v15, %s7908_s2  ;;  %4578 = vrot.lane.b32.xlu0 %v9982_v3, %s7908_s2 }
0x26ad   :  { %v4577_v1 = vpop.permute.xlu1 %4576  ;;  %v4579_v40 = vpop.permute.xlu0 %4578 }
0x26ae   :  { %6610 = vmatprep.mubr.msk.f32.mxu1 %vm83_vm0, %v4577_v1 }
0x26af   :  { %6611 = vmatmul.mubr.msk.f32.vlgmr.msra.gmra.mrb[42].mxu1 %vm83_vm0, %v4579_v40 }
0x26b0   :  { %7428 = vmatpush3.bf16.xpose.msk.msra.mxu1 %vm8010_vm1, %v9768_v36 }
0x26b1   :  { %7431 = vmatprep.subr.msk.bf16.mxu1 %vm8010_vm1, %v9779_v51 }
0x26b8   :  { %7434 = vmatpush3.bf16.xpose.msk.msra.mxu1 %vm8010_vm1, %v9779_v51 }
0x26b9   :  { %7437 = vmatprep.subr.msk.bf16.mxu1 %vm8010_vm1, %v9807_v25 }
0x26c0   :  { %7440 = vmatpush3.bf16.xpose.msk.msra.mxu1 %vm8010_vm1, %v9807_v25 }
0x26c1   :  { %7443 = vmatprep.subr.msk.bf16.mxu1 %vm8010_vm1, %v9827_v53 }
0x26c8   :  { %7446 = vmatpush3.bf16.xpose.msk.msra.mxu1 %vm8010_vm1, %v9827_v53 }
0x26c9   :  { %7449 = vmatprep.subr.msk.bf16.mxu1 %vm8010_vm1, %v9841_v42 }
0x26d0   :  { %7452 = vmatpush3.bf16.xpose.msk.msra.mxu1 %vm8010_vm1, %v9841_v42  ;;  %v4342_v42 = vcombine.high %v9741_v30, %v9741_v30 }
0x26d1   :  { %7455 = vmatprep.subr.msk.bf16.mxu1 %vm8010_vm1, %v9859_v4 }
0x26d8   :  { %7458 = vmatpush3.bf16.xpose.msk.msra.mxu1 %vm8010_vm1, %v9859_v4  ;;  %vm5116_vm1 = vcmask 523264  }
0x2782   :  { %v6612_v36 = vpop.f32.mrb[42].mxu1 }
0x2783   :  { %v4650_v51 = vpop.f32.mrb[43].mxu1  ;;  %v4656_v61 = vadd.f32 %v6612_v36, %v9953_v18 }
0x2784   :  { %v4651_v25 = vadd.f32 %v9953_v18, %v4650_v51 }
0x2785   :  { %v4665_v4 = vadd.f32 %v4656_v61, %v9962_v45 }
0x2786   :  { %v4661_v53 = vcombine.high %v4651_v25, %v4651_v25  ;;  %4684 = vrot.lane.b32.xlu1 %v4651_v25, %s7911_s25  ;;  %v4663_v33 = vadd.f32 %v4651_v25, %v9741_v30 }
0x2787   :  { %v5603_v6 = vmul.f32 -1.442695, %v4665_v4 }
0x2788   :  { %4686 = vrot.lane.b32.xlu0 %v4661_v53, %s7911_s25  ;;  %v4664_v2 = vadd.f32 %v4661_v53, %v4342_v42  ;;  %v5601_v35 = vmul.f32 -1.442695, %v4663_v33 }
0x278a   :  { %4688 = vrot.lane.b32.xlu1 %v4656_v61, %s7911_s25  ;;  %v5602_v49 = vmul.f32 -1.442695, %v4664_v2  ;;  %7821 = vpow2.f32 %v5601_v35 }
0x278c   :  { %7823 = vpow2.f32 %v5602_v49  ;;  %v4340_v49 = vcombine.high %v9735_v12, %v9735_v12 }
0x278d   :  { %7825 = vpow2.f32 %v5603_v6 }
0x2794   :  { %v7822_v60 = vpop.eup %7821 }
0x2795   :  { %v4675_v27 = vadd.f32 1.0, %v7822_v60  ;;  %v4341_v60 = vcombine.high %v9744_v44, %v9744_v44 }
0x2796   :  { %v7824_v38 = vpop.eup %7823 }
0x2797   :  { %v7826_v46 = vpop.eup %7825  ;;  %v4676_v57 = vadd.f32 1.0, %v7824_v38  ;;  %7827 = vrcp.f32 %v4675_v27 }
0x2798   :  { %v4677_v47 = vadd.f32 1.0, %v7826_v46 }
0x2799   :  { %7829 = vrcp.f32 %v4676_v57 }
0x279a   :  { %7831 = vrcp.f32 %v4677_v47 }
0x27a1   :  { %v7828_v54 = vpop.eup %7827 }
0x27a2   :  { %v4714_v16 = vsub.f32 1.0, %v7828_v54  ;;  %v4732_v23 = vmul.f32 %v7828_v54, %v9974_v37 }
0x27a3   :  { %v7830_v14 = vpop.eup %7829 }
0x27a4   :  { %v7832_v24 = vpop.eup %7831  ;;  %v4715_v9 = vsub.f32 1.0, %v7830_v14  ;;  %v4733_v31 = vmul.f32 %v7830_v14, %v9976_v29 }
0x27a5   :  { %v4716_v8 = vsub.f32 1.0, %v7832_v24  ;;  %v4734_v51 = vmul.f32 %v7832_v24, %v9982_v3 }
0x27f8   :  { %v4685_v41 = vpop.permute.xlu1 %4684 }
0x27f9   :  { %v4693_v58 = vmul.f32 %v7828_v54, %v4685_v41 }
0x27fa   :  { %v4687_v22 = vpop.permute.xlu0 %4686 }
0x27fb   :  { %v4694_v56 = vmul.f32 %v7830_v14, %v4687_v22  ;;  %4699 = vrot.lane.b32.xlu0 %v4693_v58, %s7911_s25 }
0x27fc   :  { %v4689_v43 = vpop.permute.xlu1 %4688 }
0x27fd   :  { %v4695_v20 = vmul.f32 %v7832_v24, %v4689_v43  ;;  %4701 = vrot.lane.b32.xlu1 %v4694_v56, %s7911_s25 }
0x27ff   :  { %4703 = vrot.lane.b32.xlu0 %v4695_v20, %s7911_s25 }
0x286d   :  { %v4700_v34 = vpop.permute.xlu0 %4699 }
0x286e   :  { %v4708_v32 = vadd.f32 %v4700_v34, %v9741_v30 }
0x286f   :  { %v4702_v39 = vpop.permute.xlu1 %4701 }
0x2870   :  { %7833 = vtanh.f32 %v4708_v32  ;;  %v4709_v59 = vadd.f32 %v4702_v39, %v4342_v42 }
0x2871   :  { %v4704_v63 = vpop.permute.xlu0 %4703 }
0x2872   :  { %7835 = vtanh.f32 %v4709_v59  ;;  %v4710_v0 = vadd.f32 %v4704_v63, %v9962_v45 }
0x2874   :  { %7837 = vtanh.f32 %v4710_v0 }
0x287a   :  { %v7834_v62 = vpop.eup %7833 }
0x287b   :  { %4720 = vrot.lane.b32.xlu1 %v7834_v62, %s7908_s2 }
0x287c   :  { %v7836_v55 = vpop.eup %7835 }
0x287d   :  { %4722 = vrot.lane.b32.xlu0 %v7836_v55, %s7908_s2 }
0x287e   :  { %v7838_v26 = vpop.eup %7837 }
0x287f   :  { %4724 = vrot.lane.b32.xlu1 %v7838_v26, %s7908_s2 }
0x28ed   :  { %v4721_v17 = vpop.permute.xlu1 %4720 }
0x28ee   :  { %v4729_v30 = vmul.f32 %v4721_v17, %v4714_v16 }
0x28ef   :  { %v4723_v10 = vpop.permute.xlu0 %4722 }
0x28f0   :  { %v4730_v45 = vmul.f32 %v4723_v10, %v4715_v9  ;;  %v10042_v40 = vadd.f32 %v4732_v23, %v4729_v30 }
0x28f1   :  { %v4725_v1 = vpop.permute.xlu1 %4724 }
0x28f2   :  { %v10044_v36 = vadd.f32 %v4733_v31, %v4730_v45  ;;  %v4731_v25 = vmul.f32 %v4725_v1, %v4716_v8 }
0x28f4   :  { %v10049_v53 = vcombine.low %v10042_v40, %v10044_v36  ;;  %v10051_v61 = vadd.f32 %v4734_v51, %v4731_v25 }
0x28f6   :  { %4752 = vrot.lane.b32.xlu0 %v10049_v53, %s7908_s2  ;;  %4754 = vrot.lane.b32.xlu1 %v10051_v61, %s7908_s2 }
0x2968   :  { %v4753_v37 = vpop.permute.xlu0 %4752  ;;  %v4755_v29 = vpop.permute.xlu1 %4754 }
0x2969   :  { %6637 = vmatprep.mubr.msk.f32.mxu0 %vm83_vm0, %v4753_v37 }
0x296a   :  { %6638 = vmatmul.mubr.msk.f32.vlgmr.msra.gmra.mrb[46].mxu0 %vm83_vm0, %v4755_v29 }
0x2a3d   :  { %v6639_v42 = vpop.f32.mrb[46].mxu0 }
0x2a3e   :  { %v4826_v33 = vpop.f32.mrb[47].mxu0  ;;  %v4832_v35 = vadd.f32 %v6639_v42, %v9953_v18 }
0x2a3f   :  { %v4827_v2 = vadd.f32 %v9953_v18, %v4826_v33 }
0x2a40   :  { %v4841_v27 = vadd.f32 %v4832_v35, %v4341_v60 }
0x2a41   :  { %v4837_v4 = vcombine.high %v4827_v2, %v4827_v2  ;;  %4860 = vrot.lane.b32.xlu0 %v4827_v2, %s7911_s25  ;;  %v4839_v6 = vadd.f32 %v4827_v2, %v4340_v49 }
0x2a42   :  { %v5620_v47 = vmul.f32 -1.442695, %v4841_v27 }
0x2a43   :  { %4862 = vrot.lane.b32.xlu1 %v4837_v4, %s7911_s25  ;;  %v4840_v38 = vadd.f32 %v4837_v4, %v9744_v44  ;;  %v5618_v46 = vmul.f32 -1.442695, %v4839_v6 }
0x2a45   :  { %4864 = vrot.lane.b32.xlu0 %v4832_v35, %s7911_s25  ;;  %v5619_v57 = vmul.f32 -1.442695, %v4840_v38  ;;  %7839 = vpow2.f32 %v5618_v46  ;;  %v10105_v46 = vcombine.high %v9551_v19, %v9551_v19 }
0x2a47   :  { %7841 = vpow2.f32 %v5619_v57 }
0x2a48   :  { %7843 = vpow2.f32 %v5620_v47 }
0x2a4f   :  { %v7840_v54 = vpop.eup %7839 }
0x2a50   :  { %v4851_v58 = vadd.f32 1.0, %v7840_v54  ;;  %v10111_v54 = vcombine.high %v9549_v7, %v9549_v7 }
0x2a51   :  { %v7842_v41 = vpop.eup %7841 }
0x2a52   :  { %v7844_v14 = vpop.eup %7843  ;;  %v4852_v22 = vadd.f32 1.0, %v7842_v41  ;;  %7845 = vrcp.f32 %v4851_v58 }
0x2a53   :  { %v4853_v56 = vadd.f32 1.0, %v7844_v14 }
0x2a54   :  { %7847 = vrcp.f32 %v4852_v22 }
0x2a55   :  { %7849 = vrcp.f32 %v4853_v56 }
0x2a5c   :  { %v7846_v24 = vpop.eup %7845 }
0x2a5d   :  { %v4890_v31 = vsub.f32 1.0, %v7846_v24 }
0x2a5e   :  { %v7848_v34 = vpop.eup %7847 }
0x2a5f   :  { %v7850_v59 = vpop.eup %7849  ;;  %v4891_v1 = vsub.f32 1.0, %v7848_v34  ;;  %v4909_v25 = vmul.f32 %v7848_v34, %v10044_v36 }
0x2a60   :  { %v4892_v29 = vsub.f32 1.0, %v7850_v59  ;;  %v4910_v4 = vmul.f32 %v7850_v59, %v10051_v61 }
0x2ab3   :  { %v4861_v43 = vpop.permute.xlu0 %4860 }
0x2ab4   :  { %v4869_v20 = vmul.f32 %v7846_v24, %v4861_v43 }
0x2ab5   :  { %v4863_v32 = vpop.permute.xlu1 %4862 }
0x2ab6   :  { %v4870_v39 = vmul.f32 %v7848_v34, %v4863_v32  ;;  %4875 = vrot.lane.b32.xlu1 %v4869_v20, %s7911_s25 }
0x2ab7   :  { %v4865_v63 = vpop.permute.xlu0 %4864 }
0x2ab8   :  { %v4871_v0 = vmul.f32 %v7850_v59, %v4865_v63  ;;  %4877 = vrot.lane.b32.xlu0 %v4870_v39, %s7911_s25 }
0x2aba   :  { %4879 = vrot.lane.b32.xlu1 %v4871_v0, %s7911_s25 }
0x2b28   :  { %v4876_v62 = vpop.permute.xlu1 %4875 }
0x2b29   :  { %v4884_v55 = vadd.f32 %v4876_v62, %v4340_v49  ;;  %v7907_v49 = vld [vmem:[%s10227_s12] ss:$0 sm:$0xff] }
0x2b2a   :  { %v4878_v26 = vpop.permute.xlu0 %4877  ;;  %v4078_v6 = vadd.f32 %v7907_v49, %v9948_v13  ;;  %v4083_v38 = vadd.f32 %v7907_v49, %v9946_v5 }
0x2b2b   :  { %7851 = vtanh.f32 %v4884_v55  ;;  %v4885_v16 = vadd.f32 %v4878_v26, %v9744_v44  ;;  %v4908_v44 = vmul.f32 %v7846_v24, %v10042_v40 }
0x2b2c   :  { %v4880_v17 = vpop.permute.xlu1 %4879  ;;  %v4090_v57 = vadd.f32 %v4078_v6, %v10105_v46  ;;  %v4092_v5 = vadd.f32 %v4083_v38, %v10111_v54 }
0x2b2d   :  { %7853 = vtanh.f32 %v4885_v16  ;;  %v4886_v30 = vadd.f32 %v4880_v17, %v4341_v60  ;;  %v4088_v60 = vcombine.high %v4078_v6, %v4078_v6 }
0x2b2e   :  { %v5523_v41 = vmul.f32 -1.442695, %v4090_v57  ;;  %v5525_v14 = vmul.f32 -1.442695, %v4092_v5 }
0x2b2f   :  { %7855 = vtanh.f32 %v4886_v30  ;;  %v4091_v47 = vadd.f32 %v4088_v60, %v9549_v7 }
0x2b30   :  { %7857 = vpow2.f32 %v5523_v41 }
0x2b31   :  { %v5524_v58 = vmul.f32 -1.442695, %v4091_v47 }
0x2b33   :  { %7859 = vpow2.f32 %v5524_v58 }
0x2b34   :  { %7861 = vpow2.f32 %v5525_v14 }
0x2b35   :  { %v7852_v9 = vpop.eup %7851 }
0x2b36   :  { %4896 = vrot.lane.b32.xlu0 %v7852_v9, %s7908_s2 }
0x2b37   :  { %v7854_v10 = vpop.eup %7853 }
0x2b38   :  { %4898 = vrot.lane.b32.xlu1 %v7854_v10, %s7908_s2  ;;  %v4339_v10 = vcombine.high %v9738_v50, %v9738_v50 }
0x2b39   :  { %v7856_v23 = vpop.eup %7855 }
0x2b3a   :  { %4900 = vrot.lane.b32.xlu0 %v7856_v23, %s7908_s2  ;;  %v7858_v22 = vpop.eup %7857 }
0x2b3b   :  { %v4102_v19 = vadd.f32 1.0, %v7858_v22 }
0x2b3d   :  { %v7860_v56 = vpop.eup %7859  ;;  %7863 = vrcp.f32 %v4102_v19 }
0x2b3e   :  { %v7862_v24 = vpop.eup %7861  ;;  %v4103_v43 = vadd.f32 1.0, %v7860_v56 }
0x2b3f   :  { %v4104_v20 = vadd.f32 1.0, %v7862_v24 }
0x2b40   :  { %7865 = vrcp.f32 %v4103_v43 }
0x2b41   :  { %7867 = vrcp.f32 %v4104_v20 }
0x2b47   :  { %v10118_v55 = vpop.eup %7863 }
0x2b4a   :  { %v10121_v26 = vpop.eup %7865 }
0x2ba8   :  { %v4897_v45 = vpop.permute.xlu0 %4896 }
0x2ba9   :  { %v4905_v8 = vmul.f32 %v4897_v45, %v4890_v31 }
0x2baa   :  { %v4899_v51 = vpop.permute.xlu1 %4898 }
0x2bab   :  { %v4906_v37 = vmul.f32 %v4899_v51, %v4891_v1  ;;  %v10078_v33 = vadd.f32 %v4908_v44, %v4905_v8 }
0x2bac   :  { %v4901_v42 = vpop.permute.xlu0 %4900 }
0x2bad   :  { %v10080_v2 = vadd.f32 %v4909_v25, %v4906_v37  ;;  %v4907_v35 = vmul.f32 %v4901_v42, %v4892_v29 }
0x2baf   :  { %v10089_v40 = vcombine.low %v10078_v33, %v10080_v2  ;;  %v10091_v36 = vadd.f32 %v4910_v4, %v4907_v35 }
0x2bb1   :  { %4928 = vrot.lane.b32.xlu1 %v10089_v40, %s7908_s2  ;;  %4930 = vrot.lane.b32.xlu0 %v10091_v36, %s7908_s2 }
0x2bb5   :  { %4111 = vrot.lane.b32.xlu1 %v4078_v6, %s7911_s25  ;;  %4113 = vrot.lane.b32.xlu0 %v4088_v60, %s7911_s25 }
0x2bb9   :  { %4115 = vrot.lane.b32.xlu1 %v4083_v38, %s7911_s25 }
0x2c23   :  { %v4929_v13 = vpop.permute.xlu1 %4928  ;;  %v4931_v27 = vpop.permute.xlu0 %4930 }
0x2c24   :  { %6664 = vmatprep.mubr.msk.f32.mxu1 %vm83_vm0, %v4929_v13 }
0x2c25   :  { %6665 = vmatmul.mubr.msk.f32.vlgmr.msra.gmra.mrb[44].mxu1 %vm83_vm0, %v4931_v27 }
0x2c27   :  { %v4112_v63 = vpop.permute.xlu1 %4111  ;;  %v4114_v62 = vpop.permute.xlu0 %4113 }
0x2c28   :  { %v4120_v16 = vmul.f32 %v10118_v55, %v4112_v63  ;;  %v4121_v17 = vmul.f32 %v10121_v26, %v4114_v62  ;;  %v4141_v63 = vsub.f32 1.0, %v10118_v55  ;;  %v4142_v62 = vsub.f32 1.0, %v10121_v26 }
0x2c2b   :  { %v4116_v30 = vpop.permute.xlu1 %4115 }
0x2cf8   :  { %v6666_v34 = vpop.f32.mrb[44].mxu1 }
0x2cf9   :  { %v5008_v32 = vadd.f32 %v6666_v34, %v9953_v18  ;;  %v5002_v39 = vpop.f32.mrb[45].mxu1 }
0x2cfa   :  { %v5003_v59 = vadd.f32 %v9953_v18, %v5002_v39  ;;  %v10126_v18 = vpop.eup %7867 }
0x2cfb   :  { %5040 = vrot.lane.b32.xlu0 %v5008_v32, %s7911_s25  ;;  %v4122_v9 = vmul.f32 %v10126_v18, %v4116_v30  ;;  %v5017_v8 = vadd.f32 %v5008_v32, %v9735_v12 }
0x2cfc   :  { %v5013_v0 = vcombine.high %v5003_v59, %v5003_v59  ;;  %v5015_v31 = vadd.f32 %v5003_v59, %v9738_v50 }
0x2cfd   :  { %v5637_v51 = vmul.f32 -1.442695, %v5017_v8  ;;  %v4161_v8 = vmul.f32 %v10126_v18, %v9805_v48  ;;  %v4919_v48 = vsel %vm1044_vm6, %v10089_v40, -inf }
0x2cfe   :  { %5038 = vrot.lane.b32.xlu1 %v5013_v0, %s7911_s25  ;;  %v5016_v23 = vadd.f32 %v5013_v0, %v4339_v10  ;;  %v5635_v1 = vmul.f32 -1.442695, %v5015_v31 }
0x2cff   :  { %5036 = vrot.lane.b32.xlu0 %v5003_v59, %s7911_s25 }
0x2d00   :  { %v5636_v45 = vmul.f32 -1.442695, %v5016_v23  ;;  %v4143_v23 = vsub.f32 1.0, %v10126_v18  ;;  %v4920_v18 = vsel %vm1046_vm7, %v10091_v36, -inf }
0x2d02   :  { %4126 = vrot.lane.b32.xlu1 %v4120_v16, %s7911_s25  ;;  %7869 = vpow2.f32 %v5636_v45 }
0x2d03   :  { %4128 = vrot.lane.b32.xlu0 %v4121_v17, %s7911_s25  ;;  %7871 = vpow2.f32 %v5635_v1 }
0x2d04   :  { %7873 = vpow2.f32 %v5637_v51 }
0x2d06   :  { %4130 = vrot.lane.b32.xlu1 %v4122_v9, %s7911_s25 }
0x2d0c   :  { %v7870_v44 = vpop.eup %7869 }
0x2d0d   :  { %v7872_v25 = vpop.eup %7871  ;;  %v5028_v37 = vadd.f32 1.0, %v7870_v44 }
0x2d0e   :  { %v5027_v29 = vadd.f32 1.0, %v7872_v25  ;;  %v7874_v42 = vpop.eup %7873 }
0x2d0f   :  { %7875 = vrcp.f32 %v5028_v37  ;;  %v5029_v4 = vadd.f32 1.0, %v7874_v42 }
0x2d10   :  { %7877 = vrcp.f32 %v5027_v29 }
0x2d11   :  { %7879 = vrcp.f32 %v5029_v4 }
0x2d19   :  { %v10135_v49 = vpop.eup %7875 }
0x2d1a   :  { %v10137_v60 = vpop.eup %7877 }
0x2d1b   :  { %v10143_v47 = vpop.eup %7879 }
0x2d6d   :  { %v5041_v35 = vpop.permute.xlu0 %5040 }
0x2d6e   :  { %v5047_v58 = vmul.f32 %v10143_v47, %v5041_v35 }
0x2d70   :  { %v5039_v6 = vpop.permute.xlu1 %5038 }
0x2d71   :  { %v5046_v38 = vmul.f32 %v10135_v49, %v5039_v6  ;;  %v5037_v13 = vpop.permute.xlu0 %5036  ;;  %v4743_v6 = vsel %vm1044_vm6, %v10049_v53, -inf  ;;  %v5085_v53 = vmul.f32 %v10135_v49, %v10080_v2 }
0x2d72   :  { %v5045_v27 = vmul.f32 %v10137_v60, %v5037_v13  ;;  %v4567_v13 = vsel %vm1044_vm6, %v9980_v15, -inf }
0x2d73   :  { %5053 = vrot.lane.b32.xlu1 %v5046_v38, %s7911_s25  ;;  %v4744_v38 = vsel %vm1046_vm7, %v10051_v61, -inf  ;;  %v5084_v61 = vmul.f32 %v10137_v60, %v10078_v33 }
0x2d74   :  { %v4127_v57 = vpop.permute.xlu1 %4126  ;;  %5051 = vrot.lane.b32.xlu0 %v5045_v27, %s7911_s25  ;;  %v4921_v27 = vmax.f32 %v4919_v48, %v4920_v18 }
0x2d75   :  { %v4135_v5 = vadd.f32 %v4127_v57, %v10105_v46  ;;  %v4129_v41 = vpop.permute.xlu0 %4128  ;;  %v5067_v57 = vsub.f32 1.0, %v10135_v49 }
0x2d76   :  { %v4136_v14 = vadd.f32 %v4129_v41, %v9549_v7  ;;  %v5066_v41 = vsub.f32 1.0, %v10137_v60 }
0x2d77   :  { %7881 = vtanh.f32 %v4135_v5  ;;  %v4745_v5 = vmax.f32 %v4743_v6, %v4744_v38 }
0x2d78   :  { %7883 = vtanh.f32 %v4136_v14  ;;  %v4131_v22 = vpop.permute.xlu1 %4130  ;;  %5055 = vrot.lane.b32.xlu0 %v5047_v58, %s7911_s25 }
0x2d79   :  { %v4137_v56 = vadd.f32 %v4131_v22, %v10111_v54 }
0x2d7b   :  { %7885 = vtanh.f32 %v4137_v56  ;;  %v4922_v56 = vrot.slane %v4921_v27, 4 }
0x2d7d   :  { %v4923_v2 = vmax.f32 %v4921_v27, %v4922_v56 }
0x2d81   :  { %v7882_v19 = vpop.eup %7881 }
0x2d82   :  { %v7884_v24 = vpop.eup %7883  ;;  %4147 = vrot.lane.b32.xlu1 %v7882_v19, %s7908_s2 }
0x2d83   :  { %4149 = vrot.lane.b32.xlu0 %v7884_v24, %s7908_s2 }
0x2d85   :  { %v7886_v46 = vpop.eup %7885 }
0x2d86   :  { %4151 = vrot.lane.b32.xlu1 %v7886_v46, %s7908_s2  ;;  %v5068_v46 = vsub.f32 1.0, %v10143_v47 }
0x2de5   :  { %v5054_v43 = vpop.permute.xlu1 %5053 }
0x2de6   :  { %v5061_v20 = vadd.f32 %v5054_v43, %v4339_v10  ;;  %v5052_v7 = vpop.permute.xlu0 %5051 }
0x2de7   :  { %v5060_v34 = vadd.f32 %v5052_v7, %v9738_v50  ;;  %v4159_v50 = vmul.f32 %v10118_v55, %v9792_v52 }
0x2de8   :  { %7887 = vtanh.f32 %v5061_v20 }
0x2de9   :  { %7889 = vtanh.f32 %v5060_v34  ;;  %v5086_v34 = vmul.f32 %v10143_v47, %v10091_v36 }
0x2dea   :  { %v5056_v32 = vpop.permute.xlu0 %5055 }
0x2deb   :  { %v5062_v54 = vadd.f32 %v5056_v32, %v9735_v12  ;;  %v4160_v12 = vmul.f32 %v10121_v26, %v9794_v21 }
0x2ded   :  { %7891 = vtanh.f32 %v5062_v54 }
0x2df2   :  { %v7888_v39 = vpop.eup %7887 }
0x2df3   :  { %v7890_v59 = vpop.eup %7889  ;;  %5074 = vrot.lane.b32.xlu1 %v7888_v39, %s7908_s2 }
0x2df4   :  { %v4148_v0 = vpop.permute.xlu1 %4147  ;;  %5072 = vrot.lane.b32.xlu0 %v7890_v59, %s7908_s2  ;;  %v4924_v59 = vrot.slane %v4923_v2, 2 }
0x2df5   :  { %v4156_v16 = vmul.f32 %v4148_v0, %v4141_v63  ;;  %v4150_v17 = vpop.permute.xlu0 %4149 }
0x2df6   :  { %v4157_v30 = vmul.f32 %v4150_v17, %v4142_v62 }
0x2df7   :  { %v7892_v9 = vpop.eup %7891  ;;  %v4162_v10 = vadd.f32 %v4159_v50, %v4156_v16  ;;  %v4925_v16 = vmax.f32 %v4923_v2, %v4924_v59 }
0x2df8   :  { %v4163_v31 = vadd.f32 %v4160_v12, %v4157_v30  ;;  %v4152_v45 = vpop.permute.xlu1 %4151  ;;  %5076 = vrot.lane.b32.xlu0 %v7892_v9, %s7908_s2 }
0x2df9   :  { %v4158_v1 = vmul.f32 %v4152_v45, %v4143_v23  ;;  %v4926_v36 = vrot.slane %v4925_v16, 1 }
0x2dfa   :  { %v4167_v51 = vcombine.low %v4162_v10, %v4163_v31 }
0x2dfb   :  { %v4164_v52 = vadd.f32 %v4161_v8, %v4158_v1  ;;  %v4927_v8 = vmax.f32 %v4925_v16, %v4926_v36 }
0x2dfc   :  { %v4169_v55 = vsel %vm1044_vm6, %v4167_v51, -inf }
0x2dfd   :  { %v4170_v44 = vsel %vm1046_vm7, %v4164_v52, -inf }
0x2dfe   :  { %v4171_v21 = vmax.f32 %v4169_v55, %v4170_v44 }
0x2e00   :  { %v4172_v26 = vrot.slane %v4171_v21, 4 }
0x2e02   :  { %v4173_v25 = vmax.f32 %v4171_v21, %v4172_v26 }
0x2e04   :  { %v4174_v37 = vrot.slane %v4173_v25, 2 }
0x2e06   :  { %v4175_v29 = vmax.f32 %v4173_v25, %v4174_v37  ;;  %v24_v25 = vstv %s10229_s16 }
0x2e07   :  { %25 = vst [vmem:[#allocation3] sm:$0x1] %v24_v25 }
0x2e08   :  { %v4176_v42 = vrot.slane %v4175_v29, 1 }
0x2e0a   :  { %v4177_v4 = vmax.f32 %v4175_v29, %v4176_v42  ;;  %v5638_v29 = vld [vmem:[%s10230_s15] ss:$0 sm:$0xff] }
0x2e0c   :  { %v4180_v35 = vsel %vm1585_vm9, %v9848_v28, %v4177_v4  ;;  %v4568_v28 = vsel %vm1046_vm7, %v9982_v3, -inf  ;;  %v4746_v3 = vrot.slane %v4745_v5, 4 }
0x2e0d   :  { %5107 = vrot.lane.b32.xlu1 %v4180_v35, %s7908_s2  ;;  %v4569_v58 = vmax.f32 %v4567_v13, %v4568_v28 }
0x2e0e   :  { %v4747_v49 = vmax.f32 %v4745_v5, %v4746_v3  ;;  %v5639_v18 = vld [vmem:[#allocation3] ss:$0 sm:$0xff] }
0x2e0f   :  { %v4570_v43 = vrot.slane %v4569_v58, 4 }
0x2e10   :  { %v4748_v0 = vrot.slane %v4747_v49, 2 }
0x2e11   :  { %v4571_v39 = vmax.f32 %v4569_v58, %v4570_v43 }
0x2e12   :  { %v4749_v12 = vmax.f32 %v4747_v49, %v4748_v0 }
0x2e13   :  { %v4572_v62 = vrot.slane %v4571_v39, 2 }
0x2e14   :  { %v4750_v10 = vrot.slane %v4749_v12, 1 }
0x2e15   :  { %v4573_v9 = vmax.f32 %v4571_v39, %v4572_v62 }
0x2e16   :  { %v4751_v1 = vmax.f32 %v4749_v12, %v4750_v10 }
0x2e17   :  { %v4574_v31 = vrot.slane %v4573_v9, 1 }
0x2e19   :  { %v4575_v51 = vmax.f32 %v4573_v9, %v4574_v31 }
0x2e65   :  { %v5075_v40 = vpop.permute.xlu1 %5074 }
0x2e66   :  { %v5082_v14 = vmul.f32 %v5075_v40, %v5067_v57  ;;  %v5073_v22 = vpop.permute.xlu0 %5072 }
0x2e67   :  { %v5081_v15 = vmul.f32 %v5073_v22, %v5066_v41 }
0x2e68   :  { %v5088_v19 = vadd.f32 %v5085_v53, %v5082_v14 }
0x2e69   :  { %v5087_v24 = vadd.f32 %v5084_v61, %v5081_v15 }
0x2e6a   :  { %v5077_v20 = vpop.permute.xlu0 %5076 }
0x2e6b   :  { %v5092_v7 = vcombine.low %v5087_v24, %v5088_v19  ;;  %v5083_v32 = vmul.f32 %v5077_v20, %v5068_v46 }
0x2e6d   :  { %v5089_v54 = vadd.f32 %v5086_v34, %v5083_v32  ;;  %v5094_v33 = vsel %vm1044_vm6, %v5092_v7, -inf }
0x2e6f   :  { %v5095_v60 = vsel %vm1046_vm7, %v5089_v54, -inf }
0x2e70   :  { %v5096_v63 = vmax.f32 %v5094_v33, %v5095_v60 }
0x2e72   :  { %v5097_v50 = vrot.slane %v5096_v63, 4 }
0x2e74   :  { %v5098_v17 = vmax.f32 %v5096_v63, %v5097_v50 }
0x2e76   :  { %v5099_v30 = vrot.slane %v5098_v17, 2 }
0x2e78   :  { %v5100_v47 = vmax.f32 %v5098_v17, %v5099_v30 }
0x2e7a   :  { %v5101_v23 = vrot.slane %v5100_v47, 1 }
0x2e7c   :  { %v5102_v45 = vmax.f32 %v5100_v47, %v5101_v23 }
0x2e7e   :  { %v5103_v52 = vsel %vm1582_vm8, %v5102_v45, %v4927_v8 }
0x2e7f   :  { %v5104_v55 = vsel %vm537_vm2, %v5103_v52, %v4751_v1  ;;  %v5108_v44 = vpop.permute.xlu1 %5107 }
0x2e80   :  { %v5105_v21 = vsel %vm1585_vm9, %v5104_v55, %v4575_v51 }
0x2e81   :  { %v5110_v26 = vsel %vm83_vm0, %v5108_v44, %v5105_v21 }
0x2e82   :  { %7893 = vtanh.f32 %v5110_v26 }
0x2e8c   :  { %v7894_v37 = vpop.eup %7893 }
0x2e8d   :  { %5113 = vrot.lane.b32.xlu0 %v7894_v37, %s7911_s25 }
0x2eff   :  { %v5114_v42 = vpop.permute.xlu0 %5113 }
0x2f00   :  { %v5117_v4 = vsel %vm5116_vm1, %v9109_v11, %v5114_v42 }
0x2f01   :  { %v5125_v35 = vmul.f32 %v5638_v29, %v5117_v4 }
0x2f03   :  { %v5126_v48 = vsel %vm3138_vm12, %v5125_v35, 0.0 }
0x2f04   :  { %5127 = vadd.xlane.f32.xlu1 %v5126_v48 }
0x2f91   :  { %v5128_v6 = vpop.xlane.xlu1 %5127 }
0x2f92   :  { %v5136_v38 = vadd.f32 %v5639_v18, %v5128_v6 }
0x2f94   :  { %v5137_v13 = vsel %vm2540_vm11, %v5136_v38, -inf }
0x2f95   :  { %v5138_v28 = vrot.slane %v5137_v13, 4 }
0x2f97   :  { %v5139_v27 = vmax.f32 %v5137_v13, %v5138_v28 }
0x2f99   :  { %v5140_v57 = vrot.slane %v5139_v27, 2 }
0x2f9b   :  { %v5141_v5 = vmax.f32 %v5139_v27, %v5140_v57 }
0x2f9d   :  { %v5142_v40 = vrot.slane %v5141_v5, 1 }
0x2f9f   :  { %v5143_v41 = vmax.f32 %v5141_v5, %v5142_v40 }
0x2fa1   :  { %v5144_v58 = vsub.f32 %v5136_v38, %v5143_v41 }
0x2fa3   :  { %v5145_v53 = vmul.f32 1.442695, %v5144_v58 }
0x2fa5   :  { %7895 = vpow2.f32 %v5145_v53 }
0x2faf   :  { %v7896_v14 = vpop.eup %7895 }
0x2fb0   :  { %v5147_v11 = vsel %vm2540_vm11, %v7896_v14, 0.0 }
0x2fb1   :  { %v5148_v22 = vrot.slane %v5147_v11, 4 }
0x2fb3   :  { %v5149_v61 = vadd.f32 %v5148_v22, %v5147_v11 }
0x2fb5   :  { %v5150_v15 = vrot.slane %v5149_v61, 2 }
0x2fb7   :  { %v5151_v56 = vadd.f32 %v5150_v15, %v5149_v61 }
0x2fb9   :  { %v5152_v19 = vrot.slane %v5151_v56, 1 }
0x2fbb   :  { %v5153_v3 = vadd.f32 %v5152_v19, %v5151_v56 }
0x2fbd   :  { %7897 = vlog2.f32 %v5153_v3 }
0x2fc7   :  { %v7898_v24 = vpop.eup %7897 }
0x2fc8   :  { %v5155_v46 = vmul.f32 0.6931472, %v7898_v24 }
0x2fca   :  { %v5156_v43 = vadd.f32 %v5155_v46, %v5143_v41 }
0x2fcc   :  { %v5157_v20 = vsub.f32 %v5136_v38, %v5156_v43 }
0x2fce   :  { %5158 = vst.msk [vmem:[%s10231_s17] sm:$0xf] %vm2540_vm11, %v5157_v20 }

</bundles_post_ra>
